<compile_context>
chip_gen: v6e
topology: v6e:2x2x1
jax: 0.10.0
libtpu: 0.0.40
codegen_flags: <defaults>
</compile_context>

<pallas_src>
import functools

import jax
import jax.numpy as jnp
from jax.experimental import pallas as pl
from jax.experimental.pallas import tpu as pltpu


# ----------------------------------------------------------------------------
# Kernel: serial LSTM recurrence + fused FC head for one batch tile.
# ----------------------------------------------------------------------------
def _lstm_fused_kernel(gx_ref, whh_ref, w1_ref, b1_ref, w2_ref, b2_ref, out_ref):
    T = gx_ref.shape[0]                   # sequence length (static)
    B = out_ref.shape[0]                  # batch tile
    H = whh_ref.shape[0]                  # hidden dim

    h = jnp.zeros((B, H), jnp.float32)
    c = jnp.zeros((B, H), jnp.float32)

    # TODO(synk): holding W_hh resident in MXU weight registers across the T
    # steps via pltpu.matmul_push_rhs/matmul_acc_lhs/matmul_pop would shave the
    # per-step weight-load latency further; not adopted to keep lowering
    # portable across v5e/v6e/v7x.
    for t in range(T):                    # static unroll: T known at trace time
        # Only the h @ W_hh^T matmul is on the serial path; bf16 operands,
        # f32 accumulation.  gx (precomputed x-projection + bias) read per step
        # straight from its VMEM block.
        gates = gx_ref[t] + jnp.dot(
            h.astype(jnp.bfloat16), whh_ref[...],
            preferred_element_type=jnp.float32)               # (B, 4H) f32
        # sigmoid(x) = 0.5*tanh(0.5*x) + 0.5  (EUP tanh + VPU fma, no divide).
        sig = 0.5 * jnp.tanh(0.5 * gates[:, :3 * H]) + 0.5    # [i | f | o]
        g_g = jnp.tanh(gates[:, 3 * H:])                      # [g]
        i_g = sig[:, :H]
        f_g = sig[:, H:2 * H]
        o_g = sig[:, 2 * H:]
        c = f_g * c + i_g * g_g
        h = o_g * jnp.tanh(c)

    # Fused FC head: Linear(H,64) -> ReLU -> Dropout(eval no-op) -> Linear(64,5)
    # TODO(synk): nn.Dropout is a no-op in eval mode; training-mode dropout not implemented.
    z = jnp.maximum(
        jnp.dot(h, w1_ref[...], preferred_element_type=jnp.float32) + b1_ref[...],
        0.0)
    out_ref[...] = (
        jnp.dot(z, w2_ref[...], preferred_element_type=jnp.float32) + b2_ref[...])


# ----------------------------------------------------------------------------
# Wrappers
# ----------------------------------------------------------------------------
def _fused_forward(gx, p, *, b_tile):
    """gx: (T, B_pad, 4H) f32 precomputed input projection. Returns (B_pad, 5)."""
    T, B_pad, G4 = gx.shape
    H = p["w_hh_bf16"].shape[0]
    fc_hid = p["b1"].shape[1]
    out_dim = p["b2"].shape[1]
    return pl.pallas_call(
        _lstm_fused_kernel,
        out_shape=jax.ShapeDtypeStruct((B_pad, out_dim), jnp.float32),
        grid_spec=pltpu.PrefetchScalarGridSpec(
            num_scalar_prefetch=0,
            grid=(B_pad // b_tile,),
            in_specs=[
                pl.BlockSpec((T, b_tile, G4), lambda b: (0, b, 0)),   # gx tile
                pl.BlockSpec((H, G4), lambda b: (0, 0)),              # W_hh (bf16)
                pl.BlockSpec((H, fc_hid), lambda b: (0, 0)),          # W1
                pl.BlockSpec((1, fc_hid), lambda b: (0, 0)),          # b1
                pl.BlockSpec((fc_hid, out_dim), lambda b: (0, 0)),    # W2
                pl.BlockSpec((1, out_dim), lambda b: (0, 0)),         # b2
            ],
            out_specs=pl.BlockSpec((b_tile, out_dim), lambda b: (b, 0)),
        ),
        compiler_params=pltpu.CompilerParams(
            dimension_semantics=("parallel",),          # v7x: both TensorCores
            vmem_limit_bytes=32 * 1024 * 1024,
        ),
    )(gx, p["w_hh_bf16"], p["w1_t"], p["b1"], p["w2_t"], p["b2"])


@functools.partial(jax.jit, static_argnames=("hours_lookback", "input_dim"))
def lstm_module_forward(x, params, *, hours_lookback, input_dim):
    """Full LSTM_Module.forward. x: (B, T*D) (or anything reshaping to it)."""
    B = x.shape[0]
    T = hours_lookback * 12
    D = input_dim
    x = x.reshape(B, T, D).astype(jnp.float32)

    # Batch tile: sublane-aligned, capped at 128 so the per-tile gx block
    # (T * B_tile * 4H * 4 bytes, double-buffered) stays well inside VMEM on
    # every TPU generation (incl. v7x's 64 MiB).
    b_tile = min(128, ((B + 7) // 8) * 8)
    B_pad = ((B + b_tile - 1) // b_tile) * b_tile
    x = jnp.pad(x, ((0, B_pad - B), (0, 0), (0, 0)))

    # Hoisted input projection (ragged K=35, fully parallel, off the serial
    # path) handled by XLA; the kernel only sees gx = x @ W_ih^T + b,
    # time-major so each step is one aligned (B_tile, 4H) slice.
    gx = (jnp.einsum("btd,dg->tbg", x, params["w_ih_t"],
                     preferred_element_type=jnp.float32)
          + params["b_lstm"])                                # (T, B_pad, 4H)

    out = _fused_forward(gx, params, b_tile=b_tile)
    return out[:B]


def prepare_params(w_ih, w_hh, b_ih, b_hh, w1, b1, w2, b2):
    """Convert PyTorch-layout params to the kernel layout.

    PyTorch: weight_ih (4H, D), weight_hh (4H, H), biases (4H,), gate order
    [i|f|g|o]; Linear weights (out, in).  Kernel wants transposed weights and
    gate order [i|f|o|g] (contiguous sigmoid block).  W_hh is stored bf16 so
    the serial recurrent matmul uses native-width MXU passes.
    """
    H = w_hh.shape[1]
    perm = jnp.concatenate([
        jnp.arange(0, 2 * H),          # i, f
        jnp.arange(3 * H, 4 * H),      # o
        jnp.arange(2 * H, 3 * H),      # g
    ])
    return {
        "w_ih_t": jnp.asarray(w_ih, jnp.float32).T[:, perm],              # (D, 4H) f32
        "w_hh_bf16": jnp.asarray(w_hh, jnp.float32).T[:, perm].astype(jnp.bfloat16),  # (H, 4H)
        "b_lstm": (jnp.asarray(b_ih, jnp.float32)
                   + jnp.asarray(b_hh, jnp.float32))[perm],               # (4H,)
        "w1_t": jnp.asarray(w1, jnp.float32).T,                           # (H, 64)
        "b1": jnp.asarray(b1, jnp.float32).reshape(1, -1),
        "w2_t": jnp.asarray(w2, jnp.float32).T,                           # (64, 5)
        "b2": jnp.asarray(b2, jnp.float32).reshape(1, -1),
    }


# ----------------------------------------------------------------------------
# Pure-JAX reference (PyTorch-layout params, PyTorch gate order, all f32)
# ----------------------------------------------------------------------------
def reference_forward(x, w_ih, w_hh, b_ih, b_hh, w1, b1, w2, b2,
                      *, hours_lookback, input_dim):
    B = x.shape[0]
    T = hours_lookback * 12
    D = input_dim
    H = w_hh.shape[1]
    xs = x.reshape(B, T, D).astype(jnp.float32)

    def step(carry, x_t):
        h, c = carry
        gates = x_t @ w_ih.T + h @ w_hh.T + b_ih + b_hh
        i = jax.nn.sigmoid(gates[:, 0 * H:1 * H])
        f = jax.nn.sigmoid(gates[:, 1 * H:2 * H])
        g = jnp.tanh(gates[:, 2 * H:3 * H])
        o = jax.nn.sigmoid(gates[:, 3 * H:4 * H])
        c = f * c + i * g
        h = o * jnp.tanh(c)
        return (h, c), None

    h0 = jnp.zeros((B, H), jnp.float32)
    (hn, _), _ = jax.lax.scan(step, (h0, h0), jnp.transpose(xs, (1, 0, 2)))
    z = jnp.maximum(hn @ w1.T + b1, 0.0)
    return z @ w2.T + b2


# ----------------------------------------------------------------------------
# Main
# ----------------------------------------------------------------------------
if __name__ == "__main__":
    # Module hyper-parameters (LSTM_Module defaults, shorter lookback to keep
    # the example small: T = 2 * 12 = 24).
    HOURS_LOOKBACK = 2
    INPUT_DIM = 35
    HIDDEN_DIM = 128
    FC_HID = 64
    OUT_DIM = 5
    BATCH = 2

    key = jax.random.PRNGKey(0)
    keys = jax.random.split(key, 10)

    scale_lstm = 1.0 / jnp.sqrt(jnp.float32(HIDDEN_DIM))
    # PyTorch LSTM params: weight_ih (4H, D), weight_hh (4H, H), biases (4H,)
    w_ih = jax.random.uniform(keys[0], (4 * HIDDEN_DIM, INPUT_DIM),
                              minval=-scale_lstm, maxval=scale_lstm)
    w_hh = jax.random.uniform(keys[1], (4 * HIDDEN_DIM, HIDDEN_DIM),
                              minval=-scale_lstm, maxval=scale_lstm)
    b_ih = jax.random.uniform(keys[2], (4 * HIDDEN_DIM,),
                              minval=-scale_lstm, maxval=scale_lstm)
    b_hh = jax.random.uniform(keys[3], (4 * HIDDEN_DIM,),
                              minval=-scale_lstm, maxval=scale_lstm)

    s1 = 1.0 / jnp.sqrt(jnp.float32(HIDDEN_DIM))
    w1 = jax.random.uniform(keys[4], (FC_HID, HIDDEN_DIM), minval=-s1, maxval=s1)
    b1 = jax.random.uniform(keys[5], (FC_HID,), minval=-s1, maxval=s1)
    s2 = 1.0 / jnp.sqrt(jnp.float32(FC_HID))
    w2 = jax.random.uniform(keys[6], (OUT_DIM, FC_HID), minval=-s2, maxval=s2)
    b2 = jax.random.uniform(keys[7], (OUT_DIM,), minval=-s2, maxval=s2)

    params = prepare_params(w_ih, w_hh, b_ih, b_hh, w1, b1, w2, b2)

    T = HOURS_LOOKBACK * 12
    x = jax.random.normal(keys[8], (BATCH, T * INPUT_DIM), dtype=jnp.float32)

    out = lstm_module_forward(
        x, params, hours_lookback=HOURS_LOOKBACK, input_dim=INPUT_DIM
    )
    out = jax.block_until_ready(out)

    ref = reference_forward(
        x, w_ih, w_hh, b_ih, b_hh, w1, b1, w2, b2,
        hours_lookback=HOURS_LOOKBACK, input_dim=INPUT_DIM,
    )
    assert out.shape == (BATCH, OUT_DIM), out.shape
    # Tolerance covers the bf16 recurrent-matmul operands (f32 accumulation,
    # f32 state/elementwise) vs. the all-f32 reference over 24 steps.
    assert jnp.allclose(out, ref, atol=2e-2, rtol=2e-2), (out, ref)

    print("KERNEL_OK")
</pallas_src>

<mosaic_0001>
module attributes {stable_mosaic.version = 11 : i64} {
  func.func @_lstm_fused_kernel(%arg0: i32, %arg1: memref<24x8x512xf32, #tpu.memory_space<vmem>>, %arg2: memref<128x512xbf16, #tpu.memory_space<vmem>>, %arg3: memref<128x64xf32, #tpu.memory_space<vmem>>, %arg4: memref<1x64xf32, #tpu.memory_space<vmem>>, %arg5: memref<64x5xf32, #tpu.memory_space<vmem>>, %arg6: memref<1x5xf32, #tpu.memory_space<vmem>>, %arg7: memref<8x5xf32, #tpu.memory_space<vmem>>) attributes {dimension_semantics = [#tpu.dimension_semantics<parallel>], iteration_bounds = array<i64: 1>, scalar_prefetch = 0 : i64, scratch_operands = 0 : i64, tpu.core_type = #tpu.core_type<tc>, window_params = [{transform_indices = @transform_0, window_bounds = array<i64: 24, 8, 512>}, {pipeline_mode = #tpu.pipeline_mode<synchronous>, transform_indices = @transform_1, window_bounds = array<i64: 128, 512>}, {pipeline_mode = #tpu.pipeline_mode<synchronous>, transform_indices = @transform_2, window_bounds = array<i64: 128, 64>}, {pipeline_mode = #tpu.pipeline_mode<synchronous>, transform_indices = @transform_3, window_bounds = array<i64: 1, 64>}, {pipeline_mode = #tpu.pipeline_mode<synchronous>, transform_indices = @transform_4, window_bounds = array<i64: 64, 5>}, {pipeline_mode = #tpu.pipeline_mode<synchronous>, transform_indices = @transform_5, window_bounds = array<i64: 1, 5>}, {transform_indices = @transform_6, window_bounds = array<i64: 8, 5>}]} {
    %cst = arith.constant 0.000000e+00 : f32
    %0 = vector.broadcast %cst : f32 to vector<8x128xf32>
    %cst_0 = arith.constant 0.000000e+00 : f32
    %1 = vector.broadcast %cst_0 : f32 to vector<8x128xf32>
    %c0 = arith.constant 0 : index
    %c0_1 = arith.constant 0 : index
    %c0_2 = arith.constant 0 : index
    %2 = vector.load %arg1[%c0, %c0_1, %c0_2] : memref<24x8x512xf32, #tpu.memory_space<vmem>>, vector<1x8x512xf32>
    %3 = vector.shape_cast %2 : vector<1x8x512xf32> to vector<8x512xf32>
    %4 = arith.truncf %0 : vector<8x128xf32> to vector<8x128xbf16>
    %c0_3 = arith.constant 0 : index
    %c0_4 = arith.constant 0 : index
    %5 = vector.load %arg2[%c0_3, %c0_4] : memref<128x512xbf16, #tpu.memory_space<vmem>>, vector<128x512xbf16>
    %cst_5 = arith.constant dense<0.000000e+00> : vector<8x512xf32>
    %6 = tpu.matmul %4, %5, %cst_5 {dimension_numbers = #tpu.dot_dimension_numbers<[1], [0], [0], [1], [0, 0, 1, 1], [], []>} : vector<8x128xbf16>, vector<128x512xbf16>, vector<8x512xf32> -> vector<8x512xf32>
    %7 = arith.addf %3, %6 : vector<8x512xf32>
    %8 = vector.extract_strided_slice %7 {offsets = [0, 0], sizes = [8, 384], strides = [1, 1]} : vector<8x512xf32> to vector<8x384xf32>
    %cst_6 = arith.constant 5.000000e-01 : f32
    %9 = vector.broadcast %cst_6 : f32 to vector<8x384xf32>
    %10 = arith.mulf %9, %8 : vector<8x384xf32>
    %11 = math.tanh %10 : vector<8x384xf32>
    %cst_7 = arith.constant 5.000000e-01 : f32
    %12 = vector.broadcast %cst_7 : f32 to vector<8x384xf32>
    %13 = arith.mulf %12, %11 : vector<8x384xf32>
    %cst_8 = arith.constant 5.000000e-01 : f32
    %14 = vector.broadcast %cst_8 : f32 to vector<8x384xf32>
    %15 = arith.addf %13, %14 : vector<8x384xf32>
    %16 = vector.extract_strided_slice %7 {offsets = [0, 384], sizes = [8, 128], strides = [1, 1]} : vector<8x512xf32> to vector<8x128xf32>
    %17 = math.tanh %16 : vector<8x128xf32>
    %18 = vector.extract_strided_slice %15 {offsets = [0, 0], sizes = [8, 128], strides = [1, 1]} : vector<8x384xf32> to vector<8x128xf32>
    %19 = vector.extract_strided_slice %15 {offsets = [0, 128], sizes = [8, 128], strides = [1, 1]} : vector<8x384xf32> to vector<8x128xf32>
    %20 = vector.extract_strided_slice %15 {offsets = [0, 256], sizes = [8, 128], strides = [1, 1]} : vector<8x384xf32> to vector<8x128xf32>
    %21 = arith.mulf %19, %1 : vector<8x128xf32>
    %22 = arith.mulf %18, %17 : vector<8x128xf32>
    %23 = arith.addf %21, %22 : vector<8x128xf32>
    %24 = math.tanh %23 : vector<8x128xf32>
    %25 = arith.mulf %20, %24 : vector<8x128xf32>
    %c1 = arith.constant 1 : index
    %c0_9 = arith.constant 0 : index
    %c0_10 = arith.constant 0 : index
    %26 = vector.load %arg1[%c1, %c0_9, %c0_10] : memref<24x8x512xf32, #tpu.memory_space<vmem>>, vector<1x8x512xf32>
    %27 = vector.shape_cast %26 : vector<1x8x512xf32> to vector<8x512xf32>
    %28 = arith.truncf %25 : vector<8x128xf32> to vector<8x128xbf16>
    %c0_11 = arith.constant 0 : index
    %c0_12 = arith.constant 0 : index
    %29 = vector.load %arg2[%c0_11, %c0_12] : memref<128x512xbf16, #tpu.memory_space<vmem>>, vector<128x512xbf16>
    %cst_13 = arith.constant dense<0.000000e+00> : vector<8x512xf32>
    %30 = tpu.matmul %28, %29, %cst_13 {dimension_numbers = #tpu.dot_dimension_numbers<[1], [0], [0], [1], [0, 0, 1, 1], [], []>} : vector<8x128xbf16>, vector<128x512xbf16>, vector<8x512xf32> -> vector<8x512xf32>
    %31 = arith.addf %27, %30 : vector<8x512xf32>
    %32 = vector.extract_strided_slice %31 {offsets = [0, 0], sizes = [8, 384], strides = [1, 1]} : vector<8x512xf32> to vector<8x384xf32>
    %cst_14 = arith.constant 5.000000e-01 : f32
    %33 = vector.broadcast %cst_14 : f32 to vector<8x384xf32>
    %34 = arith.mulf %33, %32 : vector<8x384xf32>
    %35 = math.tanh %34 : vector<8x384xf32>
    %cst_15 = arith.constant 5.000000e-01 : f32
    %36 = vector.broadcast %cst_15 : f32 to vector<8x384xf32>
    %37 = arith.mulf %36, %35 : vector<8x384xf32>
    %cst_16 = arith.constant 5.000000e-01 : f32
    %38 = vector.broadcast %cst_16 : f32 to vector<8x384xf32>
    %39 = arith.addf %37, %38 : vector<8x384xf32>
    %40 = vector.extract_strided_slice %31 {offsets = [0, 384], sizes = [8, 128], strides = [1, 1]} : vector<8x512xf32> to vector<8x128xf32>
    %41 = math.tanh %40 : vector<8x128xf32>
    %42 = vector.extract_strided_slice %39 {offsets = [0, 0], sizes = [8, 128], strides = [1, 1]} : vector<8x384xf32> to vector<8x128xf32>
    %43 = vector.extract_strided_slice %39 {offsets = [0, 128], sizes = [8, 128], strides = [1, 1]} : vector<8x384xf32> to vector<8x128xf32>
    %44 = vector.extract_strided_slice %39 {offsets = [0, 256], sizes = [8, 128], strides = [1, 1]} : vector<8x384xf32> to vector<8x128xf32>
    %45 = arith.mulf %43, %23 : vector<8x128xf32>
    %46 = arith.mulf %42, %41 : vector<8x128xf32>
    %47 = arith.addf %45, %46 : vector<8x128xf32>
    %48 = math.tanh %47 : vector<8x128xf32>
    %49 = arith.mulf %44, %48 : vector<8x128xf32>
    %c2 = arith.constant 2 : index
    %c0_17 = arith.constant 0 : index
    %c0_18 = arith.constant 0 : index
    %50 = vector.load %arg1[%c2, %c0_17, %c0_18] : memref<24x8x512xf32, #tpu.memory_space<vmem>>, vector<1x8x512xf32>
    %51 = vector.shape_cast %50 : vector<1x8x512xf32> to vector<8x512xf32>
    %52 = arith.truncf %49 : vector<8x128xf32> to vector<8x128xbf16>
    %c0_19 = arith.constant 0 : index
    %c0_20 = arith.constant 0 : index
    %53 = vector.load %arg2[%c0_19, %c0_20] : memref<128x512xbf16, #tpu.memory_space<vmem>>, vector<128x512xbf16>
    %cst_21 = arith.constant dense<0.000000e+00> : vector<8x512xf32>
    %54 = tpu.matmul %52, %53, %cst_21 {dimension_numbers = #tpu.dot_dimension_numbers<[1], [0], [0], [1], [0, 0, 1, 1], [], []>} : vector<8x128xbf16>, vector<128x512xbf16>, vector<8x512xf32> -> vector<8x512xf32>
    %55 = arith.addf %51, %54 : vector<8x512xf32>
    %56 = vector.extract_strided_slice %55 {offsets = [0, 0], sizes = [8, 384], strides = [1, 1]} : vector<8x512xf32> to vector<8x384xf32>
    %cst_22 = arith.constant 5.000000e-01 : f32
    %57 = vector.broadcast %cst_22 : f32 to vector<8x384xf32>
    %58 = arith.mulf %57, %56 : vector<8x384xf32>
    %59 = math.tanh %58 : vector<8x384xf32>
    %cst_23 = arith.constant 5.000000e-01 : f32
    %60 = vector.broadcast %cst_23 : f32 to vector<8x384xf32>
    %61 = arith.mulf %60, %59 : vector<8x384xf32>
    %cst_24 = arith.constant 5.000000e-01 : f32
    %62 = vector.broadcast %cst_24 : f32 to vector<8x384xf32>
    %63 = arith.addf %61, %62 : vector<8x384xf32>
    %64 = vector.extract_strided_slice %55 {offsets = [0, 384], sizes = [8, 128], strides = [1, 1]} : vector<8x512xf32> to vector<8x128xf32>
    %65 = math.tanh %64 : vector<8x128xf32>
    %66 = vector.extract_strided_slice %63 {offsets = [0, 0], sizes = [8, 128], strides = [1, 1]} : vector<8x384xf32> to vector<8x128xf32>
    %67 = vector.extract_strided_slice %63 {offsets = [0, 128], sizes = [8, 128], strides = [1, 1]} : vector<8x384xf32> to vector<8x128xf32>
    %68 = vector.extract_strided_slice %63 {offsets = [0, 256], sizes = [8, 128], strides = [1, 1]} : vector<8x384xf32> to vector<8x128xf32>
    %69 = arith.mulf %67, %47 : vector<8x128xf32>
    %70 = arith.mulf %66, %65 : vector<8x128xf32>
    %71 = arith.addf %69, %70 : vector<8x128xf32>
    %72 = math.tanh %71 : vector<8x128xf32>
    %73 = arith.mulf %68, %72 : vector<8x128xf32>
    %c3 = arith.constant 3 : index
    %c0_25 = arith.constant 0 : index
    %c0_26 = arith.constant 0 : index
    %74 = vector.load %arg1[%c3, %c0_25, %c0_26] : memref<24x8x512xf32, #tpu.memory_space<vmem>>, vector<1x8x512xf32>
    %75 = vector.shape_cast %74 : vector<1x8x512xf32> to vector<8x512xf32>
    %76 = arith.truncf %73 : vector<8x128xf32> to vector<8x128xbf16>
    %c0_27 = arith.constant 0 : index
    %c0_28 = arith.constant 0 : index
    %77 = vector.load %arg2[%c0_27, %c0_28] : memref<128x512xbf16, #tpu.memory_space<vmem>>, vector<128x512xbf16>
    %cst_29 = arith.constant dense<0.000000e+00> : vector<8x512xf32>
    %78 = tpu.matmul %76, %77, %cst_29 {dimension_numbers = #tpu.dot_dimension_numbers<[1], [0], [0], [1], [0, 0, 1, 1], [], []>} : vector<8x128xbf16>, vector<128x512xbf16>, vector<8x512xf32> -> vector<8x512xf32>
    %79 = arith.addf %75, %78 : vector<8x512xf32>
    %80 = vector.extract_strided_slice %79 {offsets = [0, 0], sizes = [8, 384], strides = [1, 1]} : vector<8x512xf32> to vector<8x384xf32>
    %cst_30 = arith.constant 5.000000e-01 : f32
    %81 = vector.broadcast %cst_30 : f32 to vector<8x384xf32>
    %82 = arith.mulf %81, %80 : vector<8x384xf32>
    %83 = math.tanh %82 : vector<8x384xf32>
    %cst_31 = arith.constant 5.000000e-01 : f32
    %84 = vector.broadcast %cst_31 : f32 to vector<8x384xf32>
    %85 = arith.mulf %84, %83 : vector<8x384xf32>
    %cst_32 = arith.constant 5.000000e-01 : f32
    %86 = vector.broadcast %cst_32 : f32 to vector<8x384xf32>
    %87 = arith.addf %85, %86 : vector<8x384xf32>
    %88 = vector.extract_strided_slice %79 {offsets = [0, 384], sizes = [8, 128], strides = [1, 1]} : vector<8x512xf32> to vector<8x128xf32>
    %89 = math.tanh %88 : vector<8x128xf32>
    %90 = vector.extract_strided_slice %87 {offsets = [0, 0], sizes = [8, 128], strides = [1, 1]} : vector<8x384xf32> to vector<8x128xf32>
    %91 = vector.extract_strided_slice %87 {offsets = [0, 128], sizes = [8, 128], strides = [1, 1]} : vector<8x384xf32> to vector<8x128xf32>
    %92 = vector.extract_strided_slice %87 {offsets = [0, 256], sizes = [8, 128], strides = [1, 1]} : vector<8x384xf32> to vector<8x128xf32>
    %93 = arith.mulf %91, %71 : vector<8x128xf32>
    %94 = arith.mulf %90, %89 : vector<8x128xf32>
    %95 = arith.addf %93, %94 : vector<8x128xf32>
    %96 = math.tanh %95 : vector<8x128xf32>
    %97 = arith.mulf %92, %96 : vector<8x128xf32>
    %c4 = arith.constant 4 : index
    %c0_33 = arith.constant 0 : index
    %c0_34 = arith.constant 0 : index
    %98 = vector.load %arg1[%c4, %c0_33, %c0_34] : memref<24x8x512xf32, #tpu.memory_space<vmem>>, vector<1x8x512xf32>
    %99 = vector.shape_cast %98 : vector<1x8x512xf32> to vector<8x512xf32>
    %100 = arith.truncf %97 : vector<8x128xf32> to vector<8x128xbf16>
    %c0_35 = arith.constant 0 : index
    %c0_36 = arith.constant 0 : index
    %101 = vector.load %arg2[%c0_35, %c0_36] : memref<128x512xbf16, #tpu.memory_space<vmem>>, vector<128x512xbf16>
    %cst_37 = arith.constant dense<0.000000e+00> : vector<8x512xf32>
    %102 = tpu.matmul %100, %101, %cst_37 {dimension_numbers = #tpu.dot_dimension_numbers<[1], [0], [0], [1], [0, 0, 1, 1], [], []>} : vector<8x128xbf16>, vector<128x512xbf16>, vector<8x512xf32> -> vector<8x512xf32>
    %103 = arith.addf %99, %102 : vector<8x512xf32>
    %104 = vector.extract_strided_slice %103 {offsets = [0, 0], sizes = [8, 384], strides = [1, 1]} : vector<8x512xf32> to vector<8x384xf32>
    %cst_38 = arith.constant 5.000000e-01 : f32
    %105 = vector.broadcast %cst_38 : f32 to vector<8x384xf32>
    %106 = arith.mulf %105, %104 : vector<8x384xf32>
    %107 = math.tanh %106 : vector<8x384xf32>
    %cst_39 = arith.constant 5.000000e-01 : f32
    %108 = vector.broadcast %cst_39 : f32 to vector<8x384xf32>
    %109 = arith.mulf %108, %107 : vector<8x384xf32>
    %cst_40 = arith.constant 5.000000e-01 : f32
    %110 = vector.broadcast %cst_40 : f32 to vector<8x384xf32>
    %111 = arith.addf %109, %110 : vector<8x384xf32>
    %112 = vector.extract_strided_slice %103 {offsets = [0, 384], sizes = [8, 128], strides = [1, 1]} : vector<8x512xf32> to vector<8x128xf32>
    %113 = math.tanh %112 : vector<8x128xf32>
    %114 = vector.extract_strided_slice %111 {offsets = [0, 0], sizes = [8, 128], strides = [1, 1]} : vector<8x384xf32> to vector<8x128xf32>
    %115 = vector.extract_strided_slice %111 {offsets = [0, 128], sizes = [8, 128], strides = [1, 1]} : vector<8x384xf32> to vector<8x128xf32>
    %116 = vector.extract_strided_slice %111 {offsets = [0, 256], sizes = [8, 128], strides = [1, 1]} : vector<8x384xf32> to vector<8x128xf32>
    %117 = arith.mulf %115, %95 : vector<8x128xf32>
    %118 = arith.mulf %114, %113 : vector<8x128xf32>
    %119 = arith.addf %117, %118 : vector<8x128xf32>
    %120 = math.tanh %119 : vector<8x128xf32>
    %121 = arith.mulf %116, %120 : vector<8x128xf32>
    %c5 = arith.constant 5 : index
    %c0_41 = arith.constant 0 : index
    %c0_42 = arith.constant 0 : index
    %122 = vector.load %arg1[%c5, %c0_41, %c0_42] : memref<24x8x512xf32, #tpu.memory_space<vmem>>, vector<1x8x512xf32>
    %123 = vector.shape_cast %122 : vector<1x8x512xf32> to vector<8x512xf32>
    %124 = arith.truncf %121 : vector<8x128xf32> to vector<8x128xbf16>
    %c0_43 = arith.constant 0 : index
    %c0_44 = arith.constant 0 : index
    %125 = vector.load %arg2[%c0_43, %c0_44] : memref<128x512xbf16, #tpu.memory_space<vmem>>, vector<128x512xbf16>
    %cst_45 = arith.constant dense<0.000000e+00> : vector<8x512xf32>
    %126 = tpu.matmul %124, %125, %cst_45 {dimension_numbers = #tpu.dot_dimension_numbers<[1], [0], [0], [1], [0, 0, 1, 1], [], []>} : vector<8x128xbf16>, vector<128x512xbf16>, vector<8x512xf32> -> vector<8x512xf32>
    %127 = arith.addf %123, %126 : vector<8x512xf32>
    %128 = vector.extract_strided_slice %127 {offsets = [0, 0], sizes = [8, 384], strides = [1, 1]} : vector<8x512xf32> to vector<8x384xf32>
    %cst_46 = arith.constant 5.000000e-01 : f32
    %129 = vector.broadcast %cst_46 : f32 to vector<8x384xf32>
    %130 = arith.mulf %129, %128 : vector<8x384xf32>
    %131 = math.tanh %130 : vector<8x384xf32>
    %cst_47 = arith.constant 5.000000e-01 : f32
    %132 = vector.broadcast %cst_47 : f32 to vector<8x384xf32>
    %133 = arith.mulf %132, %131 : vector<8x384xf32>
    %cst_48 = arith.constant 5.000000e-01 : f32
    %134 = vector.broadcast %cst_48 : f32 to vector<8x384xf32>
    %135 = arith.addf %133, %134 : vector<8x384xf32>
    %136 = vector.extract_strided_slice %127 {offsets = [0, 384], sizes = [8, 128], strides = [1, 1]} : vector<8x512xf32> to vector<8x128xf32>
    %137 = math.tanh %136 : vector<8x128xf32>
    %138 = vector.extract_strided_slice %135 {offsets = [0, 0], sizes = [8, 128], strides = [1, 1]} : vector<8x384xf32> to vector<8x128xf32>
    %139 = vector.extract_strided_slice %135 {offsets = [0, 128], sizes = [8, 128], strides = [1, 1]} : vector<8x384xf32> to vector<8x128xf32>
    %140 = vector.extract_strided_slice %135 {offsets = [0, 256], sizes = [8, 128], strides = [1, 1]} : vector<8x384xf32> to vector<8x128xf32>
    %141 = arith.mulf %139, %119 : vector<8x128xf32>
    %142 = arith.mulf %138, %137 : vector<8x128xf32>
    %143 = arith.addf %141, %142 : vector<8x128xf32>
    %144 = math.tanh %143 : vector<8x128xf32>
    %145 = arith.mulf %140, %144 : vector<8x128xf32>
    %c6 = arith.constant 6 : index
    %c0_49 = arith.constant 0 : index
    %c0_50 = arith.constant 0 : index
    %146 = vector.load %arg1[%c6, %c0_49, %c0_50] : memref<24x8x512xf32, #tpu.memory_space<vmem>>, vector<1x8x512xf32>
    %147 = vector.shape_cast %146 : vector<1x8x512xf32> to vector<8x512xf32>
    %148 = arith.truncf %145 : vector<8x128xf32> to vector<8x128xbf16>
    %c0_51 = arith.constant 0 : index
    %c0_52 = arith.constant 0 : index
    %149 = vector.load %arg2[%c0_51, %c0_52] : memref<128x512xbf16, #tpu.memory_space<vmem>>, vector<128x512xbf16>
    %cst_53 = arith.constant dense<0.000000e+00> : vector<8x512xf32>
    %150 = tpu.matmul %148, %149, %cst_53 {dimension_numbers = #tpu.dot_dimension_numbers<[1], [0], [0], [1], [0, 0, 1, 1], [], []>} : vector<8x128xbf16>, vector<128x512xbf16>, vector<8x512xf32> -> vector<8x512xf32>
    %151 = arith.addf %147, %150 : vector<8x512xf32>
    %152 = vector.extract_strided_slice %151 {offsets = [0, 0], sizes = [8, 384], strides = [1, 1]} : vector<8x512xf32> to vector<8x384xf32>
    %cst_54 = arith.constant 5.000000e-01 : f32
    %153 = vector.broadcast %cst_54 : f32 to vector<8x384xf32>
    %154 = arith.mulf %153, %152 : vector<8x384xf32>
    %155 = math.tanh %154 : vector<8x384xf32>
    %cst_55 = arith.constant 5.000000e-01 : f32
    %156 = vector.broadcast %cst_55 : f32 to vector<8x384xf32>
    %157 = arith.mulf %156, %155 : vector<8x384xf32>
    %cst_56 = arith.constant 5.000000e-01 : f32
    %158 = vector.broadcast %cst_56 : f32 to vector<8x384xf32>
    %159 = arith.addf %157, %158 : vector<8x384xf32>
    %160 = vector.extract_strided_slice %151 {offsets = [0, 384], sizes = [8, 128], strides = [1, 1]} : vector<8x512xf32> to vector<8x128xf32>
    %161 = math.tanh %160 : vector<8x128xf32>
    %162 = vector.extract_strided_slice %159 {offsets = [0, 0], sizes = [8, 128], strides = [1, 1]} : vector<8x384xf32> to vector<8x128xf32>
    %163 = vector.extract_strided_slice %159 {offsets = [0, 128], sizes = [8, 128], strides = [1, 1]} : vector<8x384xf32> to vector<8x128xf32>
    %164 = vector.extract_strided_slice %159 {offsets = [0, 256], sizes = [8, 128], strides = [1, 1]} : vector<8x384xf32> to vector<8x128xf32>
    %165 = arith.mulf %163, %143 : vector<8x128xf32>
    %166 = arith.mulf %162, %161 : vector<8x128xf32>
    %167 = arith.addf %165, %166 : vector<8x128xf32>
    %168 = math.tanh %167 : vector<8x128xf32>
    %169 = arith.mulf %164, %168 : vector<8x128xf32>
    %c7 = arith.constant 7 : index
    %c0_57 = arith.constant 0 : index
    %c0_58 = arith.constant 0 : index
    %170 = vector.load %arg1[%c7, %c0_57, %c0_58] : memref<24x8x512xf32, #tpu.memory_space<vmem>>, vector<1x8x512xf32>
    %171 = vector.shape_cast %170 : vector<1x8x512xf32> to vector<8x512xf32>
    %172 = arith.truncf %169 : vector<8x128xf32> to vector<8x128xbf16>
    %c0_59 = arith.constant 0 : index
    %c0_60 = arith.constant 0 : index
    %173 = vector.load %arg2[%c0_59, %c0_60] : memref<128x512xbf16, #tpu.memory_space<vmem>>, vector<128x512xbf16>
    %cst_61 = arith.constant dense<0.000000e+00> : vector<8x512xf32>
    %174 = tpu.matmul %172, %173, %cst_61 {dimension_numbers = #tpu.dot_dimension_numbers<[1], [0], [0], [1], [0, 0, 1, 1], [], []>} : vector<8x128xbf16>, vector<128x512xbf16>, vector<8x512xf32> -> vector<8x512xf32>
    %175 = arith.addf %171, %174 : vector<8x512xf32>
    %176 = vector.extract_strided_slice %175 {offsets = [0, 0], sizes = [8, 384], strides = [1, 1]} : vector<8x512xf32> to vector<8x384xf32>
    %cst_62 = arith.constant 5.000000e-01 : f32
    %177 = vector.broadcast %cst_62 : f32 to vector<8x384xf32>
    %178 = arith.mulf %177, %176 : vector<8x384xf32>
    %179 = math.tanh %178 : vector<8x384xf32>
    %cst_63 = arith.constant 5.000000e-01 : f32
    %180 = vector.broadcast %cst_63 : f32 to vector<8x384xf32>
    %181 = arith.mulf %180, %179 : vector<8x384xf32>
    %cst_64 = arith.constant 5.000000e-01 : f32
    %182 = vector.broadcast %cst_64 : f32 to vector<8x384xf32>
    %183 = arith.addf %181, %182 : vector<8x384xf32>
    %184 = vector.extract_strided_slice %175 {offsets = [0, 384], sizes = [8, 128], strides = [1, 1]} : vector<8x512xf32> to vector<8x128xf32>
    %185 = math.tanh %184 : vector<8x128xf32>
    %186 = vector.extract_strided_slice %183 {offsets = [0, 0], sizes = [8, 128], strides = [1, 1]} : vector<8x384xf32> to vector<8x128xf32>
    %187 = vector.extract_strided_slice %183 {offsets = [0, 128], sizes = [8, 128], strides = [1, 1]} : vector<8x384xf32> to vector<8x128xf32>
    %188 = vector.extract_strided_slice %183 {offsets = [0, 256], sizes = [8, 128], strides = [1, 1]} : vector<8x384xf32> to vector<8x128xf32>
    %189 = arith.mulf %187, %167 : vector<8x128xf32>
    %190 = arith.mulf %186, %185 : vector<8x128xf32>
    %191 = arith.addf %189, %190 : vector<8x128xf32>
    %192 = math.tanh %191 : vector<8x128xf32>
    %193 = arith.mulf %188, %192 : vector<8x128xf32>
    %c8 = arith.constant 8 : index
    %c0_65 = arith.constant 0 : index
    %c0_66 = arith.constant 0 : index
    %194 = vector.load %arg1[%c8, %c0_65, %c0_66] : memref<24x8x512xf32, #tpu.memory_space<vmem>>, vector<1x8x512xf32>
    %195 = vector.shape_cast %194 : vector<1x8x512xf32> to vector<8x512xf32>
    %196 = arith.truncf %193 : vector<8x128xf32> to vector<8x128xbf16>
    %c0_67 = arith.constant 0 : index
    %c0_68 = arith.constant 0 : index
    %197 = vector.load %arg2[%c0_67, %c0_68] : memref<128x512xbf16, #tpu.memory_space<vmem>>, vector<128x512xbf16>
    %cst_69 = arith.constant dense<0.000000e+00> : vector<8x512xf32>
    %198 = tpu.matmul %196, %197, %cst_69 {dimension_numbers = #tpu.dot_dimension_numbers<[1], [0], [0], [1], [0, 0, 1, 1], [], []>} : vector<8x128xbf16>, vector<128x512xbf16>, vector<8x512xf32> -> vector<8x512xf32>
    %199 = arith.addf %195, %198 : vector<8x512xf32>
    %200 = vector.extract_strided_slice %199 {offsets = [0, 0], sizes = [8, 384], strides = [1, 1]} : vector<8x512xf32> to vector<8x384xf32>
    %cst_70 = arith.constant 5.000000e-01 : f32
    %201 = vector.broadcast %cst_70 : f32 to vector<8x384xf32>
    %202 = arith.mulf %201, %200 : vector<8x384xf32>
    %203 = math.tanh %202 : vector<8x384xf32>
    %cst_71 = arith.constant 5.000000e-01 : f32
    %204 = vector.broadcast %cst_71 : f32 to vector<8x384xf32>
    %205 = arith.mulf %204, %203 : vector<8x384xf32>
    %cst_72 = arith.constant 5.000000e-01 : f32
    %206 = vector.broadcast %cst_72 : f32 to vector<8x384xf32>
    %207 = arith.addf %205, %206 : vector<8x384xf32>
    %208 = vector.extract_strided_slice %199 {offsets = [0, 384], sizes = [8, 128], strides = [1, 1]} : vector<8x512xf32> to vector<8x128xf32>
    %209 = math.tanh %208 : vector<8x128xf32>
    %210 = vector.extract_strided_slice %207 {offsets = [0, 0], sizes = [8, 128], strides = [1, 1]} : vector<8x384xf32> to vector<8x128xf32>
    %211 = vector.extract_strided_slice %207 {offsets = [0, 128], sizes = [8, 128], strides = [1, 1]} : vector<8x384xf32> to vector<8x128xf32>
    %212 = vector.extract_strided_slice %207 {offsets = [0, 256], sizes = [8, 128], strides = [1, 1]} : vector<8x384xf32> to vector<8x128xf32>
    %213 = arith.mulf %211, %191 : vector<8x128xf32>
    %214 = arith.mulf %210, %209 : vector<8x128xf32>
    %215 = arith.addf %213, %214 : vector<8x128xf32>
    %216 = math.tanh %215 : vector<8x128xf32>
    %217 = arith.mulf %212, %216 : vector<8x128xf32>
    %c9 = arith.constant 9 : index
    %c0_73 = arith.constant 0 : index
    %c0_74 = arith.constant 0 : index
    %218 = vector.load %arg1[%c9, %c0_73, %c0_74] : memref<24x8x512xf32, #tpu.memory_space<vmem>>, vector<1x8x512xf32>
    %219 = vector.shape_cast %218 : vector<1x8x512xf32> to vector<8x512xf32>
    %220 = arith.truncf %217 : vector<8x128xf32> to vector<8x128xbf16>
    %c0_75 = arith.constant 0 : index
    %c0_76 = arith.constant 0 : index
    %221 = vector.load %arg2[%c0_75, %c0_76] : memref<128x512xbf16, #tpu.memory_space<vmem>>, vector<128x512xbf16>
    %cst_77 = arith.constant dense<0.000000e+00> : vector<8x512xf32>
    %222 = tpu.matmul %220, %221, %cst_77 {dimension_numbers = #tpu.dot_dimension_numbers<[1], [0], [0], [1], [0, 0, 1, 1], [], []>} : vector<8x128xbf16>, vector<128x512xbf16>, vector<8x512xf32> -> vector<8x512xf32>
    %223 = arith.addf %219, %222 : vector<8x512xf32>
    %224 = vector.extract_strided_slice %223 {offsets = [0, 0], sizes = [8, 384], strides = [1, 1]} : vector<8x512xf32> to vector<8x384xf32>
    %cst_78 = arith.constant 5.000000e-01 : f32
    %225 = vector.broadcast %cst_78 : f32 to vector<8x384xf32>
    %226 = arith.mulf %225, %224 : vector<8x384xf32>
    %227 = math.tanh %226 : vector<8x384xf32>
    %cst_79 = arith.constant 5.000000e-01 : f32
    %228 = vector.broadcast %cst_79 : f32 to vector<8x384xf32>
    %229 = arith.mulf %228, %227 : vector<8x384xf32>
    %cst_80 = arith.constant 5.000000e-01 : f32
    %230 = vector.broadcast %cst_80 : f32 to vector<8x384xf32>
    %231 = arith.addf %229, %230 : vector<8x384xf32>
    %232 = vector.extract_strided_slice %223 {offsets = [0, 384], sizes = [8, 128], strides = [1, 1]} : vector<8x512xf32> to vector<8x128xf32>
    %233 = math.tanh %232 : vector<8x128xf32>
    %234 = vector.extract_strided_slice %231 {offsets = [0, 0], sizes = [8, 128], strides = [1, 1]} : vector<8x384xf32> to vector<8x128xf32>
    %235 = vector.extract_strided_slice %231 {offsets = [0, 128], sizes = [8, 128], strides = [1, 1]} : vector<8x384xf32> to vector<8x128xf32>
    %236 = vector.extract_strided_slice %231 {offsets = [0, 256], sizes = [8, 128], strides = [1, 1]} : vector<8x384xf32> to vector<8x128xf32>
    %237 = arith.mulf %235, %215 : vector<8x128xf32>
    %238 = arith.mulf %234, %233 : vector<8x128xf32>
    %239 = arith.addf %237, %238 : vector<8x128xf32>
    %240 = math.tanh %239 : vector<8x128xf32>
    %241 = arith.mulf %236, %240 : vector<8x128xf32>
    %c10 = arith.constant 10 : index
    %c0_81 = arith.constant 0 : index
    %c0_82 = arith.constant 0 : index
    %242 = vector.load %arg1[%c10, %c0_81, %c0_82] : memref<24x8x512xf32, #tpu.memory_space<vmem>>, vector<1x8x512xf32>
    %243 = vector.shape_cast %242 : vector<1x8x512xf32> to vector<8x512xf32>
    %244 = arith.truncf %241 : vector<8x128xf32> to vector<8x128xbf16>
    %c0_83 = arith.constant 0 : index
    %c0_84 = arith.constant 0 : index
    %245 = vector.load %arg2[%c0_83, %c0_84] : memref<128x512xbf16, #tpu.memory_space<vmem>>, vector<128x512xbf16>
    %cst_85 = arith.constant dense<0.000000e+00> : vector<8x512xf32>
    %246 = tpu.matmul %244, %245, %cst_85 {dimension_numbers = #tpu.dot_dimension_numbers<[1], [0], [0], [1], [0, 0, 1, 1], [], []>} : vector<8x128xbf16>, vector<128x512xbf16>, vector<8x512xf32> -> vector<8x512xf32>
    %247 = arith.addf %243, %246 : vector<8x512xf32>
    %248 = vector.extract_strided_slice %247 {offsets = [0, 0], sizes = [8, 384], strides = [1, 1]} : vector<8x512xf32> to vector<8x384xf32>
    %cst_86 = arith.constant 5.000000e-01 : f32
    %249 = vector.broadcast %cst_86 : f32 to vector<8x384xf32>
    %250 = arith.mulf %249, %248 : vector<8x384xf32>
    %251 = math.tanh %250 : vector<8x384xf32>
    %cst_87 = arith.constant 5.000000e-01 : f32
    %252 = vector.broadcast %cst_87 : f32 to vector<8x384xf32>
    %253 = arith.mulf %252, %251 : vector<8x384xf32>
    %cst_88 = arith.constant 5.000000e-01 : f32
    %254 = vector.broadcast %cst_88 : f32 to vector<8x384xf32>
    %255 = arith.addf %253, %254 : vector<8x384xf32>
    %256 = vector.extract_strided_slice %247 {offsets = [0, 384], sizes = [8, 128], strides = [1, 1]} : vector<8x512xf32> to vector<8x128xf32>
    %257 = math.tanh %256 : vector<8x128xf32>
    %258 = vector.extract_strided_slice %255 {offsets = [0, 0], sizes = [8, 128], strides = [1, 1]} : vector<8x384xf32> to vector<8x128xf32>
    %259 = vector.extract_strided_slice %255 {offsets = [0, 128], sizes = [8, 128], strides = [1, 1]} : vector<8x384xf32> to vector<8x128xf32>
    %260 = vector.extract_strided_slice %255 {offsets = [0, 256], sizes = [8, 128], strides = [1, 1]} : vector<8x384xf32> to vector<8x128xf32>
    %261 = arith.mulf %259, %239 : vector<8x128xf32>
    %262 = arith.mulf %258, %257 : vector<8x128xf32>
    %263 = arith.addf %261, %262 : vector<8x128xf32>
    %264 = math.tanh %263 : vector<8x128xf32>
    %265 = arith.mulf %260, %264 : vector<8x128xf32>
    %c11 = arith.constant 11 : index
    %c0_89 = arith.constant 0 : index
    %c0_90 = arith.constant 0 : index
    %266 = vector.load %arg1[%c11, %c0_89, %c0_90] : memref<24x8x512xf32, #tpu.memory_space<vmem>>, vector<1x8x512xf32>
    %267 = vector.shape_cast %266 : vector<1x8x512xf32> to vector<8x512xf32>
    %268 = arith.truncf %265 : vector<8x128xf32> to vector<8x128xbf16>
    %c0_91 = arith.constant 0 : index
    %c0_92 = arith.constant 0 : index
    %269 = vector.load %arg2[%c0_91, %c0_92] : memref<128x512xbf16, #tpu.memory_space<vmem>>, vector<128x512xbf16>
    %cst_93 = arith.constant dense<0.000000e+00> : vector<8x512xf32>
    %270 = tpu.matmul %268, %269, %cst_93 {dimension_numbers = #tpu.dot_dimension_numbers<[1], [0], [0], [1], [0, 0, 1, 1], [], []>} : vector<8x128xbf16>, vector<128x512xbf16>, vector<8x512xf32> -> vector<8x512xf32>
    %271 = arith.addf %267, %270 : vector<8x512xf32>
    %272 = vector.extract_strided_slice %271 {offsets = [0, 0], sizes = [8, 384], strides = [1, 1]} : vector<8x512xf32> to vector<8x384xf32>
    %cst_94 = arith.constant 5.000000e-01 : f32
    %273 = vector.broadcast %cst_94 : f32 to vector<8x384xf32>
    %274 = arith.mulf %273, %272 : vector<8x384xf32>
    %275 = math.tanh %274 : vector<8x384xf32>
    %cst_95 = arith.constant 5.000000e-01 : f32
    %276 = vector.broadcast %cst_95 : f32 to vector<8x384xf32>
    %277 = arith.mulf %276, %275 : vector<8x384xf32>
    %cst_96 = arith.constant 5.000000e-01 : f32
    %278 = vector.broadcast %cst_96 : f32 to vector<8x384xf32>
    %279 = arith.addf %277, %278 : vector<8x384xf32>
    %280 = vector.extract_strided_slice %271 {offsets = [0, 384], sizes = [8, 128], strides = [1, 1]} : vector<8x512xf32> to vector<8x128xf32>
    %281 = math.tanh %280 : vector<8x128xf32>
    %282 = vector.extract_strided_slice %279 {offsets = [0, 0], sizes = [8, 128], strides = [1, 1]} : vector<8x384xf32> to vector<8x128xf32>
    %283 = vector.extract_strided_slice %279 {offsets = [0, 128], sizes = [8, 128], strides = [1, 1]} : vector<8x384xf32> to vector<8x128xf32>
    %284 = vector.extract_strided_slice %279 {offsets = [0, 256], sizes = [8, 128], strides = [1, 1]} : vector<8x384xf32> to vector<8x128xf32>
    %285 = arith.mulf %283, %263 : vector<8x128xf32>
    %286 = arith.mulf %282, %281 : vector<8x128xf32>
    %287 = arith.addf %285, %286 : vector<8x128xf32>
    %288 = math.tanh %287 : vector<8x128xf32>
    %289 = arith.mulf %284, %288 : vector<8x128xf32>
    %c12 = arith.constant 12 : index
    %c0_97 = arith.constant 0 : index
    %c0_98 = arith.constant 0 : index
    %290 = vector.load %arg1[%c12, %c0_97, %c0_98] : memref<24x8x512xf32, #tpu.memory_space<vmem>>, vector<1x8x512xf32>
    %291 = vector.shape_cast %290 : vector<1x8x512xf32> to vector<8x512xf32>
    %292 = arith.truncf %289 : vector<8x128xf32> to vector<8x128xbf16>
    %c0_99 = arith.constant 0 : index
    %c0_100 = arith.constant 0 : index
    %293 = vector.load %arg2[%c0_99, %c0_100] : memref<128x512xbf16, #tpu.memory_space<vmem>>, vector<128x512xbf16>
    %cst_101 = arith.constant dense<0.000000e+00> : vector<8x512xf32>
    %294 = tpu.matmul %292, %293, %cst_101 {dimension_numbers = #tpu.dot_dimension_numbers<[1], [0], [0], [1], [0, 0, 1, 1], [], []>} : vector<8x128xbf16>, vector<128x512xbf16>, vector<8x512xf32> -> vector<8x512xf32>
    %295 = arith.addf %291, %294 : vector<8x512xf32>
    %296 = vector.extract_strided_slice %295 {offsets = [0, 0], sizes = [8, 384], strides = [1, 1]} : vector<8x512xf32> to vector<8x384xf32>
    %cst_102 = arith.constant 5.000000e-01 : f32
    %297 = vector.broadcast %cst_102 : f32 to vector<8x384xf32>
    %298 = arith.mulf %297, %296 : vector<8x384xf32>
    %299 = math.tanh %298 : vector<8x384xf32>
    %cst_103 = arith.constant 5.000000e-01 : f32
    %300 = vector.broadcast %cst_103 : f32 to vector<8x384xf32>
    %301 = arith.mulf %300, %299 : vector<8x384xf32>
    %cst_104 = arith.constant 5.000000e-01 : f32
    %302 = vector.broadcast %cst_104 : f32 to vector<8x384xf32>
    %303 = arith.addf %301, %302 : vector<8x384xf32>
    %304 = vector.extract_strided_slice %295 {offsets = [0, 384], sizes = [8, 128], strides = [1, 1]} : vector<8x512xf32> to vector<8x128xf32>
    %305 = math.tanh %304 : vector<8x128xf32>
    %306 = vector.extract_strided_slice %303 {offsets = [0, 0], sizes = [8, 128], strides = [1, 1]} : vector<8x384xf32> to vector<8x128xf32>
    %307 = vector.extract_strided_slice %303 {offsets = [0, 128], sizes = [8, 128], strides = [1, 1]} : vector<8x384xf32> to vector<8x128xf32>
    %308 = vector.extract_strided_slice %303 {offsets = [0, 256], sizes = [8, 128], strides = [1, 1]} : vector<8x384xf32> to vector<8x128xf32>
    %309 = arith.mulf %307, %287 : vector<8x128xf32>
    %310 = arith.mulf %306, %305 : vector<8x128xf32>
    %311 = arith.addf %309, %310 : vector<8x128xf32>
    %312 = math.tanh %311 : vector<8x128xf32>
    %313 = arith.mulf %308, %312 : vector<8x128xf32>
    %c13 = arith.constant 13 : index
    %c0_105 = arith.constant 0 : index
    %c0_106 = arith.constant 0 : index
    %314 = vector.load %arg1[%c13, %c0_105, %c0_106] : memref<24x8x512xf32, #tpu.memory_space<vmem>>, vector<1x8x512xf32>
    %315 = vector.shape_cast %314 : vector<1x8x512xf32> to vector<8x512xf32>
    %316 = arith.truncf %313 : vector<8x128xf32> to vector<8x128xbf16>
    %c0_107 = arith.constant 0 : index
    %c0_108 = arith.constant 0 : index
    %317 = vector.load %arg2[%c0_107, %c0_108] : memref<128x512xbf16, #tpu.memory_space<vmem>>, vector<128x512xbf16>
    %cst_109 = arith.constant dense<0.000000e+00> : vector<8x512xf32>
    %318 = tpu.matmul %316, %317, %cst_109 {dimension_numbers = #tpu.dot_dimension_numbers<[1], [0], [0], [1], [0, 0, 1, 1], [], []>} : vector<8x128xbf16>, vector<128x512xbf16>, vector<8x512xf32> -> vector<8x512xf32>
    %319 = arith.addf %315, %318 : vector<8x512xf32>
    %320 = vector.extract_strided_slice %319 {offsets = [0, 0], sizes = [8, 384], strides = [1, 1]} : vector<8x512xf32> to vector<8x384xf32>
    %cst_110 = arith.constant 5.000000e-01 : f32
    %321 = vector.broadcast %cst_110 : f32 to vector<8x384xf32>
    %322 = arith.mulf %321, %320 : vector<8x384xf32>
    %323 = math.tanh %322 : vector<8x384xf32>
    %cst_111 = arith.constant 5.000000e-01 : f32
    %324 = vector.broadcast %cst_111 : f32 to vector<8x384xf32>
    %325 = arith.mulf %324, %323 : vector<8x384xf32>
    %cst_112 = arith.constant 5.000000e-01 : f32
    %326 = vector.broadcast %cst_112 : f32 to vector<8x384xf32>
    %327 = arith.addf %325, %326 : vector<8x384xf32>
    %328 = vector.extract_strided_slice %319 {offsets = [0, 384], sizes = [8, 128], strides = [1, 1]} : vector<8x512xf32> to vector<8x128xf32>
    %329 = math.tanh %328 : vector<8x128xf32>
    %330 = vector.extract_strided_slice %327 {offsets = [0, 0], sizes = [8, 128], strides = [1, 1]} : vector<8x384xf32> to vector<8x128xf32>
    %331 = vector.extract_strided_slice %327 {offsets = [0, 128], sizes = [8, 128], strides = [1, 1]} : vector<8x384xf32> to vector<8x128xf32>
    %332 = vector.extract_strided_slice %327 {offsets = [0, 256], sizes = [8, 128], strides = [1, 1]} : vector<8x384xf32> to vector<8x128xf32>
    %333 = arith.mulf %331, %311 : vector<8x128xf32>
    %334 = arith.mulf %330, %329 : vector<8x128xf32>
    %335 = arith.addf %333, %334 : vector<8x128xf32>
    %336 = math.tanh %335 : vector<8x128xf32>
    %337 = arith.mulf %332, %336 : vector<8x128xf32>
    %c14 = arith.constant 14 : index
    %c0_113 = arith.constant 0 : index
    %c0_114 = arith.constant 0 : index
    %338 = vector.load %arg1[%c14, %c0_113, %c0_114] : memref<24x8x512xf32, #tpu.memory_space<vmem>>, vector<1x8x512xf32>
    %339 = vector.shape_cast %338 : vector<1x8x512xf32> to vector<8x512xf32>
    %340 = arith.truncf %337 : vector<8x128xf32> to vector<8x128xbf16>
    %c0_115 = arith.constant 0 : index
    %c0_116 = arith.constant 0 : index
    %341 = vector.load %arg2[%c0_115, %c0_116] : memref<128x512xbf16, #tpu.memory_space<vmem>>, vector<128x512xbf16>
    %cst_117 = arith.constant dense<0.000000e+00> : vector<8x512xf32>
    %342 = tpu.matmul %340, %341, %cst_117 {dimension_numbers = #tpu.dot_dimension_numbers<[1], [0], [0], [1], [0, 0, 1, 1], [], []>} : vector<8x128xbf16>, vector<128x512xbf16>, vector<8x512xf32> -> vector<8x512xf32>
    %343 = arith.addf %339, %342 : vector<8x512xf32>
    %344 = vector.extract_strided_slice %343 {offsets = [0, 0], sizes = [8, 384], strides = [1, 1]} : vector<8x512xf32> to vector<8x384xf32>
    %cst_118 = arith.constant 5.000000e-01 : f32
    %345 = vector.broadcast %cst_118 : f32 to vector<8x384xf32>
    %346 = arith.mulf %345, %344 : vector<8x384xf32>
    %347 = math.tanh %346 : vector<8x384xf32>
    %cst_119 = arith.constant 5.000000e-01 : f32
    %348 = vector.broadcast %cst_119 : f32 to vector<8x384xf32>
    %349 = arith.mulf %348, %347 : vector<8x384xf32>
    %cst_120 = arith.constant 5.000000e-01 : f32
    %350 = vector.broadcast %cst_120 : f32 to vector<8x384xf32>
    %351 = arith.addf %349, %350 : vector<8x384xf32>
    %352 = vector.extract_strided_slice %343 {offsets = [0, 384], sizes = [8, 128], strides = [1, 1]} : vector<8x512xf32> to vector<8x128xf32>
    %353 = math.tanh %352 : vector<8x128xf32>
    %354 = vector.extract_strided_slice %351 {offsets = [0, 0], sizes = [8, 128], strides = [1, 1]} : vector<8x384xf32> to vector<8x128xf32>
    %355 = vector.extract_strided_slice %351 {offsets = [0, 128], sizes = [8, 128], strides = [1, 1]} : vector<8x384xf32> to vector<8x128xf32>
    %356 = vector.extract_strided_slice %351 {offsets = [0, 256], sizes = [8, 128], strides = [1, 1]} : vector<8x384xf32> to vector<8x128xf32>
    %357 = arith.mulf %355, %335 : vector<8x128xf32>
    %358 = arith.mulf %354, %353 : vector<8x128xf32>
    %359 = arith.addf %357, %358 : vector<8x128xf32>
    %360 = math.tanh %359 : vector<8x128xf32>
    %361 = arith.mulf %356, %360 : vector<8x128xf32>
    %c15 = arith.constant 15 : index
    %c0_121 = arith.constant 0 : index
    %c0_122 = arith.constant 0 : index
    %362 = vector.load %arg1[%c15, %c0_121, %c0_122] : memref<24x8x512xf32, #tpu.memory_space<vmem>>, vector<1x8x512xf32>
    %363 = vector.shape_cast %362 : vector<1x8x512xf32> to vector<8x512xf32>
    %364 = arith.truncf %361 : vector<8x128xf32> to vector<8x128xbf16>
    %c0_123 = arith.constant 0 : index
    %c0_124 = arith.constant 0 : index
    %365 = vector.load %arg2[%c0_123, %c0_124] : memref<128x512xbf16, #tpu.memory_space<vmem>>, vector<128x512xbf16>
    %cst_125 = arith.constant dense<0.000000e+00> : vector<8x512xf32>
    %366 = tpu.matmul %364, %365, %cst_125 {dimension_numbers = #tpu.dot_dimension_numbers<[1], [0], [0], [1], [0, 0, 1, 1], [], []>} : vector<8x128xbf16>, vector<128x512xbf16>, vector<8x512xf32> -> vector<8x512xf32>
    %367 = arith.addf %363, %366 : vector<8x512xf32>
    %368 = vector.extract_strided_slice %367 {offsets = [0, 0], sizes = [8, 384], strides = [1, 1]} : vector<8x512xf32> to vector<8x384xf32>
    %cst_126 = arith.constant 5.000000e-01 : f32
    %369 = vector.broadcast %cst_126 : f32 to vector<8x384xf32>
    %370 = arith.mulf %369, %368 : vector<8x384xf32>
    %371 = math.tanh %370 : vector<8x384xf32>
    %cst_127 = arith.constant 5.000000e-01 : f32
    %372 = vector.broadcast %cst_127 : f32 to vector<8x384xf32>
    %373 = arith.mulf %372, %371 : vector<8x384xf32>
    %cst_128 = arith.constant 5.000000e-01 : f32
    %374 = vector.broadcast %cst_128 : f32 to vector<8x384xf32>
    %375 = arith.addf %373, %374 : vector<8x384xf32>
    %376 = vector.extract_strided_slice %367 {offsets = [0, 384], sizes = [8, 128], strides = [1, 1]} : vector<8x512xf32> to vector<8x128xf32>
    %377 = math.tanh %376 : vector<8x128xf32>
    %378 = vector.extract_strided_slice %375 {offsets = [0, 0], sizes = [8, 128], strides = [1, 1]} : vector<8x384xf32> to vector<8x128xf32>
    %379 = vector.extract_strided_slice %375 {offsets = [0, 128], sizes = [8, 128], strides = [1, 1]} : vector<8x384xf32> to vector<8x128xf32>
    %380 = vector.extract_strided_slice %375 {offsets = [0, 256], sizes = [8, 128], strides = [1, 1]} : vector<8x384xf32> to vector<8x128xf32>
    %381 = arith.mulf %379, %359 : vector<8x128xf32>
    %382 = arith.mulf %378, %377 : vector<8x128xf32>
    %383 = arith.addf %381, %382 : vector<8x128xf32>
    %384 = math.tanh %383 : vector<8x128xf32>
    %385 = arith.mulf %380, %384 : vector<8x128xf32>
    %c16 = arith.constant 16 : index
    %c0_129 = arith.constant 0 : index
    %c0_130 = arith.constant 0 : index
    %386 = vector.load %arg1[%c16, %c0_129, %c0_130] : memref<24x8x512xf32, #tpu.memory_space<vmem>>, vector<1x8x512xf32>
    %387 = vector.shape_cast %386 : vector<1x8x512xf32> to vector<8x512xf32>
    %388 = arith.truncf %385 : vector<8x128xf32> to vector<8x128xbf16>
    %c0_131 = arith.constant 0 : index
    %c0_132 = arith.constant 0 : index
    %389 = vector.load %arg2[%c0_131, %c0_132] : memref<128x512xbf16, #tpu.memory_space<vmem>>, vector<128x512xbf16>
    %cst_133 = arith.constant dense<0.000000e+00> : vector<8x512xf32>
    %390 = tpu.matmul %388, %389, %cst_133 {dimension_numbers = #tpu.dot_dimension_numbers<[1], [0], [0], [1], [0, 0, 1, 1], [], []>} : vector<8x128xbf16>, vector<128x512xbf16>, vector<8x512xf32> -> vector<8x512xf32>
    %391 = arith.addf %387, %390 : vector<8x512xf32>
    %392 = vector.extract_strided_slice %391 {offsets = [0, 0], sizes = [8, 384], strides = [1, 1]} : vector<8x512xf32> to vector<8x384xf32>
    %cst_134 = arith.constant 5.000000e-01 : f32
    %393 = vector.broadcast %cst_134 : f32 to vector<8x384xf32>
    %394 = arith.mulf %393, %392 : vector<8x384xf32>
    %395 = math.tanh %394 : vector<8x384xf32>
    %cst_135 = arith.constant 5.000000e-01 : f32
    %396 = vector.broadcast %cst_135 : f32 to vector<8x384xf32>
    %397 = arith.mulf %396, %395 : vector<8x384xf32>
    %cst_136 = arith.constant 5.000000e-01 : f32
    %398 = vector.broadcast %cst_136 : f32 to vector<8x384xf32>
    %399 = arith.addf %397, %398 : vector<8x384xf32>
    %400 = vector.extract_strided_slice %391 {offsets = [0, 384], sizes = [8, 128], strides = [1, 1]} : vector<8x512xf32> to vector<8x128xf32>
    %401 = math.tanh %400 : vector<8x128xf32>
    %402 = vector.extract_strided_slice %399 {offsets = [0, 0], sizes = [8, 128], strides = [1, 1]} : vector<8x384xf32> to vector<8x128xf32>
    %403 = vector.extract_strided_slice %399 {offsets = [0, 128], sizes = [8, 128], strides = [1, 1]} : vector<8x384xf32> to vector<8x128xf32>
    %404 = vector.extract_strided_slice %399 {offsets = [0, 256], sizes = [8, 128], strides = [1, 1]} : vector<8x384xf32> to vector<8x128xf32>
    %405 = arith.mulf %403, %383 : vector<8x128xf32>
    %406 = arith.mulf %402, %401 : vector<8x128xf32>
    %407 = arith.addf %405, %406 : vector<8x128xf32>
    %408 = math.tanh %407 : vector<8x128xf32>
    %409 = arith.mulf %404, %408 : vector<8x128xf32>
    %c17 = arith.constant 17 : index
    %c0_137 = arith.constant 0 : index
    %c0_138 = arith.constant 0 : index
    %410 = vector.load %arg1[%c17, %c0_137, %c0_138] : memref<24x8x512xf32, #tpu.memory_space<vmem>>, vector<1x8x512xf32>
    %411 = vector.shape_cast %410 : vector<1x8x512xf32> to vector<8x512xf32>
    %412 = arith.truncf %409 : vector<8x128xf32> to vector<8x128xbf16>
    %c0_139 = arith.constant 0 : index
    %c0_140 = arith.constant 0 : index
    %413 = vector.load %arg2[%c0_139, %c0_140] : memref<128x512xbf16, #tpu.memory_space<vmem>>, vector<128x512xbf16>
    %cst_141 = arith.constant dense<0.000000e+00> : vector<8x512xf32>
    %414 = tpu.matmul %412, %413, %cst_141 {dimension_numbers = #tpu.dot_dimension_numbers<[1], [0], [0], [1], [0, 0, 1, 1], [], []>} : vector<8x128xbf16>, vector<128x512xbf16>, vector<8x512xf32> -> vector<8x512xf32>
    %415 = arith.addf %411, %414 : vector<8x512xf32>
    %416 = vector.extract_strided_slice %415 {offsets = [0, 0], sizes = [8, 384], strides = [1, 1]} : vector<8x512xf32> to vector<8x384xf32>
    %cst_142 = arith.constant 5.000000e-01 : f32
    %417 = vector.broadcast %cst_142 : f32 to vector<8x384xf32>
    %418 = arith.mulf %417, %416 : vector<8x384xf32>
    %419 = math.tanh %418 : vector<8x384xf32>
    %cst_143 = arith.constant 5.000000e-01 : f32
    %420 = vector.broadcast %cst_143 : f32 to vector<8x384xf32>
    %421 = arith.mulf %420, %419 : vector<8x384xf32>
    %cst_144 = arith.constant 5.000000e-01 : f32
    %422 = vector.broadcast %cst_144 : f32 to vector<8x384xf32>
    %423 = arith.addf %421, %422 : vector<8x384xf32>
    %424 = vector.extract_strided_slice %415 {offsets = [0, 384], sizes = [8, 128], strides = [1, 1]} : vector<8x512xf32> to vector<8x128xf32>
    %425 = math.tanh %424 : vector<8x128xf32>
    %426 = vector.extract_strided_slice %423 {offsets = [0, 0], sizes = [8, 128], strides = [1, 1]} : vector<8x384xf32> to vector<8x128xf32>
    %427 = vector.extract_strided_slice %423 {offsets = [0, 128], sizes = [8, 128], strides = [1, 1]} : vector<8x384xf32> to vector<8x128xf32>
    %428 = vector.extract_strided_slice %423 {offsets = [0, 256], sizes = [8, 128], strides = [1, 1]} : vector<8x384xf32> to vector<8x128xf32>
    %429 = arith.mulf %427, %407 : vector<8x128xf32>
    %430 = arith.mulf %426, %425 : vector<8x128xf32>
    %431 = arith.addf %429, %430 : vector<8x128xf32>
    %432 = math.tanh %431 : vector<8x128xf32>
    %433 = arith.mulf %428, %432 : vector<8x128xf32>
    %c18 = arith.constant 18 : index
    %c0_145 = arith.constant 0 : index
    %c0_146 = arith.constant 0 : index
    %434 = vector.load %arg1[%c18, %c0_145, %c0_146] : memref<24x8x512xf32, #tpu.memory_space<vmem>>, vector<1x8x512xf32>
    %435 = vector.shape_cast %434 : vector<1x8x512xf32> to vector<8x512xf32>
    %436 = arith.truncf %433 : vector<8x128xf32> to vector<8x128xbf16>
    %c0_147 = arith.constant 0 : index
    %c0_148 = arith.constant 0 : index
    %437 = vector.load %arg2[%c0_147, %c0_148] : memref<128x512xbf16, #tpu.memory_space<vmem>>, vector<128x512xbf16>
    %cst_149 = arith.constant dense<0.000000e+00> : vector<8x512xf32>
    %438 = tpu.matmul %436, %437, %cst_149 {dimension_numbers = #tpu.dot_dimension_numbers<[1], [0], [0], [1], [0, 0, 1, 1], [], []>} : vector<8x128xbf16>, vector<128x512xbf16>, vector<8x512xf32> -> vector<8x512xf32>
    %439 = arith.addf %435, %438 : vector<8x512xf32>
    %440 = vector.extract_strided_slice %439 {offsets = [0, 0], sizes = [8, 384], strides = [1, 1]} : vector<8x512xf32> to vector<8x384xf32>
    %cst_150 = arith.constant 5.000000e-01 : f32
    %441 = vector.broadcast %cst_150 : f32 to vector<8x384xf32>
    %442 = arith.mulf %441, %440 : vector<8x384xf32>
    %443 = math.tanh %442 : vector<8x384xf32>
    %cst_151 = arith.constant 5.000000e-01 : f32
    %444 = vector.broadcast %cst_151 : f32 to vector<8x384xf32>
    %445 = arith.mulf %444, %443 : vector<8x384xf32>
    %cst_152 = arith.constant 5.000000e-01 : f32
    %446 = vector.broadcast %cst_152 : f32 to vector<8x384xf32>
    %447 = arith.addf %445, %446 : vector<8x384xf32>
    %448 = vector.extract_strided_slice %439 {offsets = [0, 384], sizes = [8, 128], strides = [1, 1]} : vector<8x512xf32> to vector<8x128xf32>
    %449 = math.tanh %448 : vector<8x128xf32>
    %450 = vector.extract_strided_slice %447 {offsets = [0, 0], sizes = [8, 128], strides = [1, 1]} : vector<8x384xf32> to vector<8x128xf32>
    %451 = vector.extract_strided_slice %447 {offsets = [0, 128], sizes = [8, 128], strides = [1, 1]} : vector<8x384xf32> to vector<8x128xf32>
    %452 = vector.extract_strided_slice %447 {offsets = [0, 256], sizes = [8, 128], strides = [1, 1]} : vector<8x384xf32> to vector<8x128xf32>
    %453 = arith.mulf %451, %431 : vector<8x128xf32>
    %454 = arith.mulf %450, %449 : vector<8x128xf32>
    %455 = arith.addf %453, %454 : vector<8x128xf32>
    %456 = math.tanh %455 : vector<8x128xf32>
    %457 = arith.mulf %452, %456 : vector<8x128xf32>
    %c19 = arith.constant 19 : index
    %c0_153 = arith.constant 0 : index
    %c0_154 = arith.constant 0 : index
    %458 = vector.load %arg1[%c19, %c0_153, %c0_154] : memref<24x8x512xf32, #tpu.memory_space<vmem>>, vector<1x8x512xf32>
    %459 = vector.shape_cast %458 : vector<1x8x512xf32> to vector<8x512xf32>
    %460 = arith.truncf %457 : vector<8x128xf32> to vector<8x128xbf16>
    %c0_155 = arith.constant 0 : index
    %c0_156 = arith.constant 0 : index
    %461 = vector.load %arg2[%c0_155, %c0_156] : memref<128x512xbf16, #tpu.memory_space<vmem>>, vector<128x512xbf16>
    %cst_157 = arith.constant dense<0.000000e+00> : vector<8x512xf32>
    %462 = tpu.matmul %460, %461, %cst_157 {dimension_numbers = #tpu.dot_dimension_numbers<[1], [0], [0], [1], [0, 0, 1, 1], [], []>} : vector<8x128xbf16>, vector<128x512xbf16>, vector<8x512xf32> -> vector<8x512xf32>
    %463 = arith.addf %459, %462 : vector<8x512xf32>
    %464 = vector.extract_strided_slice %463 {offsets = [0, 0], sizes = [8, 384], strides = [1, 1]} : vector<8x512xf32> to vector<8x384xf32>
    %cst_158 = arith.constant 5.000000e-01 : f32
    %465 = vector.broadcast %cst_158 : f32 to vector<8x384xf32>
    %466 = arith.mulf %465, %464 : vector<8x384xf32>
    %467 = math.tanh %466 : vector<8x384xf32>
    %cst_159 = arith.constant 5.000000e-01 : f32
    %468 = vector.broadcast %cst_159 : f32 to vector<8x384xf32>
    %469 = arith.mulf %468, %467 : vector<8x384xf32>
    %cst_160 = arith.constant 5.000000e-01 : f32
    %470 = vector.broadcast %cst_160 : f32 to vector<8x384xf32>
    %471 = arith.addf %469, %470 : vector<8x384xf32>
    %472 = vector.extract_strided_slice %463 {offsets = [0, 384], sizes = [8, 128], strides = [1, 1]} : vector<8x512xf32> to vector<8x128xf32>
    %473 = math.tanh %472 : vector<8x128xf32>
    %474 = vector.extract_strided_slice %471 {offsets = [0, 0], sizes = [8, 128], strides = [1, 1]} : vector<8x384xf32> to vector<8x128xf32>
    %475 = vector.extract_strided_slice %471 {offsets = [0, 128], sizes = [8, 128], strides = [1, 1]} : vector<8x384xf32> to vector<8x128xf32>
    %476 = vector.extract_strided_slice %471 {offsets = [0, 256], sizes = [8, 128], strides = [1, 1]} : vector<8x384xf32> to vector<8x128xf32>
    %477 = arith.mulf %475, %455 : vector<8x128xf32>
    %478 = arith.mulf %474, %473 : vector<8x128xf32>
    %479 = arith.addf %477, %478 : vector<8x128xf32>
    %480 = math.tanh %479 : vector<8x128xf32>
    %481 = arith.mulf %476, %480 : vector<8x128xf32>
    %c20 = arith.constant 20 : index
    %c0_161 = arith.constant 0 : index
    %c0_162 = arith.constant 0 : index
    %482 = vector.load %arg1[%c20, %c0_161, %c0_162] : memref<24x8x512xf32, #tpu.memory_space<vmem>>, vector<1x8x512xf32>
    %483 = vector.shape_cast %482 : vector<1x8x512xf32> to vector<8x512xf32>
    %484 = arith.truncf %481 : vector<8x128xf32> to vector<8x128xbf16>
    %c0_163 = arith.constant 0 : index
    %c0_164 = arith.constant 0 : index
    %485 = vector.load %arg2[%c0_163, %c0_164] : memref<128x512xbf16, #tpu.memory_space<vmem>>, vector<128x512xbf16>
    %cst_165 = arith.constant dense<0.000000e+00> : vector<8x512xf32>
    %486 = tpu.matmul %484, %485, %cst_165 {dimension_numbers = #tpu.dot_dimension_numbers<[1], [0], [0], [1], [0, 0, 1, 1], [], []>} : vector<8x128xbf16>, vector<128x512xbf16>, vector<8x512xf32> -> vector<8x512xf32>
    %487 = arith.addf %483, %486 : vector<8x512xf32>
    %488 = vector.extract_strided_slice %487 {offsets = [0, 0], sizes = [8, 384], strides = [1, 1]} : vector<8x512xf32> to vector<8x384xf32>
    %cst_166 = arith.constant 5.000000e-01 : f32
    %489 = vector.broadcast %cst_166 : f32 to vector<8x384xf32>
    %490 = arith.mulf %489, %488 : vector<8x384xf32>
    %491 = math.tanh %490 : vector<8x384xf32>
    %cst_167 = arith.constant 5.000000e-01 : f32
    %492 = vector.broadcast %cst_167 : f32 to vector<8x384xf32>
    %493 = arith.mulf %492, %491 : vector<8x384xf32>
    %cst_168 = arith.constant 5.000000e-01 : f32
    %494 = vector.broadcast %cst_168 : f32 to vector<8x384xf32>
    %495 = arith.addf %493, %494 : vector<8x384xf32>
    %496 = vector.extract_strided_slice %487 {offsets = [0, 384], sizes = [8, 128], strides = [1, 1]} : vector<8x512xf32> to vector<8x128xf32>
    %497 = math.tanh %496 : vector<8x128xf32>
    %498 = vector.extract_strided_slice %495 {offsets = [0, 0], sizes = [8, 128], strides = [1, 1]} : vector<8x384xf32> to vector<8x128xf32>
    %499 = vector.extract_strided_slice %495 {offsets = [0, 128], sizes = [8, 128], strides = [1, 1]} : vector<8x384xf32> to vector<8x128xf32>
    %500 = vector.extract_strided_slice %495 {offsets = [0, 256], sizes = [8, 128], strides = [1, 1]} : vector<8x384xf32> to vector<8x128xf32>
    %501 = arith.mulf %499, %479 : vector<8x128xf32>
    %502 = arith.mulf %498, %497 : vector<8x128xf32>
    %503 = arith.addf %501, %502 : vector<8x128xf32>
    %504 = math.tanh %503 : vector<8x128xf32>
    %505 = arith.mulf %500, %504 : vector<8x128xf32>
    %c21 = arith.constant 21 : index
    %c0_169 = arith.constant 0 : index
    %c0_170 = arith.constant 0 : index
    %506 = vector.load %arg1[%c21, %c0_169, %c0_170] : memref<24x8x512xf32, #tpu.memory_space<vmem>>, vector<1x8x512xf32>
    %507 = vector.shape_cast %506 : vector<1x8x512xf32> to vector<8x512xf32>
    %508 = arith.truncf %505 : vector<8x128xf32> to vector<8x128xbf16>
    %c0_171 = arith.constant 0 : index
    %c0_172 = arith.constant 0 : index
    %509 = vector.load %arg2[%c0_171, %c0_172] : memref<128x512xbf16, #tpu.memory_space<vmem>>, vector<128x512xbf16>
    %cst_173 = arith.constant dense<0.000000e+00> : vector<8x512xf32>
    %510 = tpu.matmul %508, %509, %cst_173 {dimension_numbers = #tpu.dot_dimension_numbers<[1], [0], [0], [1], [0, 0, 1, 1], [], []>} : vector<8x128xbf16>, vector<128x512xbf16>, vector<8x512xf32> -> vector<8x512xf32>
    %511 = arith.addf %507, %510 : vector<8x512xf32>
    %512 = vector.extract_strided_slice %511 {offsets = [0, 0], sizes = [8, 384], strides = [1, 1]} : vector<8x512xf32> to vector<8x384xf32>
    %cst_174 = arith.constant 5.000000e-01 : f32
    %513 = vector.broadcast %cst_174 : f32 to vector<8x384xf32>
    %514 = arith.mulf %513, %512 : vector<8x384xf32>
    %515 = math.tanh %514 : vector<8x384xf32>
    %cst_175 = arith.constant 5.000000e-01 : f32
    %516 = vector.broadcast %cst_175 : f32 to vector<8x384xf32>
    %517 = arith.mulf %516, %515 : vector<8x384xf32>
    %cst_176 = arith.constant 5.000000e-01 : f32
    %518 = vector.broadcast %cst_176 : f32 to vector<8x384xf32>
    %519 = arith.addf %517, %518 : vector<8x384xf32>
    %520 = vector.extract_strided_slice %511 {offsets = [0, 384], sizes = [8, 128], strides = [1, 1]} : vector<8x512xf32> to vector<8x128xf32>
    %521 = math.tanh %520 : vector<8x128xf32>
    %522 = vector.extract_strided_slice %519 {offsets = [0, 0], sizes = [8, 128], strides = [1, 1]} : vector<8x384xf32> to vector<8x128xf32>
    %523 = vector.extract_strided_slice %519 {offsets = [0, 128], sizes = [8, 128], strides = [1, 1]} : vector<8x384xf32> to vector<8x128xf32>
    %524 = vector.extract_strided_slice %519 {offsets = [0, 256], sizes = [8, 128], strides = [1, 1]} : vector<8x384xf32> to vector<8x128xf32>
    %525 = arith.mulf %523, %503 : vector<8x128xf32>
    %526 = arith.mulf %522, %521 : vector<8x128xf32>
    %527 = arith.addf %525, %526 : vector<8x128xf32>
    %528 = math.tanh %527 : vector<8x128xf32>
    %529 = arith.mulf %524, %528 : vector<8x128xf32>
    %c22 = arith.constant 22 : index
    %c0_177 = arith.constant 0 : index
    %c0_178 = arith.constant 0 : index
    %530 = vector.load %arg1[%c22, %c0_177, %c0_178] : memref<24x8x512xf32, #tpu.memory_space<vmem>>, vector<1x8x512xf32>
    %531 = vector.shape_cast %530 : vector<1x8x512xf32> to vector<8x512xf32>
    %532 = arith.truncf %529 : vector<8x128xf32> to vector<8x128xbf16>
    %c0_179 = arith.constant 0 : index
    %c0_180 = arith.constant 0 : index
    %533 = vector.load %arg2[%c0_179, %c0_180] : memref<128x512xbf16, #tpu.memory_space<vmem>>, vector<128x512xbf16>
    %cst_181 = arith.constant dense<0.000000e+00> : vector<8x512xf32>
    %534 = tpu.matmul %532, %533, %cst_181 {dimension_numbers = #tpu.dot_dimension_numbers<[1], [0], [0], [1], [0, 0, 1, 1], [], []>} : vector<8x128xbf16>, vector<128x512xbf16>, vector<8x512xf32> -> vector<8x512xf32>
    %535 = arith.addf %531, %534 : vector<8x512xf32>
    %536 = vector.extract_strided_slice %535 {offsets = [0, 0], sizes = [8, 384], strides = [1, 1]} : vector<8x512xf32> to vector<8x384xf32>
    %cst_182 = arith.constant 5.000000e-01 : f32
    %537 = vector.broadcast %cst_182 : f32 to vector<8x384xf32>
    %538 = arith.mulf %537, %536 : vector<8x384xf32>
    %539 = math.tanh %538 : vector<8x384xf32>
    %cst_183 = arith.constant 5.000000e-01 : f32
    %540 = vector.broadcast %cst_183 : f32 to vector<8x384xf32>
    %541 = arith.mulf %540, %539 : vector<8x384xf32>
    %cst_184 = arith.constant 5.000000e-01 : f32
    %542 = vector.broadcast %cst_184 : f32 to vector<8x384xf32>
    %543 = arith.addf %541, %542 : vector<8x384xf32>
    %544 = vector.extract_strided_slice %535 {offsets = [0, 384], sizes = [8, 128], strides = [1, 1]} : vector<8x512xf32> to vector<8x128xf32>
    %545 = math.tanh %544 : vector<8x128xf32>
    %546 = vector.extract_strided_slice %543 {offsets = [0, 0], sizes = [8, 128], strides = [1, 1]} : vector<8x384xf32> to vector<8x128xf32>
    %547 = vector.extract_strided_slice %543 {offsets = [0, 128], sizes = [8, 128], strides = [1, 1]} : vector<8x384xf32> to vector<8x128xf32>
    %548 = vector.extract_strided_slice %543 {offsets = [0, 256], sizes = [8, 128], strides = [1, 1]} : vector<8x384xf32> to vector<8x128xf32>
    %549 = arith.mulf %547, %527 : vector<8x128xf32>
    %550 = arith.mulf %546, %545 : vector<8x128xf32>
    %551 = arith.addf %549, %550 : vector<8x128xf32>
    %552 = math.tanh %551 : vector<8x128xf32>
    %553 = arith.mulf %548, %552 : vector<8x128xf32>
    %c23 = arith.constant 23 : index
    %c0_185 = arith.constant 0 : index
    %c0_186 = arith.constant 0 : index
    %554 = vector.load %arg1[%c23, %c0_185, %c0_186] : memref<24x8x512xf32, #tpu.memory_space<vmem>>, vector<1x8x512xf32>
    %555 = vector.shape_cast %554 : vector<1x8x512xf32> to vector<8x512xf32>
    %556 = arith.truncf %553 : vector<8x128xf32> to vector<8x128xbf16>
    %c0_187 = arith.constant 0 : index
    %c0_188 = arith.constant 0 : index
    %557 = vector.load %arg2[%c0_187, %c0_188] : memref<128x512xbf16, #tpu.memory_space<vmem>>, vector<128x512xbf16>
    %cst_189 = arith.constant dense<0.000000e+00> : vector<8x512xf32>
    %558 = tpu.matmul %556, %557, %cst_189 {dimension_numbers = #tpu.dot_dimension_numbers<[1], [0], [0], [1], [0, 0, 1, 1], [], []>} : vector<8x128xbf16>, vector<128x512xbf16>, vector<8x512xf32> -> vector<8x512xf32>
    %559 = arith.addf %555, %558 : vector<8x512xf32>
    %560 = vector.extract_strided_slice %559 {offsets = [0, 0], sizes = [8, 384], strides = [1, 1]} : vector<8x512xf32> to vector<8x384xf32>
    %cst_190 = arith.constant 5.000000e-01 : f32
    %561 = vector.broadcast %cst_190 : f32 to vector<8x384xf32>
    %562 = arith.mulf %561, %560 : vector<8x384xf32>
    %563 = math.tanh %562 : vector<8x384xf32>
    %cst_191 = arith.constant 5.000000e-01 : f32
    %564 = vector.broadcast %cst_191 : f32 to vector<8x384xf32>
    %565 = arith.mulf %564, %563 : vector<8x384xf32>
    %cst_192 = arith.constant 5.000000e-01 : f32
    %566 = vector.broadcast %cst_192 : f32 to vector<8x384xf32>
    %567 = arith.addf %565, %566 : vector<8x384xf32>
    %568 = vector.extract_strided_slice %559 {offsets = [0, 384], sizes = [8, 128], strides = [1, 1]} : vector<8x512xf32> to vector<8x128xf32>
    %569 = math.tanh %568 : vector<8x128xf32>
    %570 = vector.extract_strided_slice %567 {offsets = [0, 0], sizes = [8, 128], strides = [1, 1]} : vector<8x384xf32> to vector<8x128xf32>
    %571 = vector.extract_strided_slice %567 {offsets = [0, 128], sizes = [8, 128], strides = [1, 1]} : vector<8x384xf32> to vector<8x128xf32>
    %572 = vector.extract_strided_slice %567 {offsets = [0, 256], sizes = [8, 128], strides = [1, 1]} : vector<8x384xf32> to vector<8x128xf32>
    %573 = arith.mulf %571, %551 : vector<8x128xf32>
    %574 = arith.mulf %570, %569 : vector<8x128xf32>
    %575 = arith.addf %573, %574 : vector<8x128xf32>
    %576 = math.tanh %575 : vector<8x128xf32>
    %577 = arith.mulf %572, %576 : vector<8x128xf32>
    %c0_193 = arith.constant 0 : index
    %c0_194 = arith.constant 0 : index
    %578 = vector.load %arg3[%c0_193, %c0_194] : memref<128x64xf32, #tpu.memory_space<vmem>>, vector<128x64xf32>
    %cst_195 = arith.constant dense<0.000000e+00> : vector<8x64xf32>
    %579 = tpu.matmul %577, %578, %cst_195 {dimension_numbers = #tpu.dot_dimension_numbers<[1], [0], [0], [1], [0, 0, 1, 1], [], []>} : vector<8x128xf32>, vector<128x64xf32>, vector<8x64xf32> -> vector<8x64xf32>
    %c0_196 = arith.constant 0 : index
    %c0_197 = arith.constant 0 : index
    %580 = vector.load %arg4[%c0_196, %c0_197] : memref<1x64xf32, #tpu.memory_space<vmem>>, vector<1x64xf32>
    %581 = vector.broadcast %580 : vector<1x64xf32> to vector<8x64xf32>
    %582 = arith.addf %579, %581 : vector<8x64xf32>
    %cst_198 = arith.constant 0.000000e+00 : f32
    %583 = vector.broadcast %cst_198 : f32 to vector<8x64xf32>
    %584 = arith.maximumf %582, %583 : vector<8x64xf32>
    %c0_199 = arith.constant 0 : index
    %c0_200 = arith.constant 0 : index
    %585 = vector.load %arg5[%c0_199, %c0_200] : memref<64x5xf32, #tpu.memory_space<vmem>>, vector<64x5xf32>
    %cst_201 = arith.constant dense<0.000000e+00> : vector<8x5xf32>
    %586 = tpu.matmul %584, %585, %cst_201 {dimension_numbers = #tpu.dot_dimension_numbers<[1], [0], [0], [1], [0, 0, 1, 1], [], []>} : vector<8x64xf32>, vector<64x5xf32>, vector<8x5xf32> -> vector<8x5xf32>
    %c0_202 = arith.constant 0 : index
    %c0_203 = arith.constant 0 : index
    %587 = vector.load %arg6[%c0_202, %c0_203] : memref<1x5xf32, #tpu.memory_space<vmem>>, vector<1x5xf32>
    %588 = vector.broadcast %587 : vector<1x5xf32> to vector<8x5xf32>
    %589 = arith.addf %586, %588 : vector<8x5xf32>
    %c0_204 = arith.constant 0 : index
    %c0_205 = arith.constant 0 : index
    %590 = vector.load %arg7[%c0_204, %c0_205] : memref<8x5xf32, #tpu.memory_space<vmem>>, vector<8x5xf32>
    tpu.vector_store %arg7[%c0_204, %c0_205], %589 {strides = array<i32>} : memref<8x5xf32, #tpu.memory_space<vmem>>, vector<8x5xf32>,
    return
  }
  func.func @transform_0(%arg0: i32) -> (i32, i32, i32) {
    %c0_i32 = arith.constant 0 : i32
    %c0_i32_0 = arith.constant 0 : i32
    %c0_i32_1 = arith.constant 0 : i32
    return %c0_i32, %arg0, %c0_i32_0 : i32, i32, i32
  }
  func.func @transform_1(%arg0: i32) -> (i32, i32) {
    %c0_i32 = arith.constant 0 : i32
    %c0_i32_0 = arith.constant 0 : i32
    %c0_i32_1 = arith.constant 0 : i32
    return %c0_i32, %c0_i32_0 : i32, i32
  }
  func.func @transform_2(%arg0: i32) -> (i32, i32) {
    %c0_i32 = arith.constant 0 : i32
    %c0_i32_0 = arith.constant 0 : i32
    %c0_i32_1 = arith.constant 0 : i32
    return %c0_i32, %c0_i32_0 : i32, i32
  }
  func.func @transform_3(%arg0: i32) -> (i32, i32) {
    %c0_i32 = arith.constant 0 : i32
    %c0_i32_0 = arith.constant 0 : i32
    %c0_i32_1 = arith.constant 0 : i32
    return %c0_i32, %c0_i32_0 : i32, i32
  }
  func.func @transform_4(%arg0: i32) -> (i32, i32) {
    %c0_i32 = arith.constant 0 : i32
    %c0_i32_0 = arith.constant 0 : i32
    %c0_i32_1 = arith.constant 0 : i32
    return %c0_i32, %c0_i32_0 : i32, i32
  }
  func.func @transform_5(%arg0: i32) -> (i32, i32) {
    %c0_i32 = arith.constant 0 : i32
    %c0_i32_0 = arith.constant 0 : i32
    %c0_i32_1 = arith.constant 0 : i32
    return %c0_i32, %c0_i32_0 : i32, i32
  }
  func.func @transform_6(%arg0: i32) -> (i32, i32) {
    %c0_i32 = arith.constant 0 : i32
    %c0_i32_0 = arith.constant 0 : i32
    return %arg0, %c0_i32 : i32, i32
  }
}

</mosaic_0001>

<bundles_post_ra>
// kernel: lstm_module_forward.1
= control target key start
LH: loop header
LB: loop body
LE: loop exit
PB: predicated region body
PF: predicated region fallthrough
CT: control target
= control target key end

     0   :  { %v3637_v1 = vmov 0   ;;  %vm3639_vm0 = vmmov 0   ;;  %vm2963_vm1 = vcmask 523264   ;;  %vm3037_vm2 = vcmask 39936   ;;  %s5620_s1 = inlined_call_operand.vmem [shape: bf16[128,512], index: 1, kind: input, shape index: {}]   ;;  %s5621_s0 = inlined_call_operand.vmem [shape: f32[24,8,512], index: 0, kind: input, shape index: {}]   ;;  %s5622_s2 = inlined_call_operand.vmem [shape: f32[128,64], index: 2, kind: input, shape index: {}]   ;;  %s5623_s4 = inlined_call_operand.vmem [shape: f32[64,5], index: 4, kind: input, shape index: {}]   ;;  %s5624_s3 = inlined_call_operand.vmem [shape: f32[1,64], index: 3, kind: input, shape index: {}]   ;;  %s5625_s5 = inlined_call_operand.vmem [shape: f32[1,5], index: 5, kind: input, shape index: {}]   ;;  %s5626_s6 = inlined_call_operand.vmem [shape: f32[8,5], index: 6, kind: output, shape index: {}]  }
   0x1   :  { %v3678_v0 = vld [vmem:[%s5620_s1 + $0xe4] ss:$16 sps:$4 sm:$0xff]   ;;  %252 = vmatprep.mubr.bf16.mxu0 %v3637_v1  ;;  %293 = vmatprep.mubr.bf16.mxu1 %v3637_v1  ;;  %v3685_v2 = vld [vmem:[%s5620_s1 + $0xec] ss:$16 sps:$4 sm:$0xff]   ;;  %v3691_v3 = vld [vmem:[%s5620_s1 + $0xe0] ss:$16 sps:$4 sm:$0xff]  }
   0x2   :  { %220 = vmatprep.subr.bf16.mxu0 %v3678_v0  ;;  %v3696_v4 = vld [vmem:[%s5620_s1 + $0xe8] ss:$16 sps:$4 sm:$0xff]   ;;  %261 = vmatprep.subr.bf16.mxu1 %v3685_v2  ;;  %v3702_v5 = vld [vmem:[%s5620_s1 + $0xc4] ss:$16 sps:$4 sm:$0xff]   ;;  %v3709_v6 = vld [vmem:[%s5620_s1 + $0xcc] ss:$16 sps:$4 sm:$0xff]  }
   0x3   :  { %221 = vmatpush1.bf16.msra.mxu0 %v3691_v3  ;;  %262 = vmatpush1.bf16.msra.mxu1 %v3696_v4  ;;  %v3714_v7 = vld [vmem:[%s5620_s1 + $0xc0] ss:$16 sps:$4 sm:$0xff]   ;;  %v3720_v8 = vld [vmem:[%s5620_s1 + $0xc8] ss:$16 sps:$4 sm:$0xff]   ;;  %v3726_v9 = vld [vmem:[%s5620_s1 + $0xa4] ss:$16 sps:$4 sm:$0xff]  }
   0x4   :  { %222 = vmatprep.subr.bf16.mxu0 %v3702_v5  ;;  %263 = vmatprep.subr.bf16.mxu1 %v3709_v6  ;;  %v3731_v10 = vld [vmem:[%s5620_s1 + $0xac] ss:$16 sps:$4 sm:$0xff]   ;;  %v3736_v11 = vld [vmem:[%s5620_s1 + $0xa0] ss:$16 sps:$4 sm:$0xff]   ;;  %v3741_v12 = vld [vmem:[%s5620_s1 + $0xa8] ss:$16 sps:$4 sm:$0xff]  }
   0x5   :  { %v3748_v13 = vld [vmem:[%s5620_s1 + $0x84] ss:$16 sps:$4 sm:$0xff]   ;;  %v3755_v14 = vld [vmem:[%s5620_s1 + $0x8c] ss:$16 sps:$4 sm:$0xff]   ;;  %v3760_v15 = vld [vmem:[%s5620_s1 + $0x80] ss:$16 sps:$4 sm:$0xff]  }
   0x6   :  { %v3767_v16 = vld [vmem:[%s5620_s1 + $0x88] ss:$16 sps:$4 sm:$0xff]   ;;  %v3772_v17 = vld [vmem:[%s5620_s1 + $0x64] ss:$16 sps:$4 sm:$0xff]   ;;  %v3779_v18 = vld [vmem:[%s5620_s1 + $0x6c] ss:$16 sps:$4 sm:$0xff]  }
   0x7   :  { %223 = vmatpush1.bf16.msra.mxu0 %v3714_v7  ;;  %264 = vmatpush1.bf16.msra.mxu1 %v3720_v8  ;;  %v3784_v19 = vld [vmem:[%s5620_s1 + $0x60] ss:$16 sps:$4 sm:$0xff]   ;;  %v3789_v20 = vld [vmem:[%s5620_s1 + $0x68] ss:$16 sps:$4 sm:$0xff]   ;;  %v3796_v21 = vld [vmem:[%s5620_s1 + $0x44] ss:$16 sps:$4 sm:$0xff]  }
   0x8   :  { %224 = vmatprep.subr.bf16.mxu0 %v3726_v9  ;;  %265 = vmatprep.subr.bf16.mxu1 %v3731_v10  ;;  %v3803_v22 = vld [vmem:[%s5620_s1 + $0x4c] ss:$16 sps:$4 sm:$0xff]   ;;  %v3810_v23 = vld [vmem:[%s5620_s1 + $0x40] ss:$16 sps:$4 sm:$0xff]   ;;  %v3815_v24 = vld [vmem:[%s5620_s1 + $0x48] ss:$16 sps:$4 sm:$0xff]  }
   0x9   :  { %v3822_v25 = vld [vmem:[%s5620_s1 + $0x24] ss:$16 sps:$4 sm:$0xff]   ;;  %v3827_v26 = vld [vmem:[%s5620_s1 + $0x2c] ss:$16 sps:$4 sm:$0xff]   ;;  %v3834_v27 = vld [vmem:[%s5620_s1 + $0x20] ss:$16 sps:$4 sm:$0xff]  }
   0xa   :  { %v3839_v28 = vld [vmem:[%s5620_s1 + $0x28] ss:$16 sps:$4 sm:$0xff]   ;;  %v3846_v29 = vld [vmem:[%s5620_s1 + $0x4] ss:$16 sps:$4 sm:$0xff]   ;;  %v3851_v30 = vld [vmem:[%s5620_s1 + $0xc] ss:$16 sps:$4 sm:$0xff]  }
   0xb   :  { %225 = vmatpush1.bf16.msra.mxu0 %v3736_v11  ;;  %266 = vmatpush1.bf16.msra.mxu1 %v3741_v12  ;;  %v3858_v31 = vld [vmem:[%s5620_s1] ss:$16 sps:$4 sm:$0xff]   ;;  %v3863_v32 = vld [vmem:[%s5620_s1 + $0x8] ss:$16 sps:$4 sm:$0xff]  }
   0xc   :  { %226 = vmatprep.subr.bf16.mxu0 %v3748_v13  ;;  %267 = vmatprep.subr.bf16.mxu1 %v3755_v14  ;;  %v24_v33 = vld [vmem:[%s5621_s0] sm:$0xff]  ;;  %v25_v36 = vld [vmem:[%s5621_s0 + $0x8] sm:$0xff]  ;;  %v27_v39 = vld [vmem:[%s5621_s0 + $0x18] sm:$0xff] }
   0xd   :  { %v26_v49 = vld [vmem:[%s5621_s0 + $0x10] sm:$0xff] }
   0xf   :  { %227 = vmatpush1.bf16.msra.mxu0 %v3760_v15  ;;  %268 = vmatpush1.bf16.msra.mxu1 %v3767_v16 }
  0x10   :  { %228 = vmatprep.subr.bf16.mxu0 %v3772_v17  ;;  %269 = vmatprep.subr.bf16.mxu1 %v3779_v18 }
  0x13   :  { %229 = vmatpush1.bf16.msra.mxu0 %v3784_v19  ;;  %270 = vmatpush1.bf16.msra.mxu1 %v3789_v20 }
  0x14   :  { %230 = vmatprep.subr.bf16.mxu0 %v3796_v21  ;;  %271 = vmatprep.subr.bf16.mxu1 %v3803_v22 }
  0x17   :  { %231 = vmatpush1.bf16.msra.mxu0 %v3810_v23  ;;  %272 = vmatpush1.bf16.msra.mxu1 %v3815_v24 }
  0x18   :  { %232 = vmatprep.subr.bf16.mxu0 %v3822_v25  ;;  %273 = vmatprep.subr.bf16.mxu1 %v3827_v26 }
  0x1b   :  { %233 = vmatpush1.bf16.msra.mxu0 %v3834_v27  ;;  %274 = vmatpush1.bf16.msra.mxu1 %v3839_v28 }
  0x1c   :  { %234 = vmatprep.subr.bf16.mxu0 %v3846_v29  ;;  %275 = vmatprep.subr.bf16.mxu1 %v3851_v30 }
  0x1f   :  { %235 = vmatpush1.bf16.msra.mxu0 %v3858_v31  ;;  %276 = vmatpush1.bf16.msra.mxu1 %v3863_v32 }
  0x20   :  { %330 = vmatprep.subr.bf16.mxu0 %v3678_v0  ;;  %371 = vmatprep.subr.bf16.mxu1 %v3685_v2 }
  0x22   :  { %253 = vmatmul.mubr.bf16.vlgmr.msra.gmra.mxu0 %v3637_v1  ;;  %294 = vmatmul.mubr.bf16.vlgmr.msra.gmra.mxu1 %v3637_v1 }
  0x23   :  { %331 = vmatpush1.bf16.msra.mxu0 %v3691_v3  ;;  %372 = vmatpush1.bf16.msra.mxu1 %v3696_v4 }
  0x24   :  { %332 = vmatprep.subr.bf16.mxu0 %v3702_v5  ;;  %373 = vmatprep.subr.bf16.mxu1 %v3709_v6 }
  0x25   :  { %362 = vmatprep.mubr.bf16.mxu0 %v3637_v1  ;;  %403 = vmatprep.mubr.bf16.mxu1 %v3637_v1 }
  0x27   :  { %333 = vmatpush1.bf16.msra.mxu0 %v3714_v7  ;;  %374 = vmatpush1.bf16.msra.mxu1 %v3720_v8 }
  0x28   :  { %334 = vmatprep.subr.bf16.mxu0 %v3726_v9  ;;  %375 = vmatprep.subr.bf16.mxu1 %v3731_v10 }
  0x2b   :  { %335 = vmatpush1.bf16.msra.mxu0 %v3736_v11  ;;  %376 = vmatpush1.bf16.msra.mxu1 %v3741_v12 }
  0x2c   :  { %336 = vmatprep.subr.bf16.mxu0 %v3748_v13  ;;  %377 = vmatprep.subr.bf16.mxu1 %v3755_v14 }
  0x2f   :  { %337 = vmatpush1.bf16.msra.mxu0 %v3760_v15  ;;  %378 = vmatpush1.bf16.msra.mxu1 %v3767_v16 }
  0x30   :  { %338 = vmatprep.subr.bf16.mxu0 %v3772_v17  ;;  %379 = vmatprep.subr.bf16.mxu1 %v3779_v18 }
  0x33   :  { %339 = vmatpush1.bf16.msra.mxu0 %v3784_v19  ;;  %380 = vmatpush1.bf16.msra.mxu1 %v3789_v20 }
  0x34   :  { %340 = vmatprep.subr.bf16.mxu0 %v3796_v21  ;;  %381 = vmatprep.subr.bf16.mxu1 %v3803_v22 }
  0x37   :  { %341 = vmatpush1.bf16.msra.mxu0 %v3810_v23  ;;  %382 = vmatpush1.bf16.msra.mxu1 %v3815_v24 }
  0x38   :  { %342 = vmatprep.subr.bf16.mxu0 %v3822_v25  ;;  %383 = vmatprep.subr.bf16.mxu1 %v3827_v26 }
  0x3b   :  { %343 = vmatpush1.bf16.msra.mxu0 %v3834_v27  ;;  %384 = vmatpush1.bf16.msra.mxu1 %v3839_v28 }
  0x3c   :  { %344 = vmatprep.subr.bf16.mxu0 %v3846_v29  ;;  %385 = vmatprep.subr.bf16.mxu1 %v3851_v30 }
  0x3f   :  { %345 = vmatpush1.bf16.msra.mxu0 %v3858_v31  ;;  %386 = vmatpush1.bf16.msra.mxu1 %v3863_v32 }
  0x40   :  { %440 = vmatprep.subr.bf16.mxu0 %v3678_v0  ;;  %481 = vmatprep.subr.bf16.mxu1 %v3685_v2 }
  0xe2   :  { %v254_v34 = vpop.f32.mrf.mxu0  ;;  %v295_v35 = vpop.f32.mrf.mxu1 }
  0xe3   :  { %v302_v37 = vadd.f32 %v254_v34, %v24_v33  ;;  %v304_v50 = vadd.f32 %v295_v35, %v26_v49 }
  0xe4   :  { %v256_v38 = vpop.f32.mrf.mxu0  ;;  %v297_v40 = vpop.f32.mrf.mxu1 }
  0xe5   :  { %v306_v41 = vmul.f32 0.5, %v302_v37  ;;  %v303_v42 = vadd.f32 %v256_v38, %v25_v36  ;;  %v305_v46 = vadd.f32 %v297_v40, %v27_v39  ;;  %v308_v51 = vmul.f32 0.5, %v304_v50  ;;  %v3075_v37 = vld [vmem:[%s5621_s0 + $0x20] sm:$0xff]  ;;  %v3076_v40 = vld [vmem:[%s5621_s0 + $0x28] sm:$0xff] }
  0xe6   :  { %v258_v43 = vpop.f32.mrf.mxu0  ;;  %v299_v44 = vpop.f32.mrf.mxu1 }
  0xe7   :  { %3301 = vtanh.f32 %v306_v41  ;;  %v307_v45 = vmul.f32 0.5, %v303_v42 }
  0xe8   :  { %v259_v47 = vpop.f32.mrf.mxu0  ;;  %v300_v48 = vpop.f32.mrf.mxu1 }
  0xe9   :  { %3303 = vtanh.f32 %v307_v45 }
  0xea   :  { %3305 = vtanh.f32 %v305_v46  ;;  %v3078_v46 = vld [vmem:[%s5621_s0 + $0x38] sm:$0xff] }
  0xeb   :  { %3307 = vtanh.f32 %v308_v51 }
  0xf4   :  { %v3302_v52 = vpop.eup %3301 }
  0xf5   :  { %v312_v53 = vmul.f32 0.5, %v3302_v52 }
  0xf6   :  { %v3304_v54 = vpop.eup %3303 }
  0xf7   :  { %v315_v55 = vadd.f32 0.5, %v312_v53  ;;  %v313_v56 = vmul.f32 0.5, %v3304_v54  ;;  %v3306_v57 = vpop.eup %3305  ;;  %v3077_v53 = vld [vmem:[%s5621_s0 + $0x30] sm:$0xff] }
  0xf8   :  { %v3308_v62 = vpop.eup %3307 }
  0xf9   :  { %v316_v58 = vadd.f32 0.5, %v313_v56  ;;  %v320_v60 = vmul.f32 %v3306_v57, %v315_v55  ;;  %v314_v63 = vmul.f32 0.5, %v3308_v62 }
  0xfb   :  { %v319_v59 = vmul.f32 0.0, %v316_v58  ;;  %v317_v33 = vadd.f32 0.5, %v314_v63 }
  0xfd   :  { %v3919_v61 = vadd.f32 %v320_v60, %v319_v59 }
  0xff   :  { %3309 = vtanh.f32 %v3919_v61 }
 0x10c   :  { %v3310_v34 = vpop.eup %3309 }
 0x10d   :  { %v323_v35 = vmul.f32 %v3310_v34, %v317_v33 }
 0x10f   :  { %v329_v36 = vpack.c.bf16 %v323_v35, %v323_v35 }
 0x111   :  { %363 = vmatmul.mubr.bf16.vlgmr.msra.gmra.mxu0 %v329_v36  ;;  %404 = vmatmul.mubr.bf16.vlgmr.msra.gmra.mxu1 %v329_v36 }
 0x112   :  { %441 = vmatpush1.bf16.msra.mxu0 %v3691_v3  ;;  %482 = vmatpush1.bf16.msra.mxu1 %v3696_v4 }
 0x113   :  { %442 = vmatprep.subr.bf16.mxu0 %v3702_v5  ;;  %483 = vmatprep.subr.bf16.mxu1 %v3709_v6 }
 0x114   :  { %472 = vmatprep.mubr.bf16.mxu0 %v3637_v1  ;;  %513 = vmatprep.mubr.bf16.mxu1 %v3637_v1 }
 0x116   :  { %443 = vmatpush1.bf16.msra.mxu0 %v3714_v7  ;;  %484 = vmatpush1.bf16.msra.mxu1 %v3720_v8 }
 0x117   :  { %444 = vmatprep.subr.bf16.mxu0 %v3726_v9  ;;  %485 = vmatprep.subr.bf16.mxu1 %v3731_v10 }
 0x11a   :  { %445 = vmatpush1.bf16.msra.mxu0 %v3736_v11  ;;  %486 = vmatpush1.bf16.msra.mxu1 %v3741_v12 }
 0x11b   :  { %446 = vmatprep.subr.bf16.mxu0 %v3748_v13  ;;  %487 = vmatprep.subr.bf16.mxu1 %v3755_v14 }
 0x11e   :  { %447 = vmatpush1.bf16.msra.mxu0 %v3760_v15  ;;  %488 = vmatpush1.bf16.msra.mxu1 %v3767_v16 }
 0x11f   :  { %448 = vmatprep.subr.bf16.mxu0 %v3772_v17  ;;  %489 = vmatprep.subr.bf16.mxu1 %v3779_v18 }
 0x122   :  { %449 = vmatpush1.bf16.msra.mxu0 %v3784_v19  ;;  %490 = vmatpush1.bf16.msra.mxu1 %v3789_v20 }
 0x123   :  { %450 = vmatprep.subr.bf16.mxu0 %v3796_v21  ;;  %491 = vmatprep.subr.bf16.mxu1 %v3803_v22 }
 0x126   :  { %451 = vmatpush1.bf16.msra.mxu0 %v3810_v23  ;;  %492 = vmatpush1.bf16.msra.mxu1 %v3815_v24 }
 0x127   :  { %452 = vmatprep.subr.bf16.mxu0 %v3822_v25  ;;  %493 = vmatprep.subr.bf16.mxu1 %v3827_v26 }
 0x12a   :  { %453 = vmatpush1.bf16.msra.mxu0 %v3834_v27  ;;  %494 = vmatpush1.bf16.msra.mxu1 %v3839_v28 }
 0x12b   :  { %454 = vmatprep.subr.bf16.mxu0 %v3846_v29  ;;  %495 = vmatprep.subr.bf16.mxu1 %v3851_v30 }
 0x12e   :  { %455 = vmatpush1.bf16.msra.mxu0 %v3858_v31  ;;  %496 = vmatpush1.bf16.msra.mxu1 %v3863_v32 }
 0x12f   :  { %550 = vmatprep.subr.bf16.mxu0 %v3678_v0  ;;  %591 = vmatprep.subr.bf16.mxu1 %v3685_v2 }
 0x1d1   :  { %v364_v38 = vpop.f32.mrf.mxu0  ;;  %v405_v39 = vpop.f32.mrf.mxu1 }
 0x1d2   :  { %v412_v41 = vadd.f32 %v3075_v37, %v364_v38  ;;  %v414_v54 = vadd.f32 %v3077_v53, %v405_v39 }
 0x1d3   :  { %v366_v42 = vpop.f32.mrf.mxu0  ;;  %v407_v43 = vpop.f32.mrf.mxu1 }
 0x1d4   :  { %v416_v44 = vmul.f32 0.5, %v412_v41  ;;  %v413_v45 = vadd.f32 %v3076_v40, %v366_v42  ;;  %v415_v52 = vadd.f32 %v3078_v46, %v407_v43  ;;  %v418_v55 = vmul.f32 0.5, %v414_v54 }
 0x1d5   :  { %v368_v47 = vpop.f32.mrf.mxu0  ;;  %v409_v48 = vpop.f32.mrf.mxu1 }
 0x1d6   :  { %3311 = vtanh.f32 %v416_v44  ;;  %v417_v49 = vmul.f32 0.5, %v413_v45  ;;  %v3080_v44 = vld [vmem:[%s5621_s0 + $0x48] sm:$0xff] }
 0x1d7   :  { %v369_v50 = vpop.f32.mrf.mxu0  ;;  %v410_v51 = vpop.f32.mrf.mxu1 }
 0x1d8   :  { %3313 = vtanh.f32 %v417_v49  ;;  %v3082_v50 = vld [vmem:[%s5621_s0 + $0x58] sm:$0xff] }
 0x1d9   :  { %3315 = vtanh.f32 %v415_v52 }
 0x1da   :  { %3317 = vtanh.f32 %v418_v55 }
 0x1e3   :  { %v3312_v56 = vpop.eup %3311 }
 0x1e4   :  { %v422_v57 = vmul.f32 0.5, %v3312_v56 }
 0x1e5   :  { %v3314_v58 = vpop.eup %3313 }
 0x1e6   :  { %v425_v59 = vadd.f32 0.5, %v422_v57  ;;  %v423_v60 = vmul.f32 0.5, %v3314_v58  ;;  %v3316_v63 = vpop.eup %3315  ;;  %v3081_v57 = vld [vmem:[%s5621_s0 + $0x50] sm:$0xff] }
 0x1e7   :  { %v3318_v36 = vpop.eup %3317 }
 0x1e8   :  { %v426_v62 = vadd.f32 0.5, %v423_v60  ;;  %v430_v34 = vmul.f32 %v3316_v63, %v425_v59  ;;  %v424_v37 = vmul.f32 0.5, %v3318_v36 }
 0x1ea   :  { %v429_v33 = vmul.f32 %v426_v62, %v3919_v61  ;;  %v427_v38 = vadd.f32 0.5, %v424_v37  ;;  %v3079_v61 = vld [vmem:[%s5621_s0 + $0x40] sm:$0xff] }
 0x1ec   :  { %v3969_v35 = vadd.f32 %v430_v34, %v429_v33 }
 0x1ee   :  { %3319 = vtanh.f32 %v3969_v35 }
 0x1fb   :  { %v3320_v39 = vpop.eup %3319 }
 0x1fc   :  { %v433_v40 = vmul.f32 %v3320_v39, %v427_v38 }
 0x1fe   :  { %v439_v41 = vpack.c.bf16 %v433_v40, %v433_v40 }
 0x200   :  { %473 = vmatmul.mubr.bf16.vlgmr.msra.gmra.mxu0 %v439_v41  ;;  %514 = vmatmul.mubr.bf16.vlgmr.msra.gmra.mxu1 %v439_v41 }
 0x201   :  { %551 = vmatpush1.bf16.msra.mxu0 %v3691_v3  ;;  %592 = vmatpush1.bf16.msra.mxu1 %v3696_v4 }
 0x202   :  { %552 = vmatprep.subr.bf16.mxu0 %v3702_v5  ;;  %593 = vmatprep.subr.bf16.mxu1 %v3709_v6 }
 0x203   :  { %582 = vmatprep.mubr.bf16.mxu0 %v3637_v1  ;;  %623 = vmatprep.mubr.bf16.mxu1 %v3637_v1 }
 0x205   :  { %553 = vmatpush1.bf16.msra.mxu0 %v3714_v7  ;;  %594 = vmatpush1.bf16.msra.mxu1 %v3720_v8 }
 0x206   :  { %554 = vmatprep.subr.bf16.mxu0 %v3726_v9  ;;  %595 = vmatprep.subr.bf16.mxu1 %v3731_v10 }
 0x209   :  { %555 = vmatpush1.bf16.msra.mxu0 %v3736_v11  ;;  %596 = vmatpush1.bf16.msra.mxu1 %v3741_v12 }
 0x20a   :  { %556 = vmatprep.subr.bf16.mxu0 %v3748_v13  ;;  %597 = vmatprep.subr.bf16.mxu1 %v3755_v14 }
 0x20d   :  { %557 = vmatpush1.bf16.msra.mxu0 %v3760_v15  ;;  %598 = vmatpush1.bf16.msra.mxu1 %v3767_v16 }
 0x20e   :  { %558 = vmatprep.subr.bf16.mxu0 %v3772_v17  ;;  %599 = vmatprep.subr.bf16.mxu1 %v3779_v18 }
 0x211   :  { %559 = vmatpush1.bf16.msra.mxu0 %v3784_v19  ;;  %600 = vmatpush1.bf16.msra.mxu1 %v3789_v20 }
 0x212   :  { %560 = vmatprep.subr.bf16.mxu0 %v3796_v21  ;;  %601 = vmatprep.subr.bf16.mxu1 %v3803_v22 }
 0x215   :  { %561 = vmatpush1.bf16.msra.mxu0 %v3810_v23  ;;  %602 = vmatpush1.bf16.msra.mxu1 %v3815_v24 }
 0x216   :  { %562 = vmatprep.subr.bf16.mxu0 %v3822_v25  ;;  %603 = vmatprep.subr.bf16.mxu1 %v3827_v26 }
 0x219   :  { %563 = vmatpush1.bf16.msra.mxu0 %v3834_v27  ;;  %604 = vmatpush1.bf16.msra.mxu1 %v3839_v28 }
 0x21a   :  { %564 = vmatprep.subr.bf16.mxu0 %v3846_v29  ;;  %605 = vmatprep.subr.bf16.mxu1 %v3851_v30 }
 0x21d   :  { %565 = vmatpush1.bf16.msra.mxu0 %v3858_v31  ;;  %606 = vmatpush1.bf16.msra.mxu1 %v3863_v32 }
 0x21e   :  { %660 = vmatprep.subr.bf16.mxu0 %v3678_v0  ;;  %701 = vmatprep.subr.bf16.mxu1 %v3685_v2 }
 0x2c0   :  { %v474_v42 = vpop.f32.mrf.mxu0  ;;  %v515_v43 = vpop.f32.mrf.mxu1 }
 0x2c1   :  { %v522_v45 = vadd.f32 %v3079_v61, %v474_v42  ;;  %v524_v58 = vadd.f32 %v3081_v57, %v515_v43 }
 0x2c2   :  { %v476_v46 = vpop.f32.mrf.mxu0  ;;  %v517_v47 = vpop.f32.mrf.mxu1 }
 0x2c3   :  { %v526_v48 = vmul.f32 0.5, %v522_v45  ;;  %v523_v49 = vadd.f32 %v3080_v44, %v476_v46  ;;  %v525_v56 = vadd.f32 %v3082_v50, %v517_v47  ;;  %v528_v59 = vmul.f32 0.5, %v524_v58 }
 0x2c4   :  { %v478_v51 = vpop.f32.mrf.mxu0  ;;  %v519_v52 = vpop.f32.mrf.mxu1 }
 0x2c5   :  { %3321 = vtanh.f32 %v526_v48  ;;  %v527_v53 = vmul.f32 0.5, %v523_v49  ;;  %v3084_v48 = vld [vmem:[%s5621_s0 + $0x68] sm:$0xff] }
 0x2c6   :  { %v479_v54 = vpop.f32.mrf.mxu0  ;;  %v520_v55 = vpop.f32.mrf.mxu1 }
 0x2c7   :  { %3323 = vtanh.f32 %v527_v53  ;;  %v3086_v54 = vld [vmem:[%s5621_s0 + $0x78] sm:$0xff] }
 0x2c8   :  { %3325 = vtanh.f32 %v525_v56 }
 0x2c9   :  { %3327 = vtanh.f32 %v528_v59 }
 0x2d2   :  { %v3322_v60 = vpop.eup %3321 }
 0x2d3   :  { %v532_v62 = vmul.f32 0.5, %v3322_v60 }
 0x2d4   :  { %v3324_v63 = vpop.eup %3323 }
 0x2d5   :  { %v535_v33 = vadd.f32 0.5, %v532_v62  ;;  %v533_v34 = vmul.f32 0.5, %v3324_v63  ;;  %v3326_v37 = vpop.eup %3325  ;;  %v3085_v62 = vld [vmem:[%s5621_s0 + $0x70] sm:$0xff] }
 0x2d6   :  { %v3328_v41 = vpop.eup %3327 }
 0x2d7   :  { %v536_v36 = vadd.f32 0.5, %v533_v34  ;;  %v540_v39 = vmul.f32 %v3326_v37, %v535_v33  ;;  %v534_v61 = vmul.f32 0.5, %v3328_v41 }
 0x2d9   :  { %v539_v38 = vmul.f32 %v536_v36, %v3969_v35  ;;  %v537_v42 = vadd.f32 0.5, %v534_v61  ;;  %v3083_v35 = vld [vmem:[%s5621_s0 + $0x60] sm:$0xff] }
 0x2db   :  { %v4019_v40 = vadd.f32 %v540_v39, %v539_v38 }
 0x2dd   :  { %3329 = vtanh.f32 %v4019_v40 }
 0x2ea   :  { %v3330_v43 = vpop.eup %3329 }
 0x2eb   :  { %v543_v44 = vmul.f32 %v3330_v43, %v537_v42 }
 0x2ed   :  { %v549_v45 = vpack.c.bf16 %v543_v44, %v543_v44 }
 0x2ef   :  { %583 = vmatmul.mubr.bf16.vlgmr.msra.gmra.mxu0 %v549_v45  ;;  %624 = vmatmul.mubr.bf16.vlgmr.msra.gmra.mxu1 %v549_v45 }
 0x2f0   :  { %661 = vmatpush1.bf16.msra.mxu0 %v3691_v3  ;;  %702 = vmatpush1.bf16.msra.mxu1 %v3696_v4 }
 0x2f1   :  { %662 = vmatprep.subr.bf16.mxu0 %v3702_v5  ;;  %703 = vmatprep.subr.bf16.mxu1 %v3709_v6 }
 0x2f2   :  { %692 = vmatprep.mubr.bf16.mxu0 %v3637_v1  ;;  %733 = vmatprep.mubr.bf16.mxu1 %v3637_v1 }
 0x2f4   :  { %663 = vmatpush1.bf16.msra.mxu0 %v3714_v7  ;;  %704 = vmatpush1.bf16.msra.mxu1 %v3720_v8 }
 0x2f5   :  { %664 = vmatprep.subr.bf16.mxu0 %v3726_v9  ;;  %705 = vmatprep.subr.bf16.mxu1 %v3731_v10 }
 0x2f8   :  { %665 = vmatpush1.bf16.msra.mxu0 %v3736_v11  ;;  %706 = vmatpush1.bf16.msra.mxu1 %v3741_v12 }
 0x2f9   :  { %666 = vmatprep.subr.bf16.mxu0 %v3748_v13  ;;  %707 = vmatprep.subr.bf16.mxu1 %v3755_v14 }
 0x2fc   :  { %667 = vmatpush1.bf16.msra.mxu0 %v3760_v15  ;;  %708 = vmatpush1.bf16.msra.mxu1 %v3767_v16 }
 0x2fd   :  { %668 = vmatprep.subr.bf16.mxu0 %v3772_v17  ;;  %709 = vmatprep.subr.bf16.mxu1 %v3779_v18 }
 0x300   :  { %669 = vmatpush1.bf16.msra.mxu0 %v3784_v19  ;;  %710 = vmatpush1.bf16.msra.mxu1 %v3789_v20 }
 0x301   :  { %670 = vmatprep.subr.bf16.mxu0 %v3796_v21  ;;  %711 = vmatprep.subr.bf16.mxu1 %v3803_v22 }
 0x304   :  { %671 = vmatpush1.bf16.msra.mxu0 %v3810_v23  ;;  %712 = vmatpush1.bf16.msra.mxu1 %v3815_v24 }
 0x305   :  { %672 = vmatprep.subr.bf16.mxu0 %v3822_v25  ;;  %713 = vmatprep.subr.bf16.mxu1 %v3827_v26 }
 0x308   :  { %673 = vmatpush1.bf16.msra.mxu0 %v3834_v27  ;;  %714 = vmatpush1.bf16.msra.mxu1 %v3839_v28 }
 0x309   :  { %674 = vmatprep.subr.bf16.mxu0 %v3846_v29  ;;  %715 = vmatprep.subr.bf16.mxu1 %v3851_v30 }
 0x30c   :  { %675 = vmatpush1.bf16.msra.mxu0 %v3858_v31  ;;  %716 = vmatpush1.bf16.msra.mxu1 %v3863_v32 }
 0x30d   :  { %770 = vmatprep.subr.bf16.mxu0 %v3678_v0  ;;  %811 = vmatprep.subr.bf16.mxu1 %v3685_v2 }
 0x3af   :  { %v584_v46 = vpop.f32.mrf.mxu0  ;;  %v625_v47 = vpop.f32.mrf.mxu1 }
 0x3b0   :  { %v632_v49 = vadd.f32 %v3083_v35, %v584_v46  ;;  %v634_v63 = vadd.f32 %v3085_v62, %v625_v47 }
 0x3b1   :  { %v586_v50 = vpop.f32.mrf.mxu0  ;;  %v627_v51 = vpop.f32.mrf.mxu1 }
 0x3b2   :  { %v636_v52 = vmul.f32 0.5, %v632_v49  ;;  %v633_v53 = vadd.f32 %v3084_v48, %v586_v50  ;;  %v635_v60 = vadd.f32 %v3086_v54, %v627_v51  ;;  %v638_v33 = vmul.f32 0.5, %v634_v63 }
 0x3b3   :  { %v588_v55 = vpop.f32.mrf.mxu0  ;;  %v629_v56 = vpop.f32.mrf.mxu1 }
 0x3b4   :  { %3331 = vtanh.f32 %v636_v52  ;;  %v637_v57 = vmul.f32 0.5, %v633_v53  ;;  %v3088_v52 = vld [vmem:[%s5621_s0 + $0x88] sm:$0xff] }
 0x3b5   :  { %v589_v58 = vpop.f32.mrf.mxu0  ;;  %v630_v59 = vpop.f32.mrf.mxu1 }
 0x3b6   :  { %3333 = vtanh.f32 %v637_v57 }
 0x3b7   :  { %3335 = vtanh.f32 %v635_v60 }
 0x3b8   :  { %3337 = vtanh.f32 %v638_v33 }
 0x3c1   :  { %v3332_v34 = vpop.eup %3331 }
 0x3c2   :  { %v642_v36 = vmul.f32 0.5, %v3332_v34  ;;  %v3089_v34 = vld [vmem:[%s5621_s0 + $0x90] sm:$0xff] }
 0x3c3   :  { %v3334_v37 = vpop.eup %3333 }
 0x3c4   :  { %v645_v38 = vadd.f32 0.5, %v642_v36  ;;  %v643_v39 = vmul.f32 0.5, %v3334_v37  ;;  %v3336_v61 = vpop.eup %3335 }
 0x3c5   :  { %v3338_v45 = vpop.eup %3337 }
 0x3c6   :  { %v646_v41 = vadd.f32 0.5, %v643_v39  ;;  %v650_v43 = vmul.f32 %v3336_v61, %v645_v38  ;;  %v644_v35 = vmul.f32 0.5, %v3338_v45 }
 0x3c8   :  { %v649_v42 = vmul.f32 %v646_v41, %v4019_v40  ;;  %v647_v46 = vadd.f32 0.5, %v644_v35  ;;  %v3087_v40 = vld [vmem:[%s5621_s0 + $0x80] sm:$0xff] }
 0x3ca   :  { %v4069_v44 = vadd.f32 %v650_v43, %v649_v42 }
 0x3cc   :  { %3339 = vtanh.f32 %v4069_v44 }
 0x3d9   :  { %v3340_v47 = vpop.eup %3339 }
 0x3da   :  { %v653_v48 = vmul.f32 %v3340_v47, %v647_v46 }
 0x3dc   :  { %v659_v49 = vpack.c.bf16 %v653_v48, %v653_v48 }
 0x3de   :  { %693 = vmatmul.mubr.bf16.vlgmr.msra.gmra.mxu0 %v659_v49  ;;  %734 = vmatmul.mubr.bf16.vlgmr.msra.gmra.mxu1 %v659_v49 }
 0x3df   :  { %771 = vmatpush1.bf16.msra.mxu0 %v3691_v3  ;;  %812 = vmatpush1.bf16.msra.mxu1 %v3696_v4 }
 0x3e0   :  { %772 = vmatprep.subr.bf16.mxu0 %v3702_v5  ;;  %813 = vmatprep.subr.bf16.mxu1 %v3709_v6 }
 0x3e1   :  { %802 = vmatprep.mubr.bf16.mxu0 %v3637_v1  ;;  %843 = vmatprep.mubr.bf16.mxu1 %v3637_v1 }
 0x3e3   :  { %773 = vmatpush1.bf16.msra.mxu0 %v3714_v7  ;;  %814 = vmatpush1.bf16.msra.mxu1 %v3720_v8 }
 0x3e4   :  { %774 = vmatprep.subr.bf16.mxu0 %v3726_v9  ;;  %815 = vmatprep.subr.bf16.mxu1 %v3731_v10 }
 0x3e7   :  { %775 = vmatpush1.bf16.msra.mxu0 %v3736_v11  ;;  %816 = vmatpush1.bf16.msra.mxu1 %v3741_v12 }
 0x3e8   :  { %776 = vmatprep.subr.bf16.mxu0 %v3748_v13  ;;  %817 = vmatprep.subr.bf16.mxu1 %v3755_v14 }
 0x3eb   :  { %777 = vmatpush1.bf16.msra.mxu0 %v3760_v15  ;;  %818 = vmatpush1.bf16.msra.mxu1 %v3767_v16 }
 0x3ec   :  { %778 = vmatprep.subr.bf16.mxu0 %v3772_v17  ;;  %819 = vmatprep.subr.bf16.mxu1 %v3779_v18 }
 0x3ef   :  { %779 = vmatpush1.bf16.msra.mxu0 %v3784_v19  ;;  %820 = vmatpush1.bf16.msra.mxu1 %v3789_v20 }
 0x3f0   :  { %780 = vmatprep.subr.bf16.mxu0 %v3796_v21  ;;  %821 = vmatprep.subr.bf16.mxu1 %v3803_v22 }
 0x3f3   :  { %781 = vmatpush1.bf16.msra.mxu0 %v3810_v23  ;;  %822 = vmatpush1.bf16.msra.mxu1 %v3815_v24 }
 0x3f4   :  { %782 = vmatprep.subr.bf16.mxu0 %v3822_v25  ;;  %823 = vmatprep.subr.bf16.mxu1 %v3827_v26 }
 0x3f7   :  { %783 = vmatpush1.bf16.msra.mxu0 %v3834_v27  ;;  %824 = vmatpush1.bf16.msra.mxu1 %v3839_v28 }
 0x3f8   :  { %784 = vmatprep.subr.bf16.mxu0 %v3846_v29  ;;  %825 = vmatprep.subr.bf16.mxu1 %v3851_v30 }
 0x3fb   :  { %785 = vmatpush1.bf16.msra.mxu0 %v3858_v31  ;;  %826 = vmatpush1.bf16.msra.mxu1 %v3863_v32 }
 0x3fc   :  { %880 = vmatprep.subr.bf16.mxu0 %v3678_v0  ;;  %921 = vmatprep.subr.bf16.mxu1 %v3685_v2  ;;  %v3090_v0 = vld [vmem:[%s5621_s0 + $0x98] sm:$0xff] }
 0x49e   :  { %v694_v50 = vpop.f32.mrf.mxu0  ;;  %v735_v51 = vpop.f32.mrf.mxu1 }
 0x49f   :  { %v742_v53 = vadd.f32 %v3087_v40, %v694_v50  ;;  %v744_v36 = vadd.f32 %v3089_v34, %v735_v51 }
 0x4a0   :  { %v696_v54 = vpop.f32.mrf.mxu0  ;;  %v737_v55 = vpop.f32.mrf.mxu1 }
 0x4a1   :  { %v746_v56 = vmul.f32 0.5, %v742_v53  ;;  %v743_v57 = vadd.f32 %v3088_v52, %v696_v54  ;;  %v745_v33 = vadd.f32 %v3090_v0, %v737_v55  ;;  %v748_v37 = vmul.f32 0.5, %v744_v36 }
 0x4a2   :  { %v698_v58 = vpop.f32.mrf.mxu0  ;;  %v739_v59 = vpop.f32.mrf.mxu1 }
 0x4a3   :  { %3341 = vtanh.f32 %v746_v56  ;;  %v747_v60 = vmul.f32 0.5, %v743_v57 }
 0x4a4   :  { %v699_v62 = vpop.f32.mrf.mxu0  ;;  %v740_v63 = vpop.f32.mrf.mxu1 }
 0x4a5   :  { %3343 = vtanh.f32 %v747_v60 }
 0x4a6   :  { %3345 = vtanh.f32 %v745_v33 }
 0x4a7   :  { %3347 = vtanh.f32 %v748_v37  ;;  %v4180_v37 = vld [vmem:[%s5620_s1 + $0xe0] ss:$16 sps:$4 sm:$0xff]  }
 0x4b0   :  { %v3342_v38 = vpop.eup %3341 }
 0x4b1   :  { %v752_v39 = vmul.f32 0.5, %v3342_v38  ;;  %v4186_v38 = vld [vmem:[%s5620_s1 + $0xe8] ss:$16 sps:$4 sm:$0xff]  }
 0x4b2   :  { %v3344_v41 = vpop.eup %3343 }
 0x4b3   :  { %v755_v61 = vadd.f32 0.5, %v752_v39  ;;  %v753_v42 = vmul.f32 0.5, %v3344_v41  ;;  %v3346_v45 = vpop.eup %3345  ;;  %v4192_v39 = vld [vmem:[%s5620_s1 + $0xc4] ss:$16 sps:$4 sm:$0xff]   ;;  %v4198_v41 = vld [vmem:[%s5620_s1 + $0xcc] ss:$16 sps:$4 sm:$0xff]  }
 0x4b4   :  { %v3348_v48 = vpop.eup %3347 }
 0x4b5   :  { %v756_v43 = vadd.f32 0.5, %v753_v42  ;;  %v760_v46 = vmul.f32 %v3346_v45, %v755_v61  ;;  %v754_v49 = vmul.f32 0.5, %v3348_v48  ;;  %v4206_v61 = vld [vmem:[%s5620_s1 + $0xc0] ss:$16 sps:$4 sm:$0xff]   ;;  %v4212_v42 = vld [vmem:[%s5620_s1 + $0xc8] ss:$16 sps:$4 sm:$0xff]  }
 0x4b6   :  { %v4224_v45 = vld [vmem:[%s5620_s1 + $0xac] ss:$16 sps:$4 sm:$0xff]  }
 0x4b7   :  { %v759_v35 = vmul.f32 %v756_v43, %v4069_v44  ;;  %v757_v40 = vadd.f32 0.5, %v754_v49  ;;  %v4218_v43 = vld [vmem:[%s5620_s1 + $0xa4] ss:$16 sps:$4 sm:$0xff]   ;;  %v4248_v48 = vld [vmem:[%s5620_s1 + $0x8c] ss:$16 sps:$4 sm:$0xff]  }
 0x4b8   :  { %v4254_v49 = vld [vmem:[%s5620_s1 + $0x80] ss:$16 sps:$4 sm:$0xff]  }
 0x4b9   :  { %v4119_v47 = vadd.f32 %v760_v46, %v759_v35  ;;  %v4230_v35 = vld [vmem:[%s5620_s1 + $0xa0] ss:$16 sps:$4 sm:$0xff]   ;;  %v4236_v46 = vld [vmem:[%s5620_s1 + $0xa8] ss:$16 sps:$4 sm:$0xff]  }
 0x4bb   :  { %3349 = vtanh.f32 %v4119_v47 }
 0x4c8   :  { %v3350_v50 = vpop.eup %3349 }
 0x4c9   :  { %v763_v51 = vmul.f32 %v3350_v50, %v757_v40  ;;  %v4260_v40 = vld [vmem:[%s5620_s1 + $0x88] ss:$16 sps:$4 sm:$0xff]   ;;  %v4266_v50 = vld [vmem:[%s5620_s1 + $0x64] ss:$16 sps:$4 sm:$0xff]  }
 0x4cb   :  { %v769_v52 = vpack.c.bf16 %v763_v51, %v763_v51  ;;  %v4272_v51 = vld [vmem:[%s5620_s1 + $0x6c] ss:$16 sps:$4 sm:$0xff]  }
 0x4cd   :  { %803 = vmatmul.mubr.bf16.vlgmr.msra.gmra.mxu0 %v769_v52  ;;  %844 = vmatmul.mubr.bf16.vlgmr.msra.gmra.mxu1 %v769_v52  ;;  %v4278_v52 = vld [vmem:[%s5620_s1 + $0x60] ss:$16 sps:$4 sm:$0xff]  }
 0x4ce   :  { %881 = vmatpush1.bf16.msra.mxu0 %v3691_v3  ;;  %922 = vmatpush1.bf16.msra.mxu1 %v3696_v4  ;;  %v4157_v3 = vld [vmem:[%s5620_s1 + $0xe4] ss:$16 sps:$4 sm:$0xff]  }
 0x4cf   :  { %882 = vmatprep.subr.bf16.mxu0 %v3702_v5  ;;  %923 = vmatprep.subr.bf16.mxu1 %v3709_v6  ;;  %v3091_v4 = vld [vmem:[%s5621_s0 + $0xa0] sm:$0xff] }
 0x4d0   :  { %912 = vmatprep.mubr.bf16.mxu0 %v3637_v1  ;;  %953 = vmatprep.mubr.bf16.mxu1 %v3637_v1 }
 0x4d2   :  { %883 = vmatpush1.bf16.msra.mxu0 %v3714_v7  ;;  %924 = vmatpush1.bf16.msra.mxu1 %v3720_v8  ;;  %v3092_v7 = vld [vmem:[%s5621_s0 + $0xa8] sm:$0xff] }
 0x4d3   :  { %884 = vmatprep.subr.bf16.mxu0 %v3726_v9  ;;  %925 = vmatprep.subr.bf16.mxu1 %v3731_v10 }
 0x4d6   :  { %885 = vmatpush1.bf16.msra.mxu0 %v3736_v11  ;;  %926 = vmatpush1.bf16.msra.mxu1 %v3741_v12 }
 0x4d7   :  { %886 = vmatprep.subr.bf16.mxu0 %v3748_v13  ;;  %927 = vmatprep.subr.bf16.mxu1 %v3755_v14  ;;  %v3094_v13 = vld [vmem:[%s5621_s0 + $0xb8] sm:$0xff] }
 0x4da   :  { %887 = vmatpush1.bf16.msra.mxu0 %v3760_v15  ;;  %928 = vmatpush1.bf16.msra.mxu1 %v3767_v16 }
 0x4db   :  { %888 = vmatprep.subr.bf16.mxu0 %v3772_v17  ;;  %929 = vmatprep.subr.bf16.mxu1 %v3779_v18 }
 0x4de   :  { %889 = vmatpush1.bf16.msra.mxu0 %v3784_v19  ;;  %930 = vmatpush1.bf16.msra.mxu1 %v3789_v20  ;;  %v3093_v19 = vld [vmem:[%s5621_s0 + $0xb0] sm:$0xff] }
 0x4df   :  { %890 = vmatprep.subr.bf16.mxu0 %v3796_v21  ;;  %931 = vmatprep.subr.bf16.mxu1 %v3803_v22 }
 0x4e2   :  { %891 = vmatpush1.bf16.msra.mxu0 %v3810_v23  ;;  %932 = vmatpush1.bf16.msra.mxu1 %v3815_v24 }
 0x4e3   :  { %892 = vmatprep.subr.bf16.mxu0 %v3822_v25  ;;  %933 = vmatprep.subr.bf16.mxu1 %v3827_v26 }
 0x4e6   :  { %893 = vmatpush1.bf16.msra.mxu0 %v3834_v27  ;;  %934 = vmatpush1.bf16.msra.mxu1 %v3839_v28 }
 0x4e7   :  { %894 = vmatprep.subr.bf16.mxu0 %v3846_v29  ;;  %935 = vmatprep.subr.bf16.mxu1 %v3851_v30 }
 0x4ea   :  { %895 = vmatpush1.bf16.msra.mxu0 %v3858_v31  ;;  %936 = vmatpush1.bf16.msra.mxu1 %v3863_v32 }
 0x4eb   :  { %990 = vmatprep.subr.bf16.mxu0 %v4157_v3  ;;  %1031 = vmatprep.subr.bf16.mxu1 %v3685_v2 }
 0x58d   :  { %v804_v5 = vpop.f32.mrf.mxu0  ;;  %v845_v6 = vpop.f32.mrf.mxu1 }
 0x58e   :  { %v852_v8 = vadd.f32 %v3091_v4, %v804_v5  ;;  %v854_v20 = vadd.f32 %v3093_v19, %v845_v6  ;;  %v4284_v4 = vld [vmem:[%s5620_s1 + $0x68] ss:$16 sps:$4 sm:$0xff]   ;;  %v4290_v5 = vld [vmem:[%s5620_s1 + $0x44] ss:$16 sps:$4 sm:$0xff]   ;;  %v4296_v6 = vld [vmem:[%s5620_s1 + $0x4c] ss:$16 sps:$4 sm:$0xff]  }
 0x58f   :  { %v806_v9 = vpop.f32.mrf.mxu0  ;;  %v847_v10 = vpop.f32.mrf.mxu1 }
 0x590   :  { %v856_v11 = vmul.f32 0.5, %v852_v8  ;;  %v853_v12 = vadd.f32 %v3092_v7, %v806_v9  ;;  %v855_v18 = vadd.f32 %v3094_v13, %v847_v10  ;;  %v858_v21 = vmul.f32 0.5, %v854_v20  ;;  %v3098_v7 = vld [vmem:[%s5621_s0 + $0xd8] sm:$0xff] }
 0x591   :  { %v808_v2 = vpop.f32.mrf.mxu0  ;;  %v849_v14 = vpop.f32.mrf.mxu1 }
 0x592   :  { %3351 = vtanh.f32 %v856_v11  ;;  %v857_v15 = vmul.f32 0.5, %v853_v12  ;;  %v3097_v2 = vld [vmem:[%s5621_s0 + $0xd0] sm:$0xff] }
 0x593   :  { %v809_v16 = vpop.f32.mrf.mxu0  ;;  %v850_v17 = vpop.f32.mrf.mxu1 }
 0x594   :  { %3353 = vtanh.f32 %v857_v15 }
 0x595   :  { %3355 = vtanh.f32 %v855_v18 }
 0x596   :  { %3357 = vtanh.f32 %v858_v21 }
 0x59f   :  { %v3352_v22 = vpop.eup %3351 }
 0x5a0   :  { %v862_v44 = vmul.f32 0.5, %v3352_v22 }
 0x5a1   :  { %v3354_v53 = vpop.eup %3353 }
 0x5a2   :  { %v865_v54 = vadd.f32 0.5, %v862_v44  ;;  %v863_v55 = vmul.f32 0.5, %v3354_v53  ;;  %v3356_v57 = vpop.eup %3355 }
 0x5a3   :  { %v3358_v60 = vpop.eup %3357 }
 0x5a4   :  { %v866_v56 = vadd.f32 0.5, %v863_v55  ;;  %v870_v58 = vmul.f32 %v3356_v57, %v865_v54  ;;  %v864_v62 = vmul.f32 0.5, %v3358_v60 }
 0x5a6   :  { %v869_v0 = vmul.f32 %v866_v56, %v4119_v47  ;;  %v867_v63 = vadd.f32 0.5, %v864_v62  ;;  %v4242_v47 = vld [vmem:[%s5620_s1 + $0x84] ss:$16 sps:$4 sm:$0xff]   ;;  %v4363_v62 = vld [vmem:[%s5620_s1 + $0x48] ss:$16 sps:$4 sm:$0xff]  }
 0x5a8   :  { %v4174_v59 = vadd.f32 %v870_v58, %v869_v0 }
 0x5aa   :  { %3359 = vtanh.f32 %v4174_v59 }
 0x5b7   :  { %v3360_v33 = vpop.eup %3359 }
 0x5b8   :  { %v873_v34 = vmul.f32 %v3360_v33, %v867_v63  ;;  %v4369_v63 = vld [vmem:[%s5620_s1 + $0x24] ss:$16 sps:$4 sm:$0xff]   ;;  %v4375_v33 = vld [vmem:[%s5620_s1 + $0x2c] ss:$16 sps:$4 sm:$0xff]  }
 0x5ba   :  { %v879_v36 = vpack.c.bf16 %v873_v34, %v873_v34  ;;  %v4381_v34 = vld [vmem:[%s5620_s1 + $0x20] ss:$16 sps:$4 sm:$0xff]  }
 0x5bc   :  { %913 = vmatmul.mubr.bf16.vlgmr.msra.gmra.mxu0 %v879_v36  ;;  %954 = vmatmul.mubr.bf16.vlgmr.msra.gmra.mxu1 %v879_v36  ;;  %v4387_v36 = vld [vmem:[%s5620_s1 + $0x28] ss:$16 sps:$4 sm:$0xff]  }
 0x5bd   :  { %991 = vmatpush1.bf16.msra.mxu0 %v4180_v37  ;;  %1032 = vmatpush1.bf16.msra.mxu1 %v4186_v38 }
 0x5be   :  { %992 = vmatprep.subr.bf16.mxu0 %v4192_v39  ;;  %1033 = vmatprep.subr.bf16.mxu1 %v4198_v41 }
 0x5bf   :  { %1022 = vmatprep.mubr.bf16.mxu0 %v3637_v1  ;;  %1063 = vmatprep.mubr.bf16.mxu1 %v3637_v1 }
 0x5c1   :  { %993 = vmatpush1.bf16.msra.mxu0 %v4206_v61  ;;  %1034 = vmatpush1.bf16.msra.mxu1 %v4212_v42 }
 0x5c2   :  { %994 = vmatprep.subr.bf16.mxu0 %v4218_v43  ;;  %1035 = vmatprep.subr.bf16.mxu1 %v4224_v45 }
 0x5c5   :  { %995 = vmatpush1.bf16.msra.mxu0 %v4230_v35  ;;  %1036 = vmatpush1.bf16.msra.mxu1 %v4236_v46 }
 0x5c6   :  { %996 = vmatprep.subr.bf16.mxu0 %v4242_v47  ;;  %1037 = vmatprep.subr.bf16.mxu1 %v4248_v48 }
 0x5c9   :  { %997 = vmatpush1.bf16.msra.mxu0 %v4254_v49  ;;  %1038 = vmatpush1.bf16.msra.mxu1 %v4260_v40 }
 0x5ca   :  { %998 = vmatprep.subr.bf16.mxu0 %v4266_v50  ;;  %1039 = vmatprep.subr.bf16.mxu1 %v4272_v51 }
 0x5cd   :  { %999 = vmatpush1.bf16.msra.mxu0 %v4278_v52  ;;  %1040 = vmatpush1.bf16.msra.mxu1 %v4284_v4 }
 0x5ce   :  { %1000 = vmatprep.subr.bf16.mxu0 %v4290_v5  ;;  %1041 = vmatprep.subr.bf16.mxu1 %v4296_v6 }
 0x5d1   :  { %1001 = vmatpush1.bf16.msra.mxu0 %v3810_v23  ;;  %1042 = vmatpush1.bf16.msra.mxu1 %v3815_v24  ;;  %v4313_v23 = vld [vmem:[%s5620_s1 + $0xec] ss:$16 sps:$4 sm:$0xff]   ;;  %v3095_v24 = vld [vmem:[%s5621_s0 + $0xc0] sm:$0xff] }
 0x5d2   :  { %1002 = vmatprep.subr.bf16.mxu0 %v3822_v25  ;;  %1043 = vmatprep.subr.bf16.mxu1 %v3827_v26 }
 0x5d5   :  { %1003 = vmatpush1.bf16.msra.mxu0 %v3834_v27  ;;  %1044 = vmatpush1.bf16.msra.mxu1 %v3839_v28  ;;  %v3096_v27 = vld [vmem:[%s5621_s0 + $0xc8] sm:$0xff] }
 0x5d6   :  { %1004 = vmatprep.subr.bf16.mxu0 %v3846_v29  ;;  %1045 = vmatprep.subr.bf16.mxu1 %v3851_v30 }
 0x5d9   :  { %1005 = vmatpush1.bf16.msra.mxu0 %v3858_v31  ;;  %1046 = vmatpush1.bf16.msra.mxu1 %v3863_v32 }
 0x5da   :  { %1100 = vmatprep.subr.bf16.mxu0 %v4157_v3  ;;  %1141 = vmatprep.subr.bf16.mxu1 %v4313_v23 }
 0x67c   :  { %v914_v25 = vpop.f32.mrf.mxu0  ;;  %v955_v26 = vpop.f32.mrf.mxu1 }
 0x67d   :  { %v962_v28 = vadd.f32 %v3095_v24, %v914_v25  ;;  %v964_v14 = vadd.f32 %v3097_v2, %v955_v26  ;;  %v4393_v24 = vld [vmem:[%s5620_s1 + $0x4] ss:$16 sps:$4 sm:$0xff]   ;;  %v4399_v25 = vld [vmem:[%s5620_s1 + $0xc] ss:$16 sps:$4 sm:$0xff]   ;;  %v4405_v26 = vld [vmem:[%s5620_s1] ss:$16 sps:$4 sm:$0xff]  }
 0x67e   :  { %v916_v29 = vpop.f32.mrf.mxu0  ;;  %v957_v30 = vpop.f32.mrf.mxu1 }
 0x67f   :  { %v966_v31 = vmul.f32 0.5, %v962_v28  ;;  %v963_v32 = vadd.f32 %v3096_v27, %v916_v29  ;;  %v965_v13 = vadd.f32 %v3098_v7, %v957_v30  ;;  %v968_v15 = vmul.f32 0.5, %v964_v14  ;;  %v4411_v27 = vld [vmem:[%s5620_s1 + $0x8] ss:$16 sps:$4 sm:$0xff]   ;;  %v3099_v28 = vld [vmem:[%s5621_s0 + $0xe0] sm:$0xff] }
 0x680   :  { %v918_v8 = vpop.f32.mrf.mxu0  ;;  %v959_v9 = vpop.f32.mrf.mxu1 }
 0x681   :  { %3361 = vtanh.f32 %v966_v31  ;;  %v967_v10 = vmul.f32 0.5, %v963_v32  ;;  %v3100_v31 = vld [vmem:[%s5621_s0 + $0xe8] sm:$0xff] }
 0x682   :  { %v919_v11 = vpop.f32.mrf.mxu0  ;;  %v960_v12 = vpop.f32.mrf.mxu1 }
 0x683   :  { %3363 = vtanh.f32 %v967_v10  ;;  %v3102_v11 = vld [vmem:[%s5621_s0 + $0xf8] sm:$0xff] }
 0x684   :  { %3365 = vtanh.f32 %v965_v13 }
 0x685   :  { %3367 = vtanh.f32 %v968_v15 }
 0x68e   :  { %v3362_v16 = vpop.eup %3361 }
 0x68f   :  { %v972_v17 = vmul.f32 0.5, %v3362_v16 }
 0x690   :  { %v3364_v18 = vpop.eup %3363 }
 0x691   :  { %v975_v19 = vadd.f32 0.5, %v972_v17  ;;  %v973_v20 = vmul.f32 0.5, %v3364_v18  ;;  %v3366_v22 = vpop.eup %3365  ;;  %v3101_v17 = vld [vmem:[%s5621_s0 + $0xf0] sm:$0xff] }
 0x692   :  { %v3368_v55 = vpop.eup %3367 }
 0x693   :  { %v976_v21 = vadd.f32 0.5, %v973_v20  ;;  %v980_v53 = vmul.f32 %v3366_v22, %v975_v19  ;;  %v974_v56 = vmul.f32 0.5, %v3368_v55 }
 0x695   :  { %v979_v44 = vmul.f32 %v976_v21, %v4174_v59  ;;  %v977_v57 = vadd.f32 0.5, %v974_v56  ;;  %v4357_v59 = vld [vmem:[%s5620_s1 + $0x40] ss:$16 sps:$4 sm:$0xff]  }
 0x697   :  { %v4329_v54 = vadd.f32 %v980_v53, %v979_v44 }
 0x699   :  { %3369 = vtanh.f32 %v4329_v54 }
 0x6a6   :  { %v3370_v0 = vpop.eup %3369 }
 0x6a7   :  { %v983_v58 = vmul.f32 %v3370_v0, %v977_v57 }
 0x6a9   :  { %v989_v60 = vpack.c.bf16 %v983_v58, %v983_v58 }
 0x6ab   :  { %1023 = vmatmul.mubr.bf16.vlgmr.msra.gmra.mxu0 %v989_v60  ;;  %1064 = vmatmul.mubr.bf16.vlgmr.msra.gmra.mxu1 %v989_v60 }
 0x6ac   :  { %1101 = vmatpush1.bf16.msra.mxu0 %v4180_v37  ;;  %1142 = vmatpush1.bf16.msra.mxu1 %v4186_v38 }
 0x6ad   :  { %1102 = vmatprep.subr.bf16.mxu0 %v4192_v39  ;;  %1143 = vmatprep.subr.bf16.mxu1 %v4198_v41 }
 0x6ae   :  { %1132 = vmatprep.mubr.bf16.mxu0 %v3637_v1  ;;  %1173 = vmatprep.mubr.bf16.mxu1 %v3637_v1 }
 0x6b0   :  { %1103 = vmatpush1.bf16.msra.mxu0 %v4206_v61  ;;  %1144 = vmatpush1.bf16.msra.mxu1 %v4212_v42 }
 0x6b1   :  { %1104 = vmatprep.subr.bf16.mxu0 %v4218_v43  ;;  %1145 = vmatprep.subr.bf16.mxu1 %v4224_v45 }
 0x6b4   :  { %1105 = vmatpush1.bf16.msra.mxu0 %v4230_v35  ;;  %1146 = vmatpush1.bf16.msra.mxu1 %v4236_v46 }
 0x6b5   :  { %1106 = vmatprep.subr.bf16.mxu0 %v4242_v47  ;;  %1147 = vmatprep.subr.bf16.mxu1 %v4248_v48 }
 0x6b8   :  { %1107 = vmatpush1.bf16.msra.mxu0 %v4254_v49  ;;  %1148 = vmatpush1.bf16.msra.mxu1 %v4260_v40 }
 0x6b9   :  { %1108 = vmatprep.subr.bf16.mxu0 %v4266_v50  ;;  %1149 = vmatprep.subr.bf16.mxu1 %v4272_v51 }
 0x6bc   :  { %1109 = vmatpush1.bf16.msra.mxu0 %v4278_v52  ;;  %1150 = vmatpush1.bf16.msra.mxu1 %v4284_v4 }
 0x6bd   :  { %1110 = vmatprep.subr.bf16.mxu0 %v4290_v5  ;;  %1151 = vmatprep.subr.bf16.mxu1 %v4296_v6 }
 0x6c0   :  { %1111 = vmatpush1.bf16.msra.mxu0 %v4357_v59  ;;  %1152 = vmatpush1.bf16.msra.mxu1 %v4363_v62 }
 0x6c1   :  { %1112 = vmatprep.subr.bf16.mxu0 %v4369_v63  ;;  %1153 = vmatprep.subr.bf16.mxu1 %v4375_v33 }
 0x6c4   :  { %1113 = vmatpush1.bf16.msra.mxu0 %v4381_v34  ;;  %1154 = vmatpush1.bf16.msra.mxu1 %v4387_v36 }
 0x6c5   :  { %1114 = vmatprep.subr.bf16.mxu0 %v4393_v24  ;;  %1155 = vmatprep.subr.bf16.mxu1 %v4399_v25 }
 0x6c8   :  { %1115 = vmatpush1.bf16.msra.mxu0 %v4405_v26  ;;  %1156 = vmatpush1.bf16.msra.mxu1 %v4411_v27 }
 0x6c9   :  { %1210 = vmatprep.subr.bf16.mxu0 %v4157_v3  ;;  %1251 = vmatprep.subr.bf16.mxu1 %v4313_v23 }
 0x76b   :  { %v1024_v29 = vpop.f32.mrf.mxu0  ;;  %v1065_v30 = vpop.f32.mrf.mxu1 }
 0x76c   :  { %v1072_v32 = vadd.f32 %v3099_v28, %v1024_v29  ;;  %v1074_v18 = vadd.f32 %v3101_v17, %v1065_v30 }
 0x76d   :  { %v1026_v7 = vpop.f32.mrf.mxu0  ;;  %v1067_v8 = vpop.f32.mrf.mxu1 }
 0x76e   :  { %v1076_v9 = vmul.f32 0.5, %v1072_v32  ;;  %v1073_v10 = vadd.f32 %v3100_v31, %v1026_v7  ;;  %v1075_v16 = vadd.f32 %v3102_v11, %v1067_v8  ;;  %v1078_v19 = vmul.f32 0.5, %v1074_v18 }
 0x76f   :  { %v1028_v12 = vpop.f32.mrf.mxu0  ;;  %v1069_v13 = vpop.f32.mrf.mxu1 }
 0x770   :  { %3371 = vtanh.f32 %v1076_v9  ;;  %v1077_v2 = vmul.f32 0.5, %v1073_v10  ;;  %v3104_v9 = vld [vmem:[%s5621_s0 + $0x108] sm:$0xff] }
 0x771   :  { %v1029_v14 = vpop.f32.mrf.mxu0  ;;  %v1070_v15 = vpop.f32.mrf.mxu1 }
 0x772   :  { %3373 = vtanh.f32 %v1077_v2  ;;  %v3106_v14 = vld [vmem:[%s5621_s0 + $0x118] sm:$0xff] }
 0x773   :  { %3375 = vtanh.f32 %v1075_v16 }
 0x774   :  { %3377 = vtanh.f32 %v1078_v19 }
 0x77d   :  { %v3372_v20 = vpop.eup %3371 }
 0x77e   :  { %v1082_v21 = vmul.f32 0.5, %v3372_v20 }
 0x77f   :  { %v3374_v22 = vpop.eup %3373 }
 0x780   :  { %v1085_v44 = vadd.f32 0.5, %v1082_v21  ;;  %v1083_v53 = vmul.f32 0.5, %v3374_v22  ;;  %v3376_v56 = vpop.eup %3375  ;;  %v3105_v21 = vld [vmem:[%s5621_s0 + $0x110] sm:$0xff] }
 0x781   :  { %v3378_v60 = vpop.eup %3377 }
 0x782   :  { %v1086_v55 = vadd.f32 0.5, %v1083_v53  ;;  %v1090_v0 = vmul.f32 %v3376_v56, %v1085_v44  ;;  %v1084_v28 = vmul.f32 0.5, %v3378_v60 }
 0x784   :  { %v1089_v57 = vmul.f32 %v1086_v55, %v4329_v54  ;;  %v1087_v29 = vadd.f32 0.5, %v1084_v28  ;;  %v3103_v54 = vld [vmem:[%s5621_s0 + $0x100] sm:$0xff] }
 0x786   :  { %v4429_v58 = vadd.f32 %v1090_v0, %v1089_v57 }
 0x788   :  { %3379 = vtanh.f32 %v4429_v58 }
 0x795   :  { %v3380_v30 = vpop.eup %3379 }
 0x796   :  { %v1093_v31 = vmul.f32 %v3380_v30, %v1087_v29 }
 0x798   :  { %v1099_v32 = vpack.c.bf16 %v1093_v31, %v1093_v31 }
 0x79a   :  { %1133 = vmatmul.mubr.bf16.vlgmr.msra.gmra.mxu0 %v1099_v32  ;;  %1174 = vmatmul.mubr.bf16.vlgmr.msra.gmra.mxu1 %v1099_v32 }
 0x79b   :  { %1211 = vmatpush1.bf16.msra.mxu0 %v4180_v37  ;;  %1252 = vmatpush1.bf16.msra.mxu1 %v4186_v38 }
 0x79c   :  { %1212 = vmatprep.subr.bf16.mxu0 %v4192_v39  ;;  %1253 = vmatprep.subr.bf16.mxu1 %v4198_v41 }
 0x79d   :  { %1242 = vmatprep.mubr.bf16.mxu0 %v3637_v1  ;;  %1283 = vmatprep.mubr.bf16.mxu1 %v3637_v1 }
 0x79f   :  { %1213 = vmatpush1.bf16.msra.mxu0 %v4206_v61  ;;  %1254 = vmatpush1.bf16.msra.mxu1 %v4212_v42 }
 0x7a0   :  { %1214 = vmatprep.subr.bf16.mxu0 %v4218_v43  ;;  %1255 = vmatprep.subr.bf16.mxu1 %v4224_v45 }
 0x7a3   :  { %1215 = vmatpush1.bf16.msra.mxu0 %v4230_v35  ;;  %1256 = vmatpush1.bf16.msra.mxu1 %v4236_v46 }
 0x7a4   :  { %1216 = vmatprep.subr.bf16.mxu0 %v4242_v47  ;;  %1257 = vmatprep.subr.bf16.mxu1 %v4248_v48 }
 0x7a7   :  { %1217 = vmatpush1.bf16.msra.mxu0 %v4254_v49  ;;  %1258 = vmatpush1.bf16.msra.mxu1 %v4260_v40 }
 0x7a8   :  { %1218 = vmatprep.subr.bf16.mxu0 %v4266_v50  ;;  %1259 = vmatprep.subr.bf16.mxu1 %v4272_v51 }
 0x7ab   :  { %1219 = vmatpush1.bf16.msra.mxu0 %v4278_v52  ;;  %1260 = vmatpush1.bf16.msra.mxu1 %v4284_v4 }
 0x7ac   :  { %1220 = vmatprep.subr.bf16.mxu0 %v4290_v5  ;;  %1261 = vmatprep.subr.bf16.mxu1 %v4296_v6 }
 0x7af   :  { %1221 = vmatpush1.bf16.msra.mxu0 %v4357_v59  ;;  %1262 = vmatpush1.bf16.msra.mxu1 %v4363_v62 }
 0x7b0   :  { %1222 = vmatprep.subr.bf16.mxu0 %v4369_v63  ;;  %1263 = vmatprep.subr.bf16.mxu1 %v4375_v33 }
 0x7b3   :  { %1223 = vmatpush1.bf16.msra.mxu0 %v4381_v34  ;;  %1264 = vmatpush1.bf16.msra.mxu1 %v4387_v36 }
 0x7b4   :  { %1224 = vmatprep.subr.bf16.mxu0 %v4393_v24  ;;  %1265 = vmatprep.subr.bf16.mxu1 %v4399_v25 }
 0x7b7   :  { %1225 = vmatpush1.bf16.msra.mxu0 %v4405_v26  ;;  %1266 = vmatpush1.bf16.msra.mxu1 %v4411_v27 }
 0x7b8   :  { %1320 = vmatprep.subr.bf16.mxu0 %v4157_v3  ;;  %1361 = vmatprep.subr.bf16.mxu1 %v4313_v23 }
 0x85a   :  { %v1134_v7 = vpop.f32.mrf.mxu0  ;;  %v1175_v8 = vpop.f32.mrf.mxu1 }
 0x85b   :  { %v1182_v10 = vadd.f32 %v3103_v54, %v1134_v7  ;;  %v1184_v22 = vadd.f32 %v3105_v21, %v1175_v8 }
 0x85c   :  { %v1136_v11 = vpop.f32.mrf.mxu0  ;;  %v1177_v12 = vpop.f32.mrf.mxu1 }
 0x85d   :  { %v1186_v13 = vmul.f32 0.5, %v1182_v10  ;;  %v1183_v2 = vadd.f32 %v3104_v9, %v1136_v11  ;;  %v1185_v20 = vadd.f32 %v3106_v14, %v1177_v12  ;;  %v1188_v44 = vmul.f32 0.5, %v1184_v22 }
 0x85e   :  { %v1138_v15 = vpop.f32.mrf.mxu0  ;;  %v1179_v16 = vpop.f32.mrf.mxu1 }
 0x85f   :  { %3381 = vtanh.f32 %v1186_v13  ;;  %v1187_v17 = vmul.f32 0.5, %v1183_v2  ;;  %v3108_v13 = vld [vmem:[%s5621_s0 + $0x128] sm:$0xff] }
 0x860   :  { %v1139_v18 = vpop.f32.mrf.mxu0  ;;  %v1180_v19 = vpop.f32.mrf.mxu1 }
 0x861   :  { %3383 = vtanh.f32 %v1187_v17  ;;  %v3110_v18 = vld [vmem:[%s5621_s0 + $0x138] sm:$0xff] }
 0x862   :  { %3385 = vtanh.f32 %v1185_v20 }
 0x863   :  { %3387 = vtanh.f32 %v1188_v44 }
 0x86c   :  { %v3382_v53 = vpop.eup %3381 }
 0x86d   :  { %v1192_v55 = vmul.f32 0.5, %v3382_v53 }
 0x86e   :  { %v3384_v56 = vpop.eup %3383 }
 0x86f   :  { %v1195_v57 = vadd.f32 0.5, %v1192_v55  ;;  %v1193_v0 = vmul.f32 0.5, %v3384_v56  ;;  %v3386_v28 = vpop.eup %3385  ;;  %v3109_v55 = vld [vmem:[%s5621_s0 + $0x130] sm:$0xff] }
 0x870   :  { %v3388_v32 = vpop.eup %3387 }
 0x871   :  { %v1196_v60 = vadd.f32 0.5, %v1193_v0  ;;  %v1200_v30 = vmul.f32 %v3386_v28, %v1195_v57  ;;  %v1194_v54 = vmul.f32 0.5, %v3388_v32 }
 0x873   :  { %v1199_v29 = vmul.f32 %v1196_v60, %v4429_v58  ;;  %v1197_v7 = vadd.f32 0.5, %v1194_v54  ;;  %v3107_v58 = vld [vmem:[%s5621_s0 + $0x120] sm:$0xff] }
 0x875   :  { %v4479_v31 = vadd.f32 %v1200_v30, %v1199_v29 }
 0x877   :  { %3389 = vtanh.f32 %v4479_v31 }
 0x884   :  { %v3390_v8 = vpop.eup %3389 }
 0x885   :  { %v1203_v9 = vmul.f32 %v3390_v8, %v1197_v7 }
 0x887   :  { %v1209_v10 = vpack.c.bf16 %v1203_v9, %v1203_v9 }
 0x889   :  { %1243 = vmatmul.mubr.bf16.vlgmr.msra.gmra.mxu0 %v1209_v10  ;;  %1284 = vmatmul.mubr.bf16.vlgmr.msra.gmra.mxu1 %v1209_v10 }
 0x88a   :  { %1321 = vmatpush1.bf16.msra.mxu0 %v4180_v37  ;;  %1362 = vmatpush1.bf16.msra.mxu1 %v4186_v38 }
 0x88b   :  { %1322 = vmatprep.subr.bf16.mxu0 %v4192_v39  ;;  %1363 = vmatprep.subr.bf16.mxu1 %v4198_v41 }
 0x88c   :  { %1352 = vmatprep.mubr.bf16.mxu0 %v3637_v1  ;;  %1393 = vmatprep.mubr.bf16.mxu1 %v3637_v1 }
 0x88e   :  { %1323 = vmatpush1.bf16.msra.mxu0 %v4206_v61  ;;  %1364 = vmatpush1.bf16.msra.mxu1 %v4212_v42 }
 0x88f   :  { %1324 = vmatprep.subr.bf16.mxu0 %v4218_v43  ;;  %1365 = vmatprep.subr.bf16.mxu1 %v4224_v45 }
 0x892   :  { %1325 = vmatpush1.bf16.msra.mxu0 %v4230_v35  ;;  %1366 = vmatpush1.bf16.msra.mxu1 %v4236_v46 }
 0x893   :  { %1326 = vmatprep.subr.bf16.mxu0 %v4242_v47  ;;  %1367 = vmatprep.subr.bf16.mxu1 %v4248_v48 }
 0x896   :  { %1327 = vmatpush1.bf16.msra.mxu0 %v4254_v49  ;;  %1368 = vmatpush1.bf16.msra.mxu1 %v4260_v40 }
 0x897   :  { %1328 = vmatprep.subr.bf16.mxu0 %v4266_v50  ;;  %1369 = vmatprep.subr.bf16.mxu1 %v4272_v51 }
 0x89a   :  { %1329 = vmatpush1.bf16.msra.mxu0 %v4278_v52  ;;  %1370 = vmatpush1.bf16.msra.mxu1 %v4284_v4 }
 0x89b   :  { %1330 = vmatprep.subr.bf16.mxu0 %v4290_v5  ;;  %1371 = vmatprep.subr.bf16.mxu1 %v4296_v6 }
 0x89e   :  { %1331 = vmatpush1.bf16.msra.mxu0 %v4357_v59  ;;  %1372 = vmatpush1.bf16.msra.mxu1 %v4363_v62 }
 0x89f   :  { %1332 = vmatprep.subr.bf16.mxu0 %v4369_v63  ;;  %1373 = vmatprep.subr.bf16.mxu1 %v4375_v33 }
 0x8a2   :  { %1333 = vmatpush1.bf16.msra.mxu0 %v4381_v34  ;;  %1374 = vmatpush1.bf16.msra.mxu1 %v4387_v36 }
 0x8a3   :  { %1334 = vmatprep.subr.bf16.mxu0 %v4393_v24  ;;  %1375 = vmatprep.subr.bf16.mxu1 %v4399_v25 }
 0x8a6   :  { %1335 = vmatpush1.bf16.msra.mxu0 %v4405_v26  ;;  %1376 = vmatpush1.bf16.msra.mxu1 %v4411_v27 }
 0x8a7   :  { %1430 = vmatprep.subr.bf16.mxu0 %v4157_v3  ;;  %1471 = vmatprep.subr.bf16.mxu1 %v4313_v23 }
 0x949   :  { %v1244_v11 = vpop.f32.mrf.mxu0  ;;  %v1285_v12 = vpop.f32.mrf.mxu1 }
 0x94a   :  { %v1292_v2 = vadd.f32 %v3107_v58, %v1244_v11  ;;  %v1294_v56 = vadd.f32 %v3109_v55, %v1285_v12 }
 0x94b   :  { %v1246_v14 = vpop.f32.mrf.mxu0  ;;  %v1287_v15 = vpop.f32.mrf.mxu1 }
 0x94c   :  { %v1296_v16 = vmul.f32 0.5, %v1292_v2  ;;  %v1293_v17 = vadd.f32 %v3108_v13, %v1246_v14  ;;  %v1295_v53 = vadd.f32 %v3110_v18, %v1287_v15  ;;  %v1298_v57 = vmul.f32 0.5, %v1294_v56 }
 0x94d   :  { %v1248_v19 = vpop.f32.mrf.mxu0  ;;  %v1289_v20 = vpop.f32.mrf.mxu1 }
 0x94e   :  { %3391 = vtanh.f32 %v1296_v16  ;;  %v1297_v21 = vmul.f32 0.5, %v1293_v17  ;;  %v3112_v16 = vld [vmem:[%s5621_s0 + $0x148] sm:$0xff] }
 0x94f   :  { %v1249_v22 = vpop.f32.mrf.mxu0  ;;  %v1290_v44 = vpop.f32.mrf.mxu1 }
 0x950   :  { %3393 = vtanh.f32 %v1297_v21  ;;  %v3114_v22 = vld [vmem:[%s5621_s0 + $0x158] sm:$0xff] }
 0x951   :  { %3395 = vtanh.f32 %v1295_v53 }
 0x952   :  { %3397 = vtanh.f32 %v1298_v57 }
 0x95b   :  { %v3392_v0 = vpop.eup %3391 }
 0x95c   :  { %v1302_v60 = vmul.f32 0.5, %v3392_v0 }
 0x95d   :  { %v3394_v28 = vpop.eup %3393 }
 0x95e   :  { %v1305_v29 = vadd.f32 0.5, %v1302_v60  ;;  %v1303_v30 = vmul.f32 0.5, %v3394_v28  ;;  %v3396_v54 = vpop.eup %3395  ;;  %v3113_v60 = vld [vmem:[%s5621_s0 + $0x150] sm:$0xff] }
 0x95f   :  { %v3398_v10 = vpop.eup %3397 }
 0x960   :  { %v1306_v32 = vadd.f32 0.5, %v1303_v30  ;;  %v1310_v8 = vmul.f32 %v3396_v54, %v1305_v29  ;;  %v1304_v58 = vmul.f32 0.5, %v3398_v10 }
 0x962   :  { %v1309_v7 = vmul.f32 %v1306_v32, %v4479_v31  ;;  %v1307_v11 = vadd.f32 0.5, %v1304_v58  ;;  %v3111_v31 = vld [vmem:[%s5621_s0 + $0x140] sm:$0xff] }
 0x964   :  { %v4529_v9 = vadd.f32 %v1310_v8, %v1309_v7 }
 0x966   :  { %3399 = vtanh.f32 %v4529_v9 }
 0x973   :  { %v3400_v12 = vpop.eup %3399 }
 0x974   :  { %v1313_v13 = vmul.f32 %v3400_v12, %v1307_v11 }
 0x976   :  { %v1319_v2 = vpack.c.bf16 %v1313_v13, %v1313_v13 }
 0x978   :  { %1353 = vmatmul.mubr.bf16.vlgmr.msra.gmra.mxu0 %v1319_v2  ;;  %1394 = vmatmul.mubr.bf16.vlgmr.msra.gmra.mxu1 %v1319_v2 }
 0x979   :  { %1431 = vmatpush1.bf16.msra.mxu0 %v4180_v37  ;;  %1472 = vmatpush1.bf16.msra.mxu1 %v4186_v38 }
 0x97a   :  { %1432 = vmatprep.subr.bf16.mxu0 %v4192_v39  ;;  %1473 = vmatprep.subr.bf16.mxu1 %v4198_v41 }
 0x97b   :  { %1462 = vmatprep.mubr.bf16.mxu0 %v3637_v1  ;;  %1503 = vmatprep.mubr.bf16.mxu1 %v3637_v1 }
 0x97d   :  { %1433 = vmatpush1.bf16.msra.mxu0 %v4206_v61  ;;  %1474 = vmatpush1.bf16.msra.mxu1 %v4212_v42 }
 0x97e   :  { %1434 = vmatprep.subr.bf16.mxu0 %v4218_v43  ;;  %1475 = vmatprep.subr.bf16.mxu1 %v4224_v45 }
 0x981   :  { %1435 = vmatpush1.bf16.msra.mxu0 %v4230_v35  ;;  %1476 = vmatpush1.bf16.msra.mxu1 %v4236_v46 }
 0x982   :  { %1436 = vmatprep.subr.bf16.mxu0 %v4242_v47  ;;  %1477 = vmatprep.subr.bf16.mxu1 %v4248_v48 }
 0x985   :  { %1437 = vmatpush1.bf16.msra.mxu0 %v4254_v49  ;;  %1478 = vmatpush1.bf16.msra.mxu1 %v4260_v40 }
 0x986   :  { %1438 = vmatprep.subr.bf16.mxu0 %v4266_v50  ;;  %1479 = vmatprep.subr.bf16.mxu1 %v4272_v51 }
 0x989   :  { %1439 = vmatpush1.bf16.msra.mxu0 %v4278_v52  ;;  %1480 = vmatpush1.bf16.msra.mxu1 %v4284_v4 }
 0x98a   :  { %1440 = vmatprep.subr.bf16.mxu0 %v4290_v5  ;;  %1481 = vmatprep.subr.bf16.mxu1 %v4296_v6 }
 0x98d   :  { %1441 = vmatpush1.bf16.msra.mxu0 %v4357_v59  ;;  %1482 = vmatpush1.bf16.msra.mxu1 %v4363_v62 }
 0x98e   :  { %1442 = vmatprep.subr.bf16.mxu0 %v4369_v63  ;;  %1483 = vmatprep.subr.bf16.mxu1 %v4375_v33 }
 0x991   :  { %1443 = vmatpush1.bf16.msra.mxu0 %v4381_v34  ;;  %1484 = vmatpush1.bf16.msra.mxu1 %v4387_v36 }
 0x992   :  { %1444 = vmatprep.subr.bf16.mxu0 %v4393_v24  ;;  %1485 = vmatprep.subr.bf16.mxu1 %v4399_v25 }
 0x995   :  { %1445 = vmatpush1.bf16.msra.mxu0 %v4405_v26  ;;  %1486 = vmatpush1.bf16.msra.mxu1 %v4411_v27 }
 0x996   :  { %1540 = vmatprep.subr.bf16.mxu0 %v4157_v3  ;;  %1581 = vmatprep.subr.bf16.mxu1 %v4313_v23 }
 0xa38   :  { %v1354_v14 = vpop.f32.mrf.mxu0  ;;  %v1395_v15 = vpop.f32.mrf.mxu1 }
 0xa39   :  { %v1402_v17 = vadd.f32 %v3111_v31, %v1354_v14  ;;  %v1404_v28 = vadd.f32 %v3113_v60, %v1395_v15 }
 0xa3a   :  { %v1356_v18 = vpop.f32.mrf.mxu0  ;;  %v1397_v19 = vpop.f32.mrf.mxu1 }
 0xa3b   :  { %v1406_v20 = vmul.f32 0.5, %v1402_v17  ;;  %v1403_v21 = vadd.f32 %v3112_v16, %v1356_v18  ;;  %v1405_v0 = vadd.f32 %v3114_v22, %v1397_v19  ;;  %v1408_v29 = vmul.f32 0.5, %v1404_v28 }
 0xa3c   :  { %v1358_v44 = vpop.f32.mrf.mxu0  ;;  %v1399_v53 = vpop.f32.mrf.mxu1 }
 0xa3d   :  { %3401 = vtanh.f32 %v1406_v20  ;;  %v1407_v55 = vmul.f32 0.5, %v1403_v21  ;;  %v3116_v20 = vld [vmem:[%s5621_s0 + $0x168] sm:$0xff] }
 0xa3e   :  { %v1359_v56 = vpop.f32.mrf.mxu0  ;;  %v1400_v57 = vpop.f32.mrf.mxu1 }
 0xa3f   :  { %3403 = vtanh.f32 %v1407_v55 }
 0xa40   :  { %3405 = vtanh.f32 %v1405_v0 }
 0xa41   :  { %3407 = vtanh.f32 %v1408_v29 }
 0xa4a   :  { %v3402_v30 = vpop.eup %3401 }
 0xa4b   :  { %v1412_v32 = vmul.f32 0.5, %v3402_v30  ;;  %v3117_v30 = vld [vmem:[%s5621_s0 + $0x170] sm:$0xff] }
 0xa4c   :  { %v3404_v54 = vpop.eup %3403 }
 0xa4d   :  { %v1415_v7 = vadd.f32 0.5, %v1412_v32  ;;  %v1413_v8 = vmul.f32 0.5, %v3404_v54  ;;  %v3406_v58 = vpop.eup %3405 }
 0xa4e   :  { %v3408_v2 = vpop.eup %3407 }
 0xa4f   :  { %v1416_v10 = vadd.f32 0.5, %v1413_v8  ;;  %v1420_v12 = vmul.f32 %v3406_v58, %v1415_v7  ;;  %v1414_v31 = vmul.f32 0.5, %v3408_v2 }
 0xa51   :  { %v1419_v11 = vmul.f32 %v1416_v10, %v4529_v9  ;;  %v1417_v14 = vadd.f32 0.5, %v1414_v31  ;;  %v3115_v9 = vld [vmem:[%s5621_s0 + $0x160] sm:$0xff] }
 0xa53   :  { %v4579_v13 = vadd.f32 %v1420_v12, %v1419_v11 }
 0xa55   :  { %3409 = vtanh.f32 %v4579_v13 }
 0xa62   :  { %v3410_v15 = vpop.eup %3409 }
 0xa63   :  { %v1423_v16 = vmul.f32 %v3410_v15, %v1417_v14 }
 0xa65   :  { %v1429_v17 = vpack.c.bf16 %v1423_v16, %v1423_v16 }
 0xa67   :  { %1463 = vmatmul.mubr.bf16.vlgmr.msra.gmra.mxu0 %v1429_v17  ;;  %1504 = vmatmul.mubr.bf16.vlgmr.msra.gmra.mxu1 %v1429_v17 }
 0xa68   :  { %1541 = vmatpush1.bf16.msra.mxu0 %v4180_v37  ;;  %1582 = vmatpush1.bf16.msra.mxu1 %v4186_v38 }
 0xa69   :  { %1542 = vmatprep.subr.bf16.mxu0 %v4192_v39  ;;  %1583 = vmatprep.subr.bf16.mxu1 %v4198_v41 }
 0xa6a   :  { %1572 = vmatprep.mubr.bf16.mxu0 %v3637_v1  ;;  %1613 = vmatprep.mubr.bf16.mxu1 %v3637_v1 }
 0xa6c   :  { %1543 = vmatpush1.bf16.msra.mxu0 %v4206_v61  ;;  %1584 = vmatpush1.bf16.msra.mxu1 %v4212_v42 }
 0xa6d   :  { %1544 = vmatprep.subr.bf16.mxu0 %v4218_v43  ;;  %1585 = vmatprep.subr.bf16.mxu1 %v4224_v45 }
 0xa70   :  { %1545 = vmatpush1.bf16.msra.mxu0 %v4230_v35  ;;  %1586 = vmatpush1.bf16.msra.mxu1 %v4236_v46 }
 0xa71   :  { %1546 = vmatprep.subr.bf16.mxu0 %v4242_v47  ;;  %1587 = vmatprep.subr.bf16.mxu1 %v4248_v48 }
 0xa74   :  { %1547 = vmatpush1.bf16.msra.mxu0 %v4254_v49  ;;  %1588 = vmatpush1.bf16.msra.mxu1 %v4260_v40 }
 0xa75   :  { %1548 = vmatprep.subr.bf16.mxu0 %v4266_v50  ;;  %1589 = vmatprep.subr.bf16.mxu1 %v4272_v51 }
 0xa78   :  { %1549 = vmatpush1.bf16.msra.mxu0 %v4278_v52  ;;  %1590 = vmatpush1.bf16.msra.mxu1 %v4284_v4 }
 0xa79   :  { %1550 = vmatprep.subr.bf16.mxu0 %v4290_v5  ;;  %1591 = vmatprep.subr.bf16.mxu1 %v4296_v6 }
 0xa7c   :  { %1551 = vmatpush1.bf16.msra.mxu0 %v4357_v59  ;;  %1592 = vmatpush1.bf16.msra.mxu1 %v4363_v62 }
 0xa7d   :  { %1552 = vmatprep.subr.bf16.mxu0 %v4369_v63  ;;  %1593 = vmatprep.subr.bf16.mxu1 %v4375_v33 }
 0xa80   :  { %1553 = vmatpush1.bf16.msra.mxu0 %v4381_v34  ;;  %1594 = vmatpush1.bf16.msra.mxu1 %v4387_v36 }
 0xa81   :  { %1554 = vmatprep.subr.bf16.mxu0 %v4393_v24  ;;  %1595 = vmatprep.subr.bf16.mxu1 %v4399_v25 }
 0xa84   :  { %1555 = vmatpush1.bf16.msra.mxu0 %v4405_v26  ;;  %1596 = vmatpush1.bf16.msra.mxu1 %v4411_v27 }
 0xa85   :  { %1650 = vmatprep.subr.bf16.mxu0 %v4157_v3  ;;  %1691 = vmatprep.subr.bf16.mxu1 %v4313_v23  ;;  %v3118_v3 = vld [vmem:[%s5621_s0 + $0x178] sm:$0xff] }
 0xb27   :  { %v1464_v18 = vpop.f32.mrf.mxu0  ;;  %v1505_v19 = vpop.f32.mrf.mxu1 }
 0xb28   :  { %v1512_v21 = vadd.f32 %v3115_v9, %v1464_v18  ;;  %v1514_v32 = vadd.f32 %v3117_v30, %v1505_v19 }
 0xb29   :  { %v1466_v22 = vpop.f32.mrf.mxu0  ;;  %v1507_v44 = vpop.f32.mrf.mxu1 }
 0xb2a   :  { %v1516_v53 = vmul.f32 0.5, %v1512_v21  ;;  %v1513_v55 = vadd.f32 %v3116_v20, %v1466_v22  ;;  %v1515_v29 = vadd.f32 %v3118_v3, %v1507_v44  ;;  %v1518_v54 = vmul.f32 0.5, %v1514_v32 }
 0xb2b   :  { %v1468_v56 = vpop.f32.mrf.mxu0  ;;  %v1509_v57 = vpop.f32.mrf.mxu1 }
 0xb2c   :  { %3411 = vtanh.f32 %v1516_v53  ;;  %v1517_v0 = vmul.f32 0.5, %v1513_v55 }
 0xb2d   :  { %v1469_v60 = vpop.f32.mrf.mxu0  ;;  %v1510_v28 = vpop.f32.mrf.mxu1 }
 0xb2e   :  { %3413 = vtanh.f32 %v1517_v0 }
 0xb2f   :  { %3415 = vtanh.f32 %v1515_v29 }
 0xb30   :  { %3417 = vtanh.f32 %v1518_v54  ;;  %v4690_v54 = vld [vmem:[%s5620_s1 + $0xe0] ss:$16 sps:$4 sm:$0xff]  }
 0xb39   :  { %v3412_v7 = vpop.eup %3411 }
 0xb3a   :  { %v1522_v8 = vmul.f32 0.5, %v3412_v7  ;;  %v4696_v7 = vld [vmem:[%s5620_s1 + $0xe8] ss:$16 sps:$4 sm:$0xff]  }
 0xb3b   :  { %v3414_v10 = vpop.eup %3413 }
 0xb3c   :  { %v1525_v58 = vadd.f32 0.5, %v1522_v8  ;;  %v1523_v11 = vmul.f32 0.5, %v3414_v10  ;;  %v3416_v2 = vpop.eup %3415  ;;  %v4702_v8 = vld [vmem:[%s5620_s1 + $0xc4] ss:$16 sps:$4 sm:$0xff]   ;;  %v4708_v10 = vld [vmem:[%s5620_s1 + $0xcc] ss:$16 sps:$4 sm:$0xff]  }
 0xb3d   :  { %v3418_v16 = vpop.eup %3417 }
 0xb3e   :  { %v1526_v12 = vadd.f32 0.5, %v1523_v11  ;;  %v1530_v14 = vmul.f32 %v3416_v2, %v1525_v58  ;;  %v1524_v17 = vmul.f32 0.5, %v3418_v16  ;;  %v4716_v58 = vld [vmem:[%s5620_s1 + $0xc0] ss:$16 sps:$4 sm:$0xff]   ;;  %v4722_v11 = vld [vmem:[%s5620_s1 + $0xc8] ss:$16 sps:$4 sm:$0xff]  }
 0xb3f   :  { %v4734_v2 = vld [vmem:[%s5620_s1 + $0xac] ss:$16 sps:$4 sm:$0xff]  }
 0xb40   :  { %v1529_v31 = vmul.f32 %v1526_v12, %v4579_v13  ;;  %v1527_v9 = vadd.f32 0.5, %v1524_v17  ;;  %v4728_v12 = vld [vmem:[%s5620_s1 + $0xa4] ss:$16 sps:$4 sm:$0xff]   ;;  %v4758_v16 = vld [vmem:[%s5620_s1 + $0x8c] ss:$16 sps:$4 sm:$0xff]  }
 0xb41   :  { %v4764_v17 = vld [vmem:[%s5620_s1 + $0x80] ss:$16 sps:$4 sm:$0xff]  }
 0xb42   :  { %v4629_v15 = vadd.f32 %v1530_v14, %v1529_v31  ;;  %v4740_v31 = vld [vmem:[%s5620_s1 + $0xa0] ss:$16 sps:$4 sm:$0xff]   ;;  %v4746_v14 = vld [vmem:[%s5620_s1 + $0xa8] ss:$16 sps:$4 sm:$0xff]  }
 0xb44   :  { %3419 = vtanh.f32 %v4629_v15 }
 0xb51   :  { %v3420_v18 = vpop.eup %3419 }
 0xb52   :  { %v1533_v19 = vmul.f32 %v3420_v18, %v1527_v9  ;;  %v4770_v9 = vld [vmem:[%s5620_s1 + $0x88] ss:$16 sps:$4 sm:$0xff]   ;;  %v4776_v18 = vld [vmem:[%s5620_s1 + $0x64] ss:$16 sps:$4 sm:$0xff]  }
 0xb54   :  { %v1539_v20 = vpack.c.bf16 %v1533_v19, %v1533_v19  ;;  %v4782_v19 = vld [vmem:[%s5620_s1 + $0x6c] ss:$16 sps:$4 sm:$0xff]  }
 0xb56   :  { %1573 = vmatmul.mubr.bf16.vlgmr.msra.gmra.mxu0 %v1539_v20  ;;  %1614 = vmatmul.mubr.bf16.vlgmr.msra.gmra.mxu1 %v1539_v20  ;;  %v4788_v20 = vld [vmem:[%s5620_s1 + $0x60] ss:$16 sps:$4 sm:$0xff]  }
 0xb57   :  { %1651 = vmatpush1.bf16.msra.mxu0 %v4180_v37  ;;  %1692 = vmatpush1.bf16.msra.mxu1 %v4186_v38  ;;  %v4667_v37 = vld [vmem:[%s5620_s1 + $0xe4] ss:$16 sps:$4 sm:$0xff]  }
 0xb58   :  { %1652 = vmatprep.subr.bf16.mxu0 %v4192_v39  ;;  %1693 = vmatprep.subr.bf16.mxu1 %v4198_v41  ;;  %v3119_v38 = vld [vmem:[%s5621_s0 + $0x180] sm:$0xff] }
 0xb59   :  { %1682 = vmatprep.mubr.bf16.mxu0 %v3637_v1  ;;  %1723 = vmatprep.mubr.bf16.mxu1 %v3637_v1 }
 0xb5b   :  { %1653 = vmatpush1.bf16.msra.mxu0 %v4206_v61  ;;  %1694 = vmatpush1.bf16.msra.mxu1 %v4212_v42  ;;  %v3120_v61 = vld [vmem:[%s5621_s0 + $0x188] sm:$0xff] }
 0xb5c   :  { %1654 = vmatprep.subr.bf16.mxu0 %v4218_v43  ;;  %1695 = vmatprep.subr.bf16.mxu1 %v4224_v45 }
 0xb5f   :  { %1655 = vmatpush1.bf16.msra.mxu0 %v4230_v35  ;;  %1696 = vmatpush1.bf16.msra.mxu1 %v4236_v46 }
 0xb60   :  { %1656 = vmatprep.subr.bf16.mxu0 %v4242_v47  ;;  %1697 = vmatprep.subr.bf16.mxu1 %v4248_v48  ;;  %v3122_v47 = vld [vmem:[%s5621_s0 + $0x198] sm:$0xff] }
 0xb63   :  { %1657 = vmatpush1.bf16.msra.mxu0 %v4254_v49  ;;  %1698 = vmatpush1.bf16.msra.mxu1 %v4260_v40 }
 0xb64   :  { %1658 = vmatprep.subr.bf16.mxu0 %v4266_v50  ;;  %1699 = vmatprep.subr.bf16.mxu1 %v4272_v51 }
 0xb67   :  { %1659 = vmatpush1.bf16.msra.mxu0 %v4278_v52  ;;  %1700 = vmatpush1.bf16.msra.mxu1 %v4284_v4  ;;  %v3121_v4 = vld [vmem:[%s5621_s0 + $0x190] sm:$0xff] }
 0xb68   :  { %1660 = vmatprep.subr.bf16.mxu0 %v4290_v5  ;;  %1701 = vmatprep.subr.bf16.mxu1 %v4296_v6 }
 0xb6b   :  { %1661 = vmatpush1.bf16.msra.mxu0 %v4357_v59  ;;  %1702 = vmatpush1.bf16.msra.mxu1 %v4363_v62 }
 0xb6c   :  { %1662 = vmatprep.subr.bf16.mxu0 %v4369_v63  ;;  %1703 = vmatprep.subr.bf16.mxu1 %v4375_v33 }
 0xb6f   :  { %1663 = vmatpush1.bf16.msra.mxu0 %v4381_v34  ;;  %1704 = vmatpush1.bf16.msra.mxu1 %v4387_v36 }
 0xb70   :  { %1664 = vmatprep.subr.bf16.mxu0 %v4393_v24  ;;  %1705 = vmatprep.subr.bf16.mxu1 %v4399_v25 }
 0xb73   :  { %1665 = vmatpush1.bf16.msra.mxu0 %v4405_v26  ;;  %1706 = vmatpush1.bf16.msra.mxu1 %v4411_v27 }
 0xb74   :  { %1760 = vmatprep.subr.bf16.mxu0 %v4667_v37  ;;  %1801 = vmatprep.subr.bf16.mxu1 %v4313_v23 }
 0xc16   :  { %v1574_v39 = vpop.f32.mrf.mxu0  ;;  %v1615_v41 = vpop.f32.mrf.mxu1 }
 0xc17   :  { %v1622_v42 = vadd.f32 %v3119_v38, %v1574_v39  ;;  %v1624_v5 = vadd.f32 %v3121_v4, %v1615_v41  ;;  %v4794_v38 = vld [vmem:[%s5620_s1 + $0x68] ss:$16 sps:$4 sm:$0xff]   ;;  %v4800_v39 = vld [vmem:[%s5620_s1 + $0x44] ss:$16 sps:$4 sm:$0xff]   ;;  %v4806_v41 = vld [vmem:[%s5620_s1 + $0x4c] ss:$16 sps:$4 sm:$0xff]  }
 0xc18   :  { %v1576_v43 = vpop.f32.mrf.mxu0  ;;  %v1617_v45 = vpop.f32.mrf.mxu1 }
 0xc19   :  { %v1626_v35 = vmul.f32 0.5, %v1622_v42  ;;  %v1623_v46 = vadd.f32 %v3120_v61, %v1576_v43  ;;  %v1625_v52 = vadd.f32 %v3122_v47, %v1617_v45  ;;  %v1628_v6 = vmul.f32 0.5, %v1624_v5  ;;  %v3126_v61 = vld [vmem:[%s5621_s0 + $0x1b8] sm:$0xff] }
 0xc1a   :  { %v1578_v48 = vpop.f32.mrf.mxu0  ;;  %v1619_v49 = vpop.f32.mrf.mxu1 }
 0xc1b   :  { %3421 = vtanh.f32 %v1626_v35  ;;  %v1627_v40 = vmul.f32 0.5, %v1623_v46  ;;  %v3125_v48 = vld [vmem:[%s5621_s0 + $0x1b0] sm:$0xff] }
 0xc1c   :  { %v1579_v50 = vpop.f32.mrf.mxu0  ;;  %v1620_v51 = vpop.f32.mrf.mxu1 }
 0xc1d   :  { %3423 = vtanh.f32 %v1627_v40 }
 0xc1e   :  { %3425 = vtanh.f32 %v1625_v52 }
 0xc1f   :  { %3427 = vtanh.f32 %v1628_v6 }
 0xc28   :  { %v3422_v23 = vpop.eup %3421 }
 0xc29   :  { %v1632_v13 = vmul.f32 0.5, %v3422_v23 }
 0xc2a   :  { %v3424_v21 = vpop.eup %3423 }
 0xc2b   :  { %v1635_v22 = vadd.f32 0.5, %v1632_v13  ;;  %v1633_v44 = vmul.f32 0.5, %v3424_v21  ;;  %v3426_v55 = vpop.eup %3425 }
 0xc2c   :  { %v3428_v0 = vpop.eup %3427 }
 0xc2d   :  { %v1636_v53 = vadd.f32 0.5, %v1633_v44  ;;  %v1640_v56 = vmul.f32 %v3426_v55, %v1635_v22  ;;  %v1634_v60 = vmul.f32 0.5, %v3428_v0 }
 0xc2f   :  { %v1639_v3 = vmul.f32 %v1636_v53, %v4629_v15  ;;  %v1637_v28 = vadd.f32 0.5, %v1634_v60  ;;  %v4752_v15 = vld [vmem:[%s5620_s1 + $0x84] ss:$16 sps:$4 sm:$0xff]   ;;  %v4873_v60 = vld [vmem:[%s5620_s1 + $0x48] ss:$16 sps:$4 sm:$0xff]  }
 0xc31   :  { %v4684_v57 = vadd.f32 %v1640_v56, %v1639_v3 }
 0xc33   :  { %3429 = vtanh.f32 %v4684_v57 }
 0xc40   :  { %v3430_v29 = vpop.eup %3429 }
 0xc41   :  { %v1643_v30 = vmul.f32 %v3430_v29, %v1637_v28  ;;  %v4879_v28 = vld [vmem:[%s5620_s1 + $0x24] ss:$16 sps:$4 sm:$0xff]   ;;  %v4885_v29 = vld [vmem:[%s5620_s1 + $0x2c] ss:$16 sps:$4 sm:$0xff]  }
 0xc43   :  { %v1649_v32 = vpack.c.bf16 %v1643_v30, %v1643_v30  ;;  %v4891_v30 = vld [vmem:[%s5620_s1 + $0x20] ss:$16 sps:$4 sm:$0xff]  }
 0xc45   :  { %1683 = vmatmul.mubr.bf16.vlgmr.msra.gmra.mxu0 %v1649_v32  ;;  %1724 = vmatmul.mubr.bf16.vlgmr.msra.gmra.mxu1 %v1649_v32  ;;  %v4897_v32 = vld [vmem:[%s5620_s1 + $0x28] ss:$16 sps:$4 sm:$0xff]  }
 0xc46   :  { %1761 = vmatpush1.bf16.msra.mxu0 %v4690_v54  ;;  %1802 = vmatpush1.bf16.msra.mxu1 %v4696_v7 }
 0xc47   :  { %1762 = vmatprep.subr.bf16.mxu0 %v4702_v8  ;;  %1803 = vmatprep.subr.bf16.mxu1 %v4708_v10 }
 0xc48   :  { %1792 = vmatprep.mubr.bf16.mxu0 %v3637_v1  ;;  %1833 = vmatprep.mubr.bf16.mxu1 %v3637_v1 }
 0xc4a   :  { %1763 = vmatpush1.bf16.msra.mxu0 %v4716_v58  ;;  %1804 = vmatpush1.bf16.msra.mxu1 %v4722_v11 }
 0xc4b   :  { %1764 = vmatprep.subr.bf16.mxu0 %v4728_v12  ;;  %1805 = vmatprep.subr.bf16.mxu1 %v4734_v2 }
 0xc4e   :  { %1765 = vmatpush1.bf16.msra.mxu0 %v4740_v31  ;;  %1806 = vmatpush1.bf16.msra.mxu1 %v4746_v14 }
 0xc4f   :  { %1766 = vmatprep.subr.bf16.mxu0 %v4752_v15  ;;  %1807 = vmatprep.subr.bf16.mxu1 %v4758_v16 }
 0xc52   :  { %1767 = vmatpush1.bf16.msra.mxu0 %v4764_v17  ;;  %1808 = vmatpush1.bf16.msra.mxu1 %v4770_v9 }
 0xc53   :  { %1768 = vmatprep.subr.bf16.mxu0 %v4776_v18  ;;  %1809 = vmatprep.subr.bf16.mxu1 %v4782_v19 }
 0xc56   :  { %1769 = vmatpush1.bf16.msra.mxu0 %v4788_v20  ;;  %1810 = vmatpush1.bf16.msra.mxu1 %v4794_v38 }
 0xc57   :  { %1770 = vmatprep.subr.bf16.mxu0 %v4800_v39  ;;  %1811 = vmatprep.subr.bf16.mxu1 %v4806_v41 }
 0xc5a   :  { %1771 = vmatpush1.bf16.msra.mxu0 %v4357_v59  ;;  %1812 = vmatpush1.bf16.msra.mxu1 %v4363_v62  ;;  %v4823_v59 = vld [vmem:[%s5620_s1 + $0xec] ss:$16 sps:$4 sm:$0xff]   ;;  %v3123_v62 = vld [vmem:[%s5621_s0 + $0x1a0] sm:$0xff] }
 0xc5b   :  { %1772 = vmatprep.subr.bf16.mxu0 %v4369_v63  ;;  %1813 = vmatprep.subr.bf16.mxu1 %v4375_v33 }
 0xc5e   :  { %1773 = vmatpush1.bf16.msra.mxu0 %v4381_v34  ;;  %1814 = vmatpush1.bf16.msra.mxu1 %v4387_v36  ;;  %v3124_v34 = vld [vmem:[%s5621_s0 + $0x1a8] sm:$0xff] }
 0xc5f   :  { %1774 = vmatprep.subr.bf16.mxu0 %v4393_v24  ;;  %1815 = vmatprep.subr.bf16.mxu1 %v4399_v25 }
 0xc62   :  { %1775 = vmatpush1.bf16.msra.mxu0 %v4405_v26  ;;  %1816 = vmatpush1.bf16.msra.mxu1 %v4411_v27 }
 0xc63   :  { %1870 = vmatprep.subr.bf16.mxu0 %v4667_v37  ;;  %1911 = vmatprep.subr.bf16.mxu1 %v4823_v59 }
 0xd05   :  { %v1684_v63 = vpop.f32.mrf.mxu0  ;;  %v1725_v33 = vpop.f32.mrf.mxu1 }
 0xd06   :  { %v1732_v36 = vadd.f32 %v3123_v62, %v1684_v63  ;;  %v1734_v49 = vadd.f32 %v3125_v48, %v1725_v33  ;;  %v4903_v62 = vld [vmem:[%s5620_s1 + $0x4] ss:$16 sps:$4 sm:$0xff]   ;;  %v4909_v63 = vld [vmem:[%s5620_s1 + $0xc] ss:$16 sps:$4 sm:$0xff]   ;;  %v4915_v33 = vld [vmem:[%s5620_s1] ss:$16 sps:$4 sm:$0xff]  }
 0xd07   :  { %v1686_v24 = vpop.f32.mrf.mxu0  ;;  %v1727_v25 = vpop.f32.mrf.mxu1 }
 0xd08   :  { %v1736_v26 = vmul.f32 0.5, %v1732_v36  ;;  %v1733_v27 = vadd.f32 %v3124_v34, %v1686_v24  ;;  %v1735_v47 = vadd.f32 %v3126_v61, %v1727_v25  ;;  %v1738_v40 = vmul.f32 0.5, %v1734_v49  ;;  %v4921_v34 = vld [vmem:[%s5620_s1 + $0x8] ss:$16 sps:$4 sm:$0xff]   ;;  %v3127_v36 = vld [vmem:[%s5621_s0 + $0x1c0] sm:$0xff] }
 0xd09   :  { %v1688_v42 = vpop.f32.mrf.mxu0  ;;  %v1729_v43 = vpop.f32.mrf.mxu1 }
 0xd0a   :  { %3431 = vtanh.f32 %v1736_v26  ;;  %v1737_v45 = vmul.f32 0.5, %v1733_v27  ;;  %v3128_v26 = vld [vmem:[%s5621_s0 + $0x1c8] sm:$0xff] }
 0xd0b   :  { %v1689_v35 = vpop.f32.mrf.mxu0  ;;  %v1730_v46 = vpop.f32.mrf.mxu1 }
 0xd0c   :  { %3433 = vtanh.f32 %v1737_v45  ;;  %v3130_v35 = vld [vmem:[%s5621_s0 + $0x1d8] sm:$0xff] }
 0xd0d   :  { %3435 = vtanh.f32 %v1735_v47 }
 0xd0e   :  { %3437 = vtanh.f32 %v1738_v40 }
 0xd17   :  { %v3432_v50 = vpop.eup %3431 }
 0xd18   :  { %v1742_v51 = vmul.f32 0.5, %v3432_v50 }
 0xd19   :  { %v3434_v52 = vpop.eup %3433 }
 0xd1a   :  { %v1745_v4 = vadd.f32 0.5, %v1742_v51  ;;  %v1743_v5 = vmul.f32 0.5, %v3434_v52  ;;  %v3436_v23 = vpop.eup %3435  ;;  %v3129_v51 = vld [vmem:[%s5621_s0 + $0x1d0] sm:$0xff] }
 0xd1b   :  { %v3438_v44 = vpop.eup %3437 }
 0xd1c   :  { %v1746_v6 = vadd.f32 0.5, %v1743_v5  ;;  %v1750_v21 = vmul.f32 %v3436_v23, %v1745_v4  ;;  %v1744_v53 = vmul.f32 0.5, %v3438_v44 }
 0xd1e   :  { %v1749_v13 = vmul.f32 %v1746_v6, %v4684_v57  ;;  %v1747_v55 = vadd.f32 0.5, %v1744_v53  ;;  %v4867_v57 = vld [vmem:[%s5620_s1 + $0x40] ss:$16 sps:$4 sm:$0xff]  }
 0xd20   :  { %v4839_v22 = vadd.f32 %v1750_v21, %v1749_v13 }
 0xd22   :  { %3439 = vtanh.f32 %v4839_v22 }
 0xd2f   :  { %v3440_v3 = vpop.eup %3439 }
 0xd30   :  { %v1753_v56 = vmul.f32 %v3440_v3, %v1747_v55 }
 0xd32   :  { %v1759_v0 = vpack.c.bf16 %v1753_v56, %v1753_v56 }
 0xd34   :  { %1793 = vmatmul.mubr.bf16.vlgmr.msra.gmra.mxu0 %v1759_v0  ;;  %1834 = vmatmul.mubr.bf16.vlgmr.msra.gmra.mxu1 %v1759_v0 }
 0xd35   :  { %1871 = vmatpush1.bf16.msra.mxu0 %v4690_v54  ;;  %1912 = vmatpush1.bf16.msra.mxu1 %v4696_v7 }
 0xd36   :  { %1872 = vmatprep.subr.bf16.mxu0 %v4702_v8  ;;  %1913 = vmatprep.subr.bf16.mxu1 %v4708_v10 }
 0xd37   :  { %1902 = vmatprep.mubr.bf16.mxu0 %v3637_v1  ;;  %1943 = vmatprep.mubr.bf16.mxu1 %v3637_v1 }
 0xd39   :  { %1873 = vmatpush1.bf16.msra.mxu0 %v4716_v58  ;;  %1914 = vmatpush1.bf16.msra.mxu1 %v4722_v11 }
 0xd3a   :  { %1874 = vmatprep.subr.bf16.mxu0 %v4728_v12  ;;  %1915 = vmatprep.subr.bf16.mxu1 %v4734_v2 }
 0xd3d   :  { %1875 = vmatpush1.bf16.msra.mxu0 %v4740_v31  ;;  %1916 = vmatpush1.bf16.msra.mxu1 %v4746_v14 }
 0xd3e   :  { %1876 = vmatprep.subr.bf16.mxu0 %v4752_v15  ;;  %1917 = vmatprep.subr.bf16.mxu1 %v4758_v16 }
 0xd41   :  { %1877 = vmatpush1.bf16.msra.mxu0 %v4764_v17  ;;  %1918 = vmatpush1.bf16.msra.mxu1 %v4770_v9 }
 0xd42   :  { %1878 = vmatprep.subr.bf16.mxu0 %v4776_v18  ;;  %1919 = vmatprep.subr.bf16.mxu1 %v4782_v19 }
 0xd45   :  { %1879 = vmatpush1.bf16.msra.mxu0 %v4788_v20  ;;  %1920 = vmatpush1.bf16.msra.mxu1 %v4794_v38 }
 0xd46   :  { %1880 = vmatprep.subr.bf16.mxu0 %v4800_v39  ;;  %1921 = vmatprep.subr.bf16.mxu1 %v4806_v41 }
 0xd49   :  { %1881 = vmatpush1.bf16.msra.mxu0 %v4867_v57  ;;  %1922 = vmatpush1.bf16.msra.mxu1 %v4873_v60 }
 0xd4a   :  { %1882 = vmatprep.subr.bf16.mxu0 %v4879_v28  ;;  %1923 = vmatprep.subr.bf16.mxu1 %v4885_v29 }
 0xd4d   :  { %1883 = vmatpush1.bf16.msra.mxu0 %v4891_v30  ;;  %1924 = vmatpush1.bf16.msra.mxu1 %v4897_v32 }
 0xd4e   :  { %1884 = vmatprep.subr.bf16.mxu0 %v4903_v62  ;;  %1925 = vmatprep.subr.bf16.mxu1 %v4909_v63 }
 0xd51   :  { %1885 = vmatpush1.bf16.msra.mxu0 %v4915_v33  ;;  %1926 = vmatpush1.bf16.msra.mxu1 %v4921_v34 }
 0xd52   :  { %1980 = vmatprep.subr.bf16.mxu0 %v4667_v37  ;;  %2021 = vmatprep.subr.bf16.mxu1 %v4823_v59 }
 0xdf4   :  { %v1794_v24 = vpop.f32.mrf.mxu0  ;;  %v1835_v25 = vpop.f32.mrf.mxu1 }
 0xdf5   :  { %v1842_v27 = vadd.f32 %v3127_v36, %v1794_v24  ;;  %v1844_v52 = vadd.f32 %v3129_v51, %v1835_v25 }
 0xdf6   :  { %v1796_v61 = vpop.f32.mrf.mxu0  ;;  %v1837_v42 = vpop.f32.mrf.mxu1 }
 0xdf7   :  { %v1846_v43 = vmul.f32 0.5, %v1842_v27  ;;  %v1843_v45 = vadd.f32 %v3128_v26, %v1796_v61  ;;  %v1845_v50 = vadd.f32 %v3130_v35, %v1837_v42  ;;  %v1848_v4 = vmul.f32 0.5, %v1844_v52 }
 0xdf8   :  { %v1798_v46 = vpop.f32.mrf.mxu0  ;;  %v1839_v47 = vpop.f32.mrf.mxu1 }
 0xdf9   :  { %3441 = vtanh.f32 %v1846_v43  ;;  %v1847_v48 = vmul.f32 0.5, %v1843_v45  ;;  %v3132_v43 = vld [vmem:[%s5621_s0 + $0x1e8] sm:$0xff] }
 0xdfa   :  { %v1799_v49 = vpop.f32.mrf.mxu0  ;;  %v1840_v40 = vpop.f32.mrf.mxu1 }
 0xdfb   :  { %3443 = vtanh.f32 %v1847_v48  ;;  %v3134_v49 = vld [vmem:[%s5621_s0 + $0x1f8] sm:$0xff] }
 0xdfc   :  { %3445 = vtanh.f32 %v1845_v50 }
 0xdfd   :  { %3447 = vtanh.f32 %v1848_v4 }
 0xe06   :  { %v3442_v5 = vpop.eup %3441 }
 0xe07   :  { %v1852_v6 = vmul.f32 0.5, %v3442_v5 }
 0xe08   :  { %v3444_v23 = vpop.eup %3443 }
 0xe09   :  { %v1855_v13 = vadd.f32 0.5, %v1852_v6  ;;  %v1853_v21 = vmul.f32 0.5, %v3444_v23  ;;  %v3446_v53 = vpop.eup %3445  ;;  %v3133_v6 = vld [vmem:[%s5621_s0 + $0x1f0] sm:$0xff] }
 0xe0a   :  { %v3448_v0 = vpop.eup %3447 }
 0xe0b   :  { %v1856_v44 = vadd.f32 0.5, %v1853_v21  ;;  %v1860_v3 = vmul.f32 %v3446_v53, %v1855_v13  ;;  %v1854_v36 = vmul.f32 0.5, %v3448_v0 }
 0xe0d   :  { %v1859_v55 = vmul.f32 %v1856_v44, %v4839_v22  ;;  %v1857_v24 = vadd.f32 0.5, %v1854_v36  ;;  %v3131_v22 = vld [vmem:[%s5621_s0 + $0x1e0] sm:$0xff] }
 0xe0f   :  { %v4939_v56 = vadd.f32 %v1860_v3, %v1859_v55 }
 0xe11   :  { %3449 = vtanh.f32 %v4939_v56 }
 0xe1e   :  { %v3450_v25 = vpop.eup %3449 }
 0xe1f   :  { %v1863_v26 = vmul.f32 %v3450_v25, %v1857_v24 }
 0xe21   :  { %v1869_v27 = vpack.c.bf16 %v1863_v26, %v1863_v26 }
 0xe23   :  { %1903 = vmatmul.mubr.bf16.vlgmr.msra.gmra.mxu0 %v1869_v27  ;;  %1944 = vmatmul.mubr.bf16.vlgmr.msra.gmra.mxu1 %v1869_v27 }
 0xe24   :  { %1981 = vmatpush1.bf16.msra.mxu0 %v4690_v54  ;;  %2022 = vmatpush1.bf16.msra.mxu1 %v4696_v7 }
 0xe25   :  { %1982 = vmatprep.subr.bf16.mxu0 %v4702_v8  ;;  %2023 = vmatprep.subr.bf16.mxu1 %v4708_v10 }
 0xe26   :  { %2012 = vmatprep.mubr.bf16.mxu0 %v3637_v1  ;;  %2053 = vmatprep.mubr.bf16.mxu1 %v3637_v1 }
 0xe28   :  { %1983 = vmatpush1.bf16.msra.mxu0 %v4716_v58  ;;  %2024 = vmatpush1.bf16.msra.mxu1 %v4722_v11 }
 0xe29   :  { %1984 = vmatprep.subr.bf16.mxu0 %v4728_v12  ;;  %2025 = vmatprep.subr.bf16.mxu1 %v4734_v2 }
 0xe2c   :  { %1985 = vmatpush1.bf16.msra.mxu0 %v4740_v31  ;;  %2026 = vmatpush1.bf16.msra.mxu1 %v4746_v14 }
 0xe2d   :  { %1986 = vmatprep.subr.bf16.mxu0 %v4752_v15  ;;  %2027 = vmatprep.subr.bf16.mxu1 %v4758_v16 }
 0xe30   :  { %1987 = vmatpush1.bf16.msra.mxu0 %v4764_v17  ;;  %2028 = vmatpush1.bf16.msra.mxu1 %v4770_v9 }
 0xe31   :  { %1988 = vmatprep.subr.bf16.mxu0 %v4776_v18  ;;  %2029 = vmatprep.subr.bf16.mxu1 %v4782_v19 }
 0xe34   :  { %1989 = vmatpush1.bf16.msra.mxu0 %v4788_v20  ;;  %2030 = vmatpush1.bf16.msra.mxu1 %v4794_v38 }
 0xe35   :  { %1990 = vmatprep.subr.bf16.mxu0 %v4800_v39  ;;  %2031 = vmatprep.subr.bf16.mxu1 %v4806_v41 }
 0xe38   :  { %1991 = vmatpush1.bf16.msra.mxu0 %v4867_v57  ;;  %2032 = vmatpush1.bf16.msra.mxu1 %v4873_v60 }
 0xe39   :  { %1992 = vmatprep.subr.bf16.mxu0 %v4879_v28  ;;  %2033 = vmatprep.subr.bf16.mxu1 %v4885_v29 }
 0xe3c   :  { %1993 = vmatpush1.bf16.msra.mxu0 %v4891_v30  ;;  %2034 = vmatpush1.bf16.msra.mxu1 %v4897_v32 }
 0xe3d   :  { %1994 = vmatprep.subr.bf16.mxu0 %v4903_v62  ;;  %2035 = vmatprep.subr.bf16.mxu1 %v4909_v63 }
 0xe40   :  { %1995 = vmatpush1.bf16.msra.mxu0 %v4915_v33  ;;  %2036 = vmatpush1.bf16.msra.mxu1 %v4921_v34 }
 0xe41   :  { %2090 = vmatprep.subr.bf16.mxu0 %v4667_v37  ;;  %2131 = vmatprep.subr.bf16.mxu1 %v4823_v59 }
 0xee3   :  { %v1904_v61 = vpop.f32.mrf.mxu0  ;;  %v1945_v42 = vpop.f32.mrf.mxu1 }
 0xee4   :  { %v1952_v45 = vadd.f32 %v3131_v22, %v1904_v61  ;;  %v1954_v23 = vadd.f32 %v3133_v6, %v1945_v42 }
 0xee5   :  { %v1906_v35 = vpop.f32.mrf.mxu0  ;;  %v1947_v46 = vpop.f32.mrf.mxu1 }
 0xee6   :  { %v1956_v47 = vmul.f32 0.5, %v1952_v45  ;;  %v1953_v48 = vadd.f32 %v3132_v43, %v1906_v35  ;;  %v1955_v5 = vadd.f32 %v3134_v49, %v1947_v46  ;;  %v1958_v13 = vmul.f32 0.5, %v1954_v23 }
 0xee7   :  { %v1908_v40 = vpop.f32.mrf.mxu0  ;;  %v1949_v50 = vpop.f32.mrf.mxu1 }
 0xee8   :  { %3451 = vtanh.f32 %v1956_v47  ;;  %v1957_v51 = vmul.f32 0.5, %v1953_v48  ;;  %v3136_v47 = vld [vmem:[%s5621_s0 + $0x208] sm:$0xff] }
 0xee9   :  { %v1909_v52 = vpop.f32.mrf.mxu0  ;;  %v1950_v4 = vpop.f32.mrf.mxu1 }
 0xeea   :  { %3453 = vtanh.f32 %v1957_v51  ;;  %v3138_v52 = vld [vmem:[%s5621_s0 + $0x218] sm:$0xff] }
 0xeeb   :  { %3455 = vtanh.f32 %v1955_v5 }
 0xeec   :  { %3457 = vtanh.f32 %v1958_v13 }
 0xef5   :  { %v3452_v21 = vpop.eup %3451 }
 0xef6   :  { %v1962_v44 = vmul.f32 0.5, %v3452_v21 }
 0xef7   :  { %v3454_v53 = vpop.eup %3453 }
 0xef8   :  { %v1965_v55 = vadd.f32 0.5, %v1962_v44  ;;  %v1963_v3 = vmul.f32 0.5, %v3454_v53  ;;  %v3456_v36 = vpop.eup %3455  ;;  %v3137_v44 = vld [vmem:[%s5621_s0 + $0x210] sm:$0xff] }
 0xef9   :  { %v3458_v27 = vpop.eup %3457 }
 0xefa   :  { %v1966_v0 = vadd.f32 0.5, %v1963_v3  ;;  %v1970_v25 = vmul.f32 %v3456_v36, %v1965_v55  ;;  %v1964_v22 = vmul.f32 0.5, %v3458_v27 }
 0xefc   :  { %v1969_v24 = vmul.f32 %v1966_v0, %v4939_v56  ;;  %v1967_v61 = vadd.f32 0.5, %v1964_v22  ;;  %v3135_v56 = vld [vmem:[%s5621_s0 + $0x200] sm:$0xff] }
 0xefe   :  { %v4989_v26 = vadd.f32 %v1970_v25, %v1969_v24 }
 0xf00   :  { %3459 = vtanh.f32 %v4989_v26 }
 0xf0d   :  { %v3460_v42 = vpop.eup %3459 }
 0xf0e   :  { %v1973_v43 = vmul.f32 %v3460_v42, %v1967_v61 }
 0xf10   :  { %v1979_v45 = vpack.c.bf16 %v1973_v43, %v1973_v43 }
 0xf12   :  { %2013 = vmatmul.mubr.bf16.vlgmr.msra.gmra.mxu0 %v1979_v45  ;;  %2054 = vmatmul.mubr.bf16.vlgmr.msra.gmra.mxu1 %v1979_v45 }
 0xf13   :  { %2091 = vmatpush1.bf16.msra.mxu0 %v4690_v54  ;;  %2132 = vmatpush1.bf16.msra.mxu1 %v4696_v7 }
 0xf14   :  { %2092 = vmatprep.subr.bf16.mxu0 %v4702_v8  ;;  %2133 = vmatprep.subr.bf16.mxu1 %v4708_v10 }
 0xf15   :  { %2122 = vmatprep.mubr.bf16.mxu0 %v3637_v1  ;;  %2163 = vmatprep.mubr.bf16.mxu1 %v3637_v1 }
 0xf17   :  { %2093 = vmatpush1.bf16.msra.mxu0 %v4716_v58  ;;  %2134 = vmatpush1.bf16.msra.mxu1 %v4722_v11 }
 0xf18   :  { %2094 = vmatprep.subr.bf16.mxu0 %v4728_v12  ;;  %2135 = vmatprep.subr.bf16.mxu1 %v4734_v2 }
 0xf1b   :  { %2095 = vmatpush1.bf16.msra.mxu0 %v4740_v31  ;;  %2136 = vmatpush1.bf16.msra.mxu1 %v4746_v14 }
 0xf1c   :  { %2096 = vmatprep.subr.bf16.mxu0 %v4752_v15  ;;  %2137 = vmatprep.subr.bf16.mxu1 %v4758_v16 }
 0xf1f   :  { %2097 = vmatpush1.bf16.msra.mxu0 %v4764_v17  ;;  %2138 = vmatpush1.bf16.msra.mxu1 %v4770_v9 }
 0xf20   :  { %2098 = vmatprep.subr.bf16.mxu0 %v4776_v18  ;;  %2139 = vmatprep.subr.bf16.mxu1 %v4782_v19 }
 0xf23   :  { %2099 = vmatpush1.bf16.msra.mxu0 %v4788_v20  ;;  %2140 = vmatpush1.bf16.msra.mxu1 %v4794_v38 }
 0xf24   :  { %2100 = vmatprep.subr.bf16.mxu0 %v4800_v39  ;;  %2141 = vmatprep.subr.bf16.mxu1 %v4806_v41 }
 0xf27   :  { %2101 = vmatpush1.bf16.msra.mxu0 %v4867_v57  ;;  %2142 = vmatpush1.bf16.msra.mxu1 %v4873_v60 }
 0xf28   :  { %2102 = vmatprep.subr.bf16.mxu0 %v4879_v28  ;;  %2143 = vmatprep.subr.bf16.mxu1 %v4885_v29 }
 0xf2b   :  { %2103 = vmatpush1.bf16.msra.mxu0 %v4891_v30  ;;  %2144 = vmatpush1.bf16.msra.mxu1 %v4897_v32 }
 0xf2c   :  { %2104 = vmatprep.subr.bf16.mxu0 %v4903_v62  ;;  %2145 = vmatprep.subr.bf16.mxu1 %v4909_v63 }
 0xf2f   :  { %2105 = vmatpush1.bf16.msra.mxu0 %v4915_v33  ;;  %2146 = vmatpush1.bf16.msra.mxu1 %v4921_v34 }
 0xf30   :  { %2200 = vmatprep.subr.bf16.mxu0 %v4667_v37  ;;  %2241 = vmatprep.subr.bf16.mxu1 %v4823_v59 }
 0xfd2   :  { %v2014_v35 = vpop.f32.mrf.mxu0  ;;  %v2055_v46 = vpop.f32.mrf.mxu1 }
 0xfd3   :  { %v2062_v48 = vadd.f32 %v3135_v56, %v2014_v35  ;;  %v2064_v53 = vadd.f32 %v3137_v44, %v2055_v46 }
 0xfd4   :  { %v2016_v49 = vpop.f32.mrf.mxu0  ;;  %v2057_v40 = vpop.f32.mrf.mxu1 }
 0xfd5   :  { %v2066_v50 = vmul.f32 0.5, %v2062_v48  ;;  %v2063_v51 = vadd.f32 %v3136_v47, %v2016_v49  ;;  %v2065_v21 = vadd.f32 %v3138_v52, %v2057_v40  ;;  %v2068_v55 = vmul.f32 0.5, %v2064_v53 }
 0xfd6   :  { %v2018_v4 = vpop.f32.mrf.mxu0  ;;  %v2059_v5 = vpop.f32.mrf.mxu1 }
 0xfd7   :  { %3461 = vtanh.f32 %v2066_v50  ;;  %v2067_v6 = vmul.f32 0.5, %v2063_v51  ;;  %v3140_v50 = vld [vmem:[%s5621_s0 + $0x228] sm:$0xff] }
 0xfd8   :  { %v2019_v23 = vpop.f32.mrf.mxu0  ;;  %v2060_v13 = vpop.f32.mrf.mxu1 }
 0xfd9   :  { %3463 = vtanh.f32 %v2067_v6  ;;  %v3142_v23 = vld [vmem:[%s5621_s0 + $0x238] sm:$0xff] }
 0xfda   :  { %3465 = vtanh.f32 %v2065_v21 }
 0xfdb   :  { %3467 = vtanh.f32 %v2068_v55 }
 0xfe4   :  { %v3462_v3 = vpop.eup %3461 }
 0xfe5   :  { %v2072_v0 = vmul.f32 0.5, %v3462_v3 }
 0xfe6   :  { %v3464_v36 = vpop.eup %3463 }
 0xfe7   :  { %v2075_v24 = vadd.f32 0.5, %v2072_v0  ;;  %v2073_v25 = vmul.f32 0.5, %v3464_v36  ;;  %v3466_v22 = vpop.eup %3465  ;;  %v3141_v0 = vld [vmem:[%s5621_s0 + $0x230] sm:$0xff] }
 0xfe8   :  { %v3468_v45 = vpop.eup %3467 }
 0xfe9   :  { %v2076_v27 = vadd.f32 0.5, %v2073_v25  ;;  %v2080_v42 = vmul.f32 %v3466_v22, %v2075_v24  ;;  %v2074_v56 = vmul.f32 0.5, %v3468_v45 }
 0xfeb   :  { %v2079_v61 = vmul.f32 %v2076_v27, %v4989_v26  ;;  %v2077_v35 = vadd.f32 0.5, %v2074_v56  ;;  %v3139_v26 = vld [vmem:[%s5621_s0 + $0x220] sm:$0xff] }
 0xfed   :  { %v5039_v43 = vadd.f32 %v2080_v42, %v2079_v61 }
 0xfef   :  { %3469 = vtanh.f32 %v5039_v43 }
 0xffc   :  { %v3470_v46 = vpop.eup %3469 }
 0xffd   :  { %v2083_v47 = vmul.f32 %v3470_v46, %v2077_v35 }
 0xfff   :  { %v2089_v48 = vpack.c.bf16 %v2083_v47, %v2083_v47 }
0x1001   :  { %2123 = vmatmul.mubr.bf16.vlgmr.msra.gmra.mxu0 %v2089_v48  ;;  %2164 = vmatmul.mubr.bf16.vlgmr.msra.gmra.mxu1 %v2089_v48 }
0x1002   :  { %2201 = vmatpush1.bf16.msra.mxu0 %v4690_v54  ;;  %2242 = vmatpush1.bf16.msra.mxu1 %v4696_v7 }
0x1003   :  { %2202 = vmatprep.subr.bf16.mxu0 %v4702_v8  ;;  %2243 = vmatprep.subr.bf16.mxu1 %v4708_v10 }
0x1004   :  { %2232 = vmatprep.mubr.bf16.mxu0 %v3637_v1  ;;  %2273 = vmatprep.mubr.bf16.mxu1 %v3637_v1 }
0x1006   :  { %2203 = vmatpush1.bf16.msra.mxu0 %v4716_v58  ;;  %2244 = vmatpush1.bf16.msra.mxu1 %v4722_v11 }
0x1007   :  { %2204 = vmatprep.subr.bf16.mxu0 %v4728_v12  ;;  %2245 = vmatprep.subr.bf16.mxu1 %v4734_v2 }
0x100a   :  { %2205 = vmatpush1.bf16.msra.mxu0 %v4740_v31  ;;  %2246 = vmatpush1.bf16.msra.mxu1 %v4746_v14 }
0x100b   :  { %2206 = vmatprep.subr.bf16.mxu0 %v4752_v15  ;;  %2247 = vmatprep.subr.bf16.mxu1 %v4758_v16 }
0x100e   :  { %2207 = vmatpush1.bf16.msra.mxu0 %v4764_v17  ;;  %2248 = vmatpush1.bf16.msra.mxu1 %v4770_v9 }
0x100f   :  { %2208 = vmatprep.subr.bf16.mxu0 %v4776_v18  ;;  %2249 = vmatprep.subr.bf16.mxu1 %v4782_v19 }
0x1012   :  { %2209 = vmatpush1.bf16.msra.mxu0 %v4788_v20  ;;  %2250 = vmatpush1.bf16.msra.mxu1 %v4794_v38 }
0x1013   :  { %2210 = vmatprep.subr.bf16.mxu0 %v4800_v39  ;;  %2251 = vmatprep.subr.bf16.mxu1 %v4806_v41 }
0x1016   :  { %2211 = vmatpush1.bf16.msra.mxu0 %v4867_v57  ;;  %2252 = vmatpush1.bf16.msra.mxu1 %v4873_v60 }
0x1017   :  { %2212 = vmatprep.subr.bf16.mxu0 %v4879_v28  ;;  %2253 = vmatprep.subr.bf16.mxu1 %v4885_v29 }
0x101a   :  { %2213 = vmatpush1.bf16.msra.mxu0 %v4891_v30  ;;  %2254 = vmatpush1.bf16.msra.mxu1 %v4897_v32 }
0x101b   :  { %2214 = vmatprep.subr.bf16.mxu0 %v4903_v62  ;;  %2255 = vmatprep.subr.bf16.mxu1 %v4909_v63 }
0x101e   :  { %2215 = vmatpush1.bf16.msra.mxu0 %v4915_v33  ;;  %2256 = vmatpush1.bf16.msra.mxu1 %v4921_v34 }
0x101f   :  { %2310 = vmatprep.subr.bf16.mxu0 %v4667_v37  ;;  %2351 = vmatprep.subr.bf16.mxu1 %v4823_v59 }
0x10c1   :  { %v2124_v49 = vpop.f32.mrf.mxu0  ;;  %v2165_v40 = vpop.f32.mrf.mxu1 }
0x10c2   :  { %v2172_v51 = vadd.f32 %v3139_v26, %v2124_v49  ;;  %v2174_v36 = vadd.f32 %v3141_v0, %v2165_v40 }
0x10c3   :  { %v2126_v52 = vpop.f32.mrf.mxu0  ;;  %v2167_v4 = vpop.f32.mrf.mxu1 }
0x10c4   :  { %v2176_v5 = vmul.f32 0.5, %v2172_v51  ;;  %v2173_v6 = vadd.f32 %v3140_v50, %v2126_v52  ;;  %v2175_v3 = vadd.f32 %v3142_v23, %v2167_v4  ;;  %v2178_v24 = vmul.f32 0.5, %v2174_v36 }
0x10c5   :  { %v2128_v13 = vpop.f32.mrf.mxu0  ;;  %v2169_v21 = vpop.f32.mrf.mxu1 }
0x10c6   :  { %3471 = vtanh.f32 %v2176_v5  ;;  %v2177_v44 = vmul.f32 0.5, %v2173_v6  ;;  %v3144_v5 = vld [vmem:[%s5621_s0 + $0x248] sm:$0xff] }
0x10c7   :  { %v2129_v53 = vpop.f32.mrf.mxu0  ;;  %v2170_v55 = vpop.f32.mrf.mxu1 }
0x10c8   :  { %3473 = vtanh.f32 %v2177_v44 }
0x10c9   :  { %3475 = vtanh.f32 %v2175_v3 }
0x10ca   :  { %3477 = vtanh.f32 %v2178_v24 }
0x10d3   :  { %v3472_v25 = vpop.eup %3471 }
0x10d4   :  { %v2182_v27 = vmul.f32 0.5, %v3472_v25  ;;  %v3145_v25 = vld [vmem:[%s5621_s0 + $0x250] sm:$0xff] }
0x10d5   :  { %v3474_v22 = vpop.eup %3473 }
0x10d6   :  { %v2185_v61 = vadd.f32 0.5, %v2182_v27  ;;  %v2183_v42 = vmul.f32 0.5, %v3474_v22  ;;  %v3476_v56 = vpop.eup %3475 }
0x10d7   :  { %v3478_v48 = vpop.eup %3477 }
0x10d8   :  { %v2186_v45 = vadd.f32 0.5, %v2183_v42  ;;  %v2190_v46 = vmul.f32 %v3476_v56, %v2185_v61  ;;  %v2184_v26 = vmul.f32 0.5, %v3478_v48 }
0x10da   :  { %v2189_v35 = vmul.f32 %v2186_v45, %v5039_v43  ;;  %v2187_v49 = vadd.f32 0.5, %v2184_v26  ;;  %v3143_v43 = vld [vmem:[%s5621_s0 + $0x240] sm:$0xff] }
0x10dc   :  { %v5089_v47 = vadd.f32 %v2190_v46, %v2189_v35 }
0x10de   :  { %3479 = vtanh.f32 %v5089_v47 }
0x10eb   :  { %v3480_v40 = vpop.eup %3479 }
0x10ec   :  { %v2193_v50 = vmul.f32 %v3480_v40, %v2187_v49 }
0x10ee   :  { %v2199_v51 = vpack.c.bf16 %v2193_v50, %v2193_v50 }
0x10f0   :  { %2233 = vmatmul.mubr.bf16.vlgmr.msra.gmra.mxu0 %v2199_v51  ;;  %2274 = vmatmul.mubr.bf16.vlgmr.msra.gmra.mxu1 %v2199_v51 }
0x10f1   :  { %2311 = vmatpush1.bf16.msra.mxu0 %v4690_v54  ;;  %2352 = vmatpush1.bf16.msra.mxu1 %v4696_v7 }
0x10f2   :  { %2312 = vmatprep.subr.bf16.mxu0 %v4702_v8  ;;  %2353 = vmatprep.subr.bf16.mxu1 %v4708_v10 }
0x10f3   :  { %2342 = vmatprep.mubr.bf16.mxu0 %v3637_v1  ;;  %2383 = vmatprep.mubr.bf16.mxu1 %v3637_v1 }
0x10f5   :  { %2313 = vmatpush1.bf16.msra.mxu0 %v4716_v58  ;;  %2354 = vmatpush1.bf16.msra.mxu1 %v4722_v11 }
0x10f6   :  { %2314 = vmatprep.subr.bf16.mxu0 %v4728_v12  ;;  %2355 = vmatprep.subr.bf16.mxu1 %v4734_v2 }
0x10f9   :  { %2315 = vmatpush1.bf16.msra.mxu0 %v4740_v31  ;;  %2356 = vmatpush1.bf16.msra.mxu1 %v4746_v14 }
0x10fa   :  { %2316 = vmatprep.subr.bf16.mxu0 %v4752_v15  ;;  %2357 = vmatprep.subr.bf16.mxu1 %v4758_v16 }
0x10fd   :  { %2317 = vmatpush1.bf16.msra.mxu0 %v4764_v17  ;;  %2358 = vmatpush1.bf16.msra.mxu1 %v4770_v9 }
0x10fe   :  { %2318 = vmatprep.subr.bf16.mxu0 %v4776_v18  ;;  %2359 = vmatprep.subr.bf16.mxu1 %v4782_v19 }
0x1101   :  { %2319 = vmatpush1.bf16.msra.mxu0 %v4788_v20  ;;  %2360 = vmatpush1.bf16.msra.mxu1 %v4794_v38 }
0x1102   :  { %2320 = vmatprep.subr.bf16.mxu0 %v4800_v39  ;;  %2361 = vmatprep.subr.bf16.mxu1 %v4806_v41 }
0x1105   :  { %2321 = vmatpush1.bf16.msra.mxu0 %v4867_v57  ;;  %2362 = vmatpush1.bf16.msra.mxu1 %v4873_v60 }
0x1106   :  { %2322 = vmatprep.subr.bf16.mxu0 %v4879_v28  ;;  %2363 = vmatprep.subr.bf16.mxu1 %v4885_v29 }
0x1109   :  { %2323 = vmatpush1.bf16.msra.mxu0 %v4891_v30  ;;  %2364 = vmatpush1.bf16.msra.mxu1 %v4897_v32 }
0x110a   :  { %2324 = vmatprep.subr.bf16.mxu0 %v4903_v62  ;;  %2365 = vmatprep.subr.bf16.mxu1 %v4909_v63 }
0x110d   :  { %2325 = vmatpush1.bf16.msra.mxu0 %v4915_v33  ;;  %2366 = vmatpush1.bf16.msra.mxu1 %v4921_v34 }
0x110e   :  { %2420 = vmatprep.subr.bf16.mxu0 %v4667_v37  ;;  %2461 = vmatprep.subr.bf16.mxu1 %v4823_v59  ;;  %v3146_v37 = vld [vmem:[%s5621_s0 + $0x258] sm:$0xff] }
0x11b0   :  { %v2234_v52 = vpop.f32.mrf.mxu0  ;;  %v2275_v4 = vpop.f32.mrf.mxu1 }
0x11b1   :  { %v2282_v6 = vadd.f32 %v3143_v43, %v2234_v52  ;;  %v2284_v27 = vadd.f32 %v3145_v25, %v2275_v4 }
0x11b2   :  { %v2236_v23 = vpop.f32.mrf.mxu0  ;;  %v2277_v13 = vpop.f32.mrf.mxu1 }
0x11b3   :  { %v2286_v21 = vmul.f32 0.5, %v2282_v6  ;;  %v2283_v44 = vadd.f32 %v3144_v5, %v2236_v23  ;;  %v2285_v24 = vadd.f32 %v3146_v37, %v2277_v13  ;;  %v2288_v22 = vmul.f32 0.5, %v2284_v27 }
0x11b4   :  { %v2238_v53 = vpop.f32.mrf.mxu0  ;;  %v2279_v55 = vpop.f32.mrf.mxu1 }
0x11b5   :  { %3481 = vtanh.f32 %v2286_v21  ;;  %v2287_v3 = vmul.f32 0.5, %v2283_v44 }
0x11b6   :  { %v2239_v0 = vpop.f32.mrf.mxu0  ;;  %v2280_v36 = vpop.f32.mrf.mxu1 }
0x11b7   :  { %3483 = vtanh.f32 %v2287_v3 }
0x11b8   :  { %3485 = vtanh.f32 %v2285_v24 }
0x11b9   :  { %3487 = vtanh.f32 %v2288_v22  ;;  %v5200_v22 = vld [vmem:[%s5620_s1 + $0xe0] ss:$16 sps:$4 sm:$0xff]  }
0x11c2   :  { %v3482_v61 = vpop.eup %3481 }
0x11c3   :  { %v2292_v42 = vmul.f32 0.5, %v3482_v61  ;;  %v5206_v61 = vld [vmem:[%s5620_s1 + $0xe8] ss:$16 sps:$4 sm:$0xff]  }
0x11c4   :  { %v3484_v45 = vpop.eup %3483 }
0x11c5   :  { %v2295_v56 = vadd.f32 0.5, %v2292_v42  ;;  %v2293_v35 = vmul.f32 0.5, %v3484_v45  ;;  %v3486_v48 = vpop.eup %3485  ;;  %v5212_v42 = vld [vmem:[%s5620_s1 + $0xc4] ss:$16 sps:$4 sm:$0xff]   ;;  %v5218_v45 = vld [vmem:[%s5620_s1 + $0xcc] ss:$16 sps:$4 sm:$0xff]  }
0x11c6   :  { %v3488_v50 = vpop.eup %3487 }
0x11c7   :  { %v2296_v46 = vadd.f32 0.5, %v2293_v35  ;;  %v2300_v49 = vmul.f32 %v3486_v48, %v2295_v56  ;;  %v2294_v51 = vmul.f32 0.5, %v3488_v50  ;;  %v5226_v56 = vld [vmem:[%s5620_s1 + $0xc0] ss:$16 sps:$4 sm:$0xff]   ;;  %v5232_v35 = vld [vmem:[%s5620_s1 + $0xc8] ss:$16 sps:$4 sm:$0xff]  }
0x11c8   :  { %v5244_v48 = vld [vmem:[%s5620_s1 + $0xac] ss:$16 sps:$4 sm:$0xff]  }
0x11c9   :  { %v2299_v26 = vmul.f32 %v2296_v46, %v5089_v47  ;;  %v2297_v43 = vadd.f32 0.5, %v2294_v51  ;;  %v5238_v46 = vld [vmem:[%s5620_s1 + $0xa4] ss:$16 sps:$4 sm:$0xff]   ;;  %v5268_v50 = vld [vmem:[%s5620_s1 + $0x8c] ss:$16 sps:$4 sm:$0xff]  }
0x11ca   :  { %v5274_v51 = vld [vmem:[%s5620_s1 + $0x80] ss:$16 sps:$4 sm:$0xff]  }
0x11cb   :  { %v5139_v40 = vadd.f32 %v2300_v49, %v2299_v26  ;;  %v5250_v26 = vld [vmem:[%s5620_s1 + $0xa0] ss:$16 sps:$4 sm:$0xff]   ;;  %v5256_v49 = vld [vmem:[%s5620_s1 + $0xa8] ss:$16 sps:$4 sm:$0xff]  }
0x11cd   :  { %3489 = vtanh.f32 %v5139_v40 }
0x11da   :  { %v3490_v52 = vpop.eup %3489 }
0x11db   :  { %v2303_v4 = vmul.f32 %v3490_v52, %v2297_v43  ;;  %v5280_v43 = vld [vmem:[%s5620_s1 + $0x88] ss:$16 sps:$4 sm:$0xff]   ;;  %v5286_v52 = vld [vmem:[%s5620_s1 + $0x64] ss:$16 sps:$4 sm:$0xff]  }
0x11dd   :  { %v2309_v5 = vpack.c.bf16 %v2303_v4, %v2303_v4  ;;  %v5292_v4 = vld [vmem:[%s5620_s1 + $0x6c] ss:$16 sps:$4 sm:$0xff]  }
0x11df   :  { %2343 = vmatmul.mubr.bf16.vlgmr.msra.gmra.mxu0 %v2309_v5  ;;  %2384 = vmatmul.mubr.bf16.vlgmr.msra.gmra.mxu1 %v2309_v5  ;;  %v5298_v5 = vld [vmem:[%s5620_s1 + $0x60] ss:$16 sps:$4 sm:$0xff]  }
0x11e0   :  { %2421 = vmatpush1.bf16.msra.mxu0 %v4690_v54  ;;  %2462 = vmatpush1.bf16.msra.mxu1 %v4696_v7  ;;  %v5177_v54 = vld [vmem:[%s5620_s1 + $0xe4] ss:$16 sps:$4 sm:$0xff]  }
0x11e1   :  { %2422 = vmatprep.subr.bf16.mxu0 %v4702_v8  ;;  %2463 = vmatprep.subr.bf16.mxu1 %v4708_v10  ;;  %v3147_v7 = vld [vmem:[%s5621_s0 + $0x260] sm:$0xff] }
0x11e2   :  { %2452 = vmatprep.mubr.bf16.mxu0 %v3637_v1  ;;  %2493 = vmatprep.mubr.bf16.mxu1 %v3637_v1 }
0x11e4   :  { %2423 = vmatpush1.bf16.msra.mxu0 %v4716_v58  ;;  %2464 = vmatpush1.bf16.msra.mxu1 %v4722_v11  ;;  %v3148_v58 = vld [vmem:[%s5621_s0 + $0x268] sm:$0xff] }
0x11e5   :  { %2424 = vmatprep.subr.bf16.mxu0 %v4728_v12  ;;  %2465 = vmatprep.subr.bf16.mxu1 %v4734_v2 }
0x11e8   :  { %2425 = vmatpush1.bf16.msra.mxu0 %v4740_v31  ;;  %2466 = vmatpush1.bf16.msra.mxu1 %v4746_v14 }
0x11e9   :  { %2426 = vmatprep.subr.bf16.mxu0 %v4752_v15  ;;  %2467 = vmatprep.subr.bf16.mxu1 %v4758_v16  ;;  %v3150_v15 = vld [vmem:[%s5621_s0 + $0x278] sm:$0xff] }
0x11ec   :  { %2427 = vmatpush1.bf16.msra.mxu0 %v4764_v17  ;;  %2468 = vmatpush1.bf16.msra.mxu1 %v4770_v9 }
0x11ed   :  { %2428 = vmatprep.subr.bf16.mxu0 %v4776_v18  ;;  %2469 = vmatprep.subr.bf16.mxu1 %v4782_v19 }
0x11f0   :  { %2429 = vmatpush1.bf16.msra.mxu0 %v4788_v20  ;;  %2470 = vmatpush1.bf16.msra.mxu1 %v4794_v38  ;;  %v3149_v38 = vld [vmem:[%s5621_s0 + $0x270] sm:$0xff] }
0x11f1   :  { %2430 = vmatprep.subr.bf16.mxu0 %v4800_v39  ;;  %2471 = vmatprep.subr.bf16.mxu1 %v4806_v41 }
0x11f4   :  { %2431 = vmatpush1.bf16.msra.mxu0 %v4867_v57  ;;  %2472 = vmatpush1.bf16.msra.mxu1 %v4873_v60 }
0x11f5   :  { %2432 = vmatprep.subr.bf16.mxu0 %v4879_v28  ;;  %2473 = vmatprep.subr.bf16.mxu1 %v4885_v29 }
0x11f8   :  { %2433 = vmatpush1.bf16.msra.mxu0 %v4891_v30  ;;  %2474 = vmatpush1.bf16.msra.mxu1 %v4897_v32 }
0x11f9   :  { %2434 = vmatprep.subr.bf16.mxu0 %v4903_v62  ;;  %2475 = vmatprep.subr.bf16.mxu1 %v4909_v63 }
0x11fc   :  { %2435 = vmatpush1.bf16.msra.mxu0 %v4915_v33  ;;  %2476 = vmatpush1.bf16.msra.mxu1 %v4921_v34 }
0x11fd   :  { %2530 = vmatprep.subr.bf16.mxu0 %v5177_v54  ;;  %2571 = vmatprep.subr.bf16.mxu1 %v4823_v59 }
0x129f   :  { %v2344_v8 = vpop.f32.mrf.mxu0  ;;  %v2385_v10 = vpop.f32.mrf.mxu1 }
0x12a0   :  { %v2392_v11 = vadd.f32 %v3147_v7, %v2344_v8  ;;  %v2394_v39 = vadd.f32 %v3149_v38, %v2385_v10  ;;  %v5304_v7 = vld [vmem:[%s5620_s1 + $0x68] ss:$16 sps:$4 sm:$0xff]   ;;  %v5310_v8 = vld [vmem:[%s5620_s1 + $0x44] ss:$16 sps:$4 sm:$0xff]   ;;  %v5316_v10 = vld [vmem:[%s5620_s1 + $0x4c] ss:$16 sps:$4 sm:$0xff]  }
0x12a1   :  { %v2346_v12 = vpop.f32.mrf.mxu0  ;;  %v2387_v2 = vpop.f32.mrf.mxu1 }
0x12a2   :  { %v2396_v31 = vmul.f32 0.5, %v2392_v11  ;;  %v2393_v14 = vadd.f32 %v3148_v58, %v2346_v12  ;;  %v2395_v20 = vadd.f32 %v3150_v15, %v2387_v2  ;;  %v2398_v41 = vmul.f32 0.5, %v2394_v39  ;;  %v3154_v58 = vld [vmem:[%s5621_s0 + $0x298] sm:$0xff] }
0x12a3   :  { %v2348_v16 = vpop.f32.mrf.mxu0  ;;  %v2389_v17 = vpop.f32.mrf.mxu1 }
0x12a4   :  { %3491 = vtanh.f32 %v2396_v31  ;;  %v2397_v9 = vmul.f32 0.5, %v2393_v14  ;;  %v3153_v16 = vld [vmem:[%s5621_s0 + $0x290] sm:$0xff] }
0x12a5   :  { %v2349_v18 = vpop.f32.mrf.mxu0  ;;  %v2390_v19 = vpop.f32.mrf.mxu1 }
0x12a6   :  { %3493 = vtanh.f32 %v2397_v9 }
0x12a7   :  { %3495 = vtanh.f32 %v2395_v20 }
0x12a8   :  { %3497 = vtanh.f32 %v2398_v41 }
0x12b1   :  { %v3492_v59 = vpop.eup %3491 }
0x12b2   :  { %v2402_v47 = vmul.f32 0.5, %v3492_v59 }
0x12b3   :  { %v3494_v6 = vpop.eup %3493 }
0x12b4   :  { %v2405_v23 = vadd.f32 0.5, %v2402_v47  ;;  %v2403_v13 = vmul.f32 0.5, %v3494_v6  ;;  %v3496_v44 = vpop.eup %3495 }
0x12b5   :  { %v3498_v3 = vpop.eup %3497 }
0x12b6   :  { %v2406_v21 = vadd.f32 0.5, %v2403_v13  ;;  %v2410_v53 = vmul.f32 %v3496_v44, %v2405_v23  ;;  %v2404_v0 = vmul.f32 0.5, %v3498_v3 }
0x12b8   :  { %v2409_v37 = vmul.f32 %v2406_v21, %v5139_v40  ;;  %v2407_v36 = vadd.f32 0.5, %v2404_v0  ;;  %v5262_v40 = vld [vmem:[%s5620_s1 + $0x84] ss:$16 sps:$4 sm:$0xff]   ;;  %v5383_v0 = vld [vmem:[%s5620_s1 + $0x48] ss:$16 sps:$4 sm:$0xff]  }
0x12ba   :  { %v5194_v55 = vadd.f32 %v2410_v53, %v2409_v37 }
0x12bc   :  { %3499 = vtanh.f32 %v5194_v55 }
0x12c9   :  { %v3500_v24 = vpop.eup %3499 }
0x12ca   :  { %v2413_v25 = vmul.f32 %v3500_v24, %v2407_v36  ;;  %v5389_v36 = vld [vmem:[%s5620_s1 + $0x24] ss:$16 sps:$4 sm:$0xff]   ;;  %v5395_v24 = vld [vmem:[%s5620_s1 + $0x2c] ss:$16 sps:$4 sm:$0xff]  }
0x12cc   :  { %v2419_v27 = vpack.c.bf16 %v2413_v25, %v2413_v25  ;;  %v5401_v25 = vld [vmem:[%s5620_s1 + $0x20] ss:$16 sps:$4 sm:$0xff]  }
0x12ce   :  { %2453 = vmatmul.mubr.bf16.vlgmr.msra.gmra.mxu0 %v2419_v27  ;;  %2494 = vmatmul.mubr.bf16.vlgmr.msra.gmra.mxu1 %v2419_v27  ;;  %v5407_v27 = vld [vmem:[%s5620_s1 + $0x28] ss:$16 sps:$4 sm:$0xff]  }
0x12cf   :  { %2531 = vmatpush1.bf16.msra.mxu0 %v5200_v22  ;;  %2572 = vmatpush1.bf16.msra.mxu1 %v5206_v61 }
0x12d0   :  { %2532 = vmatprep.subr.bf16.mxu0 %v5212_v42  ;;  %2573 = vmatprep.subr.bf16.mxu1 %v5218_v45 }
0x12d1   :  { %2562 = vmatprep.mubr.bf16.mxu0 %v3637_v1  ;;  %2603 = vmatprep.mubr.bf16.mxu1 %v3637_v1 }
0x12d3   :  { %2533 = vmatpush1.bf16.msra.mxu0 %v5226_v56  ;;  %2574 = vmatpush1.bf16.msra.mxu1 %v5232_v35 }
0x12d4   :  { %2534 = vmatprep.subr.bf16.mxu0 %v5238_v46  ;;  %2575 = vmatprep.subr.bf16.mxu1 %v5244_v48 }
0x12d7   :  { %2535 = vmatpush1.bf16.msra.mxu0 %v5250_v26  ;;  %2576 = vmatpush1.bf16.msra.mxu1 %v5256_v49 }
0x12d8   :  { %2536 = vmatprep.subr.bf16.mxu0 %v5262_v40  ;;  %2577 = vmatprep.subr.bf16.mxu1 %v5268_v50 }
0x12db   :  { %2537 = vmatpush1.bf16.msra.mxu0 %v5274_v51  ;;  %2578 = vmatpush1.bf16.msra.mxu1 %v5280_v43 }
0x12dc   :  { %2538 = vmatprep.subr.bf16.mxu0 %v5286_v52  ;;  %2579 = vmatprep.subr.bf16.mxu1 %v5292_v4 }
0x12df   :  { %2539 = vmatpush1.bf16.msra.mxu0 %v5298_v5  ;;  %2580 = vmatpush1.bf16.msra.mxu1 %v5304_v7 }
0x12e0   :  { %2540 = vmatprep.subr.bf16.mxu0 %v5310_v8  ;;  %2581 = vmatprep.subr.bf16.mxu1 %v5316_v10 }
0x12e3   :  { %2541 = vmatpush1.bf16.msra.mxu0 %v4867_v57  ;;  %2582 = vmatpush1.bf16.msra.mxu1 %v4873_v60  ;;  %v5333_v57 = vld [vmem:[%s5620_s1 + $0xec] ss:$16 sps:$4 sm:$0xff]   ;;  %v3151_v60 = vld [vmem:[%s5621_s0 + $0x280] sm:$0xff] }
0x12e4   :  { %2542 = vmatprep.subr.bf16.mxu0 %v4879_v28  ;;  %2583 = vmatprep.subr.bf16.mxu1 %v4885_v29 }
0x12e7   :  { %2543 = vmatpush1.bf16.msra.mxu0 %v4891_v30  ;;  %2584 = vmatpush1.bf16.msra.mxu1 %v4897_v32  ;;  %v3152_v30 = vld [vmem:[%s5621_s0 + $0x288] sm:$0xff] }
0x12e8   :  { %2544 = vmatprep.subr.bf16.mxu0 %v4903_v62  ;;  %2585 = vmatprep.subr.bf16.mxu1 %v4909_v63 }
0x12eb   :  { %2545 = vmatpush1.bf16.msra.mxu0 %v4915_v33  ;;  %2586 = vmatpush1.bf16.msra.mxu1 %v4921_v34 }
0x12ec   :  { %2640 = vmatprep.subr.bf16.mxu0 %v5177_v54  ;;  %2681 = vmatprep.subr.bf16.mxu1 %v5333_v57 }
0x138e   :  { %v2454_v28 = vpop.f32.mrf.mxu0  ;;  %v2495_v29 = vpop.f32.mrf.mxu1 }
0x138f   :  { %v2502_v32 = vadd.f32 %v3151_v60, %v2454_v28  ;;  %v2504_v17 = vadd.f32 %v3153_v16, %v2495_v29  ;;  %v5413_v60 = vld [vmem:[%s5620_s1 + $0x4] ss:$16 sps:$4 sm:$0xff]   ;;  %v5419_v28 = vld [vmem:[%s5620_s1 + $0xc] ss:$16 sps:$4 sm:$0xff]   ;;  %v5425_v29 = vld [vmem:[%s5620_s1] ss:$16 sps:$4 sm:$0xff]  }
0x1390   :  { %v2456_v62 = vpop.f32.mrf.mxu0  ;;  %v2497_v63 = vpop.f32.mrf.mxu1 }
0x1391   :  { %v2506_v33 = vmul.f32 0.5, %v2502_v32  ;;  %v2503_v34 = vadd.f32 %v3152_v30, %v2456_v62  ;;  %v2505_v15 = vadd.f32 %v3154_v58, %v2497_v63  ;;  %v2508_v9 = vmul.f32 0.5, %v2504_v17  ;;  %v5431_v30 = vld [vmem:[%s5620_s1 + $0x8] ss:$16 sps:$4 sm:$0xff]   ;;  %v3155_v32 = vld [vmem:[%s5621_s0 + $0x2a0] sm:$0xff] }
0x1392   :  { %v2458_v11 = vpop.f32.mrf.mxu0  ;;  %v2499_v12 = vpop.f32.mrf.mxu1 }
0x1393   :  { %3501 = vtanh.f32 %v2506_v33  ;;  %v2507_v2 = vmul.f32 0.5, %v2503_v34  ;;  %v3156_v33 = vld [vmem:[%s5621_s0 + $0x2a8] sm:$0xff] }
0x1394   :  { %v2459_v31 = vpop.f32.mrf.mxu0  ;;  %v2500_v14 = vpop.f32.mrf.mxu1 }
0x1395   :  { %3503 = vtanh.f32 %v2507_v2 }
0x1396   :  { %3505 = vtanh.f32 %v2505_v15 }
0x1397   :  { %3507 = vtanh.f32 %v2508_v9  ;;  %v3157_v9 = vld [vmem:[%s5621_s0 + $0x2b0] sm:$0xff] }
0x13a0   :  { %v3502_v18 = vpop.eup %3501 }
0x13a1   :  { %v2512_v19 = vmul.f32 0.5, %v3502_v18 }
0x13a2   :  { %v3504_v20 = vpop.eup %3503 }
0x13a3   :  { %v2515_v38 = vadd.f32 0.5, %v2512_v19  ;;  %v2513_v39 = vmul.f32 0.5, %v3504_v20  ;;  %v3506_v59 = vpop.eup %3505 }
0x13a4   :  { %v3508_v13 = vpop.eup %3507 }
0x13a5   :  { %v2516_v41 = vadd.f32 0.5, %v2513_v39  ;;  %v2520_v6 = vmul.f32 %v3506_v59, %v2515_v38  ;;  %v2514_v21 = vmul.f32 0.5, %v3508_v13 }
0x13a7   :  { %v2519_v47 = vmul.f32 %v2516_v41, %v5194_v55  ;;  %v2517_v44 = vadd.f32 0.5, %v2514_v21  ;;  %v5377_v55 = vld [vmem:[%s5620_s1 + $0x40] ss:$16 sps:$4 sm:$0xff]  }
0x13a9   :  { %v5349_v23 = vadd.f32 %v2520_v6, %v2519_v47 }
0x13ab   :  { %3509 = vtanh.f32 %v5349_v23 }
0x13b8   :  { %v3510_v37 = vpop.eup %3509 }
0x13b9   :  { %v2523_v53 = vmul.f32 %v3510_v37, %v2517_v44 }
0x13bb   :  { %v2529_v3 = vpack.c.bf16 %v2523_v53, %v2523_v53 }
0x13bd   :  { %2563 = vmatmul.mubr.bf16.vlgmr.msra.gmra.mxu0 %v2529_v3  ;;  %2604 = vmatmul.mubr.bf16.vlgmr.msra.gmra.mxu1 %v2529_v3 }
0x13be   :  { %2641 = vmatpush1.bf16.msra.mxu0 %v5200_v22  ;;  %2682 = vmatpush1.bf16.msra.mxu1 %v5206_v61 }
0x13bf   :  { %2642 = vmatprep.subr.bf16.mxu0 %v5212_v42  ;;  %2683 = vmatprep.subr.bf16.mxu1 %v5218_v45 }
0x13c0   :  { %2672 = vmatprep.mubr.bf16.mxu0 %v3637_v1  ;;  %2713 = vmatprep.mubr.bf16.mxu1 %v3637_v1 }
0x13c2   :  { %2643 = vmatpush1.bf16.msra.mxu0 %v5226_v56  ;;  %2684 = vmatpush1.bf16.msra.mxu1 %v5232_v35 }
0x13c3   :  { %2644 = vmatprep.subr.bf16.mxu0 %v5238_v46  ;;  %2685 = vmatprep.subr.bf16.mxu1 %v5244_v48 }
0x13c6   :  { %2645 = vmatpush1.bf16.msra.mxu0 %v5250_v26  ;;  %2686 = vmatpush1.bf16.msra.mxu1 %v5256_v49 }
0x13c7   :  { %2646 = vmatprep.subr.bf16.mxu0 %v5262_v40  ;;  %2687 = vmatprep.subr.bf16.mxu1 %v5268_v50 }
0x13ca   :  { %2647 = vmatpush1.bf16.msra.mxu0 %v5274_v51  ;;  %2688 = vmatpush1.bf16.msra.mxu1 %v5280_v43 }
0x13cb   :  { %2648 = vmatprep.subr.bf16.mxu0 %v5286_v52  ;;  %2689 = vmatprep.subr.bf16.mxu1 %v5292_v4 }
0x13ce   :  { %2649 = vmatpush1.bf16.msra.mxu0 %v5298_v5  ;;  %2690 = vmatpush1.bf16.msra.mxu1 %v5304_v7 }
0x13cf   :  { %2650 = vmatprep.subr.bf16.mxu0 %v5310_v8  ;;  %2691 = vmatprep.subr.bf16.mxu1 %v5316_v10 }
0x13d2   :  { %2651 = vmatpush1.bf16.msra.mxu0 %v5377_v55  ;;  %2692 = vmatpush1.bf16.msra.mxu1 %v5383_v0 }
0x13d3   :  { %2652 = vmatprep.subr.bf16.mxu0 %v5389_v36  ;;  %2693 = vmatprep.subr.bf16.mxu1 %v5395_v24 }
0x13d6   :  { %2653 = vmatpush1.bf16.msra.mxu0 %v5401_v25  ;;  %2694 = vmatpush1.bf16.msra.mxu1 %v5407_v27 }
0x13d7   :  { %2654 = vmatprep.subr.bf16.mxu0 %v5413_v60  ;;  %2695 = vmatprep.subr.bf16.mxu1 %v5419_v28 }
0x13da   :  { %2655 = vmatpush1.bf16.msra.mxu0 %v5425_v29  ;;  %2696 = vmatpush1.bf16.msra.mxu1 %v5431_v30 }
0x13db   :  { %2750 = vmatprep.subr.bf16.mxu0 %v5177_v54  ;;  %2791 = vmatprep.subr.bf16.mxu1 %v5333_v57  ;;  %v3158_v54 = vld [vmem:[%s5621_s0 + $0x2b8] sm:$0xff] }
0x147d   :  { %v2564_v62 = vpop.f32.mrf.mxu0  ;;  %v2605_v63 = vpop.f32.mrf.mxu1 }
0x147e   :  { %v2612_v34 = vadd.f32 %v3155_v32, %v2564_v62  ;;  %v2614_v18 = vadd.f32 %v3157_v9, %v2605_v63  ;;  %v2860_v9 = vld [vmem:[%s5622_s2 + $0x30] sm:$0xff] }
0x147f   :  { %v2566_v58 = vpop.f32.mrf.mxu0  ;;  %v2607_v11 = vpop.f32.mrf.mxu1 }
0x1480   :  { %v2616_v12 = vmul.f32 0.5, %v2612_v34  ;;  %v2613_v2 = vadd.f32 %v3156_v33, %v2566_v58  ;;  %v2615_v17 = vadd.f32 %v3158_v54, %v2607_v11  ;;  %v2618_v19 = vmul.f32 0.5, %v2614_v18  ;;  %v2867_v54 = vld [vmem:[%s5622_s2 + $0x68] sm:$0xff] }
0x1481   :  { %v2568_v57 = vpop.f32.mrf.mxu0  ;;  %v2609_v31 = vpop.f32.mrf.mxu1  ;;  %v3638_v11 = vmov 0.0   ;;  %v2859_v18 = vld [vmem:[%s5622_s2 + $0x28] sm:$0xff] }
0x1482   :  { %3511 = vtanh.f32 %v2616_v12  ;;  %v2617_v14 = vmul.f32 0.5, %v2613_v2  ;;  %v2869_v12 = vld [vmem:[%s5622_s2 + $0x78] sm:$0xff]  ;;  %v2868_v2 = vld [vmem:[%s5622_s2 + $0x70] sm:$0xff]  ;;  %v2866_v57 = vld [vmem:[%s5622_s2 + $0x60] sm:$0xff] }
0x1483   :  { %v2569_v15 = vpop.f32.mrf.mxu0  ;;  %v2610_v16 = vpop.f32.mrf.mxu1  ;;  %v2865_v31 = vld [vmem:[%s5622_s2 + $0x58] sm:$0xff] }
0x1484   :  { %3513 = vtanh.f32 %v2617_v14  ;;  %v2864_v14 = vld [vmem:[%s5622_s2 + $0x50] sm:$0xff]  ;;  %v2863_v15 = vld [vmem:[%s5622_s2 + $0x48] sm:$0xff]  ;;  %v2862_v16 = vld [vmem:[%s5622_s2 + $0x40] sm:$0xff] }
0x1485   :  { %3515 = vtanh.f32 %v2615_v17  ;;  %v2861_v17 = vld [vmem:[%s5622_s2 + $0x38] sm:$0xff] }
0x1486   :  { %3517 = vtanh.f32 %v2618_v19  ;;  %v2858_v19 = vld [vmem:[%s5622_s2 + $0x20] sm:$0xff] }
0x148f   :  { %v3512_v20 = vpop.eup %3511 }
0x1490   :  { %v2622_v38 = vmul.f32 0.5, %v3512_v20  ;;  %v2857_v20 = vld [vmem:[%s5622_s2 + $0x18] sm:$0xff] }
0x1491   :  { %v3514_v39 = vpop.eup %3513 }
0x1492   :  { %v2625_v41 = vadd.f32 0.5, %v2622_v38  ;;  %v2623_v59 = vmul.f32 0.5, %v3514_v39  ;;  %v3516_v6 = vpop.eup %3515  ;;  %v2856_v38 = vld [vmem:[%s5622_s2 + $0x10] sm:$0xff]  ;;  %v2855_v39 = vld [vmem:[%s5622_s2 + $0x8] sm:$0xff] }
0x1493   :  { %v3518_v37 = vpop.eup %3517 }
0x1494   :  { %v2626_v47 = vadd.f32 0.5, %v2623_v59  ;;  %v2630_v21 = vmul.f32 %v3516_v6, %v2625_v41  ;;  %v2624_v53 = vmul.f32 0.5, %v3518_v37  ;;  %v2854_v41 = vld [vmem:[%s5622_s2] sm:$0xff]  ;;  %v2955_v59 = vld [vmem:[%s5623_s4 + $0x38] sm:$0xff]  ;;  %v2953_v6 = vld [vmem:[%s5623_s4 + $0x28] sm:$0xff] }
0x1496   :  { %v2629_v13 = vmul.f32 %v2626_v47, %v5349_v23  ;;  %v2627_v3 = vadd.f32 0.5, %v2624_v53  ;;  %v2954_v47 = vld [vmem:[%s5623_s4 + $0x30] sm:$0xff] }
0x1498   :  { %v5449_v44 = vadd.f32 %v2630_v21, %v2629_v13  ;;  %v2952_v13 = vld [vmem:[%s5623_s4 + $0x20] sm:$0xff]  ;;  %v2951_v21 = vld [vmem:[%s5623_s4 + $0x18] sm:$0xff] }
0x149a   :  { %3519 = vtanh.f32 %v5449_v44 }
0x14a7   :  { %v3520_v32 = vpop.eup %3519 }
0x14a8   :  { %v2633_v62 = vmul.f32 %v3520_v32, %v2627_v3  ;;  %v3164_v3 = vld [vmem:[%s5621_s0 + $0x2e8] sm:$0xff] }
0x14aa   :  { %v2639_v63 = vpack.c.bf16 %v2633_v62, %v2633_v62 }
0x14ac   :  { %2673 = vmatmul.mubr.bf16.vlgmr.msra.gmra.mxu0 %v2639_v63  ;;  %2714 = vmatmul.mubr.bf16.vlgmr.msra.gmra.mxu1 %v2639_v63 }
0x14ad   :  { %2751 = vmatpush1.bf16.msra.mxu0 %v5200_v22  ;;  %2792 = vmatpush1.bf16.msra.mxu1 %v5206_v61 }
0x14ae   :  { %2752 = vmatprep.subr.bf16.mxu0 %v5212_v42  ;;  %2793 = vmatprep.subr.bf16.mxu1 %v5218_v45  ;;  %v3160_v42 = vld [vmem:[%s5621_s0 + $0x2c8] sm:$0xff] }
0x14af   :  { %2782 = vmatprep.mubr.bf16.mxu0 %v3637_v1  ;;  %2823 = vmatprep.mubr.bf16.mxu1 %v3637_v1  ;;  %v3159_v1 = vld [vmem:[%s5621_s0 + $0x2c0] sm:$0xff] }
0x14b1   :  { %2753 = vmatpush1.bf16.msra.mxu0 %v5226_v56  ;;  %2794 = vmatpush1.bf16.msra.mxu1 %v5232_v35 }
0x14b2   :  { %2754 = vmatprep.subr.bf16.mxu0 %v5238_v46  ;;  %2795 = vmatprep.subr.bf16.mxu1 %v5244_v48 }
0x14b5   :  { %2755 = vmatpush1.bf16.msra.mxu0 %v5250_v26  ;;  %2796 = vmatpush1.bf16.msra.mxu1 %v5256_v49  ;;  %v3162_v26 = vld [vmem:[%s5621_s0 + $0x2d8] sm:$0xff] }
0x14b6   :  { %2756 = vmatprep.subr.bf16.mxu0 %v5262_v40  ;;  %2797 = vmatprep.subr.bf16.mxu1 %v5268_v50 }
0x14b9   :  { %2757 = vmatpush1.bf16.msra.mxu0 %v5274_v51  ;;  %2798 = vmatpush1.bf16.msra.mxu1 %v5280_v43 }
0x14ba   :  { %2758 = vmatprep.subr.bf16.mxu0 %v5286_v52  ;;  %2799 = vmatprep.subr.bf16.mxu1 %v5292_v4  ;;  %v3161_v4 = vld [vmem:[%s5621_s0 + $0x2d0] sm:$0xff] }
0x14bd   :  { %2759 = vmatpush1.bf16.msra.mxu0 %v5298_v5  ;;  %2800 = vmatpush1.bf16.msra.mxu1 %v5304_v7 }
0x14be   :  { %2760 = vmatprep.subr.bf16.mxu0 %v5310_v8  ;;  %2801 = vmatprep.subr.bf16.mxu1 %v5316_v10 }
0x14c1   :  { %2761 = vmatpush1.bf16.msra.mxu0 %v5377_v55  ;;  %2802 = vmatpush1.bf16.msra.mxu1 %v5383_v0 }
0x14c2   :  { %2762 = vmatprep.subr.bf16.mxu0 %v5389_v36  ;;  %2803 = vmatprep.subr.bf16.mxu1 %v5395_v24 }
0x14c5   :  { %2763 = vmatpush1.bf16.msra.mxu0 %v5401_v25  ;;  %2804 = vmatpush1.bf16.msra.mxu1 %v5407_v27 }
0x14c6   :  { %2764 = vmatprep.subr.bf16.mxu0 %v5413_v60  ;;  %2805 = vmatprep.subr.bf16.mxu1 %v5419_v28 }
0x14c9   :  { %2765 = vmatpush1.bf16.msra.mxu0 %v5425_v29  ;;  %2806 = vmatpush1.bf16.msra.mxu1 %v5431_v30 }
0x14ca   :  { %3196 = vmatprep.subr.mxu0 %v3638_v11  ;;  %3231 = vmatprep.subr.mxu1 %v3638_v11 }
0x156c   :  { %v2674_v22 = vpop.f32.mrf.mxu0  ;;  %v2715_v61 = vpop.f32.mrf.mxu1 }
0x156d   :  { %v2722_v45 = vadd.f32 %v3159_v1, %v2674_v22  ;;  %v2724_v5 = vadd.f32 %v3161_v4, %v2715_v61  ;;  %v3166_v61 = vld [vmem:[%s5621_s0 + $0x2f8] sm:$0xff] }
0x156e   :  { %v2676_v56 = vpop.f32.mrf.mxu0  ;;  %v2717_v35 = vpop.f32.mrf.mxu1 }
0x156f   :  { %v2726_v46 = vmul.f32 0.5, %v2722_v45  ;;  %v2723_v48 = vadd.f32 %v3160_v42, %v2676_v56  ;;  %v2725_v52 = vadd.f32 %v3162_v26, %v2717_v35  ;;  %v2728_v7 = vmul.f32 0.5, %v2724_v5  ;;  %v3165_v26 = vld [vmem:[%s5621_s0 + $0x2f0] sm:$0xff] }
0x1570   :  { %v2678_v49 = vpop.f32.mrf.mxu0  ;;  %v2719_v40 = vpop.f32.mrf.mxu1 }
0x1571   :  { %3521 = vtanh.f32 %v2726_v46  ;;  %v2727_v50 = vmul.f32 0.5, %v2723_v48 }
0x1572   :  { %v2679_v51 = vpop.f32.mrf.mxu0  ;;  %v2720_v43 = vpop.f32.mrf.mxu1 }
0x1573   :  { %3523 = vtanh.f32 %v2727_v50 }
0x1574   :  { %3525 = vtanh.f32 %v2725_v52 }
0x1575   :  { %3527 = vtanh.f32 %v2728_v7 }
0x157e   :  { %v3522_v8 = vpop.eup %3521 }
0x157f   :  { %v2732_v10 = vmul.f32 0.5, %v3522_v8 }
0x1580   :  { %v3524_v23 = vpop.eup %3523 }
0x1581   :  { %v2735_v55 = vadd.f32 0.5, %v2732_v10  ;;  %v2733_v0 = vmul.f32 0.5, %v3524_v23  ;;  %v3526_v24 = vpop.eup %3525 }
0x1582   :  { %v3528_v28 = vpop.eup %3527 }
0x1583   :  { %v2736_v36 = vadd.f32 0.5, %v2733_v0  ;;  %v2740_v27 = vmul.f32 %v3526_v24, %v2735_v55  ;;  %v2734_v29 = vmul.f32 0.5, %v3528_v28  ;;  %v2949_v28 = vld [vmem:[%s5623_s4 + $0x8] sm:$0xff] }
0x1585   :  { %v2739_v25 = vmul.f32 %v2736_v36, %v5449_v44  ;;  %v2737_v30 = vadd.f32 0.5, %v2734_v29  ;;  %v3163_v44 = vld [vmem:[%s5621_s0 + $0x2e0] sm:$0xff] }
0x1586   :  { %v3167_v29 = vld [vmem:[%s5624_s3] ss:$0 sm:$0xff] }
0x1587   :  { %v5497_v60 = vadd.f32 %v2740_v27, %v2739_v25  ;;  %v2950_v27 = vld [vmem:[%s5623_s4 + $0x10] sm:$0xff] }
0x1589   :  { %3529 = vtanh.f32 %v5497_v60 }
0x1596   :  { %v3530_v33 = vpop.eup %3529 }
0x1597   :  { %v2743_v34 = vmul.f32 %v3530_v33, %v2737_v30 }
0x1599   :  { %v2749_v58 = vpack.c.bf16 %v2743_v34, %v2743_v34 }
0x159b   :  { %2783 = vmatmul.mubr.bf16.vlgmr.msra.gmra.mxu0 %v2749_v58  ;;  %2824 = vmatmul.mubr.bf16.vlgmr.msra.gmra.mxu1 %v2749_v58 }
0x159c   :  { %3197 = vmatpush3.msra.mxu0 %v2869_v12  ;;  %3228 = vmatprep.mubr.msk.f32.mxu0 %vm3639_vm0, %v3638_v11  ;;  %v3168_v12 = vld [vmem:[%s5625_s5] ss:$0 sm:$0xff] }
0x159d   :  { %3198 = vmatprep.subr.mxu0 %v3638_v11  ;;  %3247 = vmatprep.mubr.msk.f32.mxu1 %vm3639_vm0, %v3638_v11 }
0x159e   :  { %3199 = vmatpush3.msra.mxu0 %v2868_v2  ;;  %3232 = vmatpush3.msra.mxu1 %v2955_v59 }
0x159f   :  { %3200 = vmatprep.subr.mxu0 %v3638_v11  ;;  %3233 = vmatprep.subr.mxu1 %v3638_v11 }
0x15a0   :  { %3201 = vmatpush3.msra.mxu0 %v2867_v54  ;;  %3234 = vmatpush3.msra.mxu1 %v2954_v47 }
0x15a1   :  { %3202 = vmatprep.subr.mxu0 %v3638_v11  ;;  %3235 = vmatprep.subr.mxu1 %v3638_v11 }
0x15a2   :  { %3203 = vmatpush3.msra.mxu0 %v2866_v57  ;;  %3236 = vmatpush3.msra.mxu1 %v2953_v6 }
0x15a3   :  { %3204 = vmatprep.subr.mxu0 %v3638_v11  ;;  %3237 = vmatprep.subr.mxu1 %v3638_v11 }
0x15a4   :  { %3205 = vmatpush3.msra.mxu0 %v2865_v31  ;;  %3238 = vmatpush3.msra.mxu1 %v2952_v13 }
0x15a5   :  { %3206 = vmatprep.subr.mxu0 %v3638_v11  ;;  %3239 = vmatprep.subr.mxu1 %v3638_v11 }
0x15a6   :  { %3207 = vmatpush3.msra.mxu0 %v2864_v14  ;;  %3240 = vmatpush3.msra.mxu1 %v2951_v21 }
0x15a7   :  { %3208 = vmatprep.subr.mxu0 %v3638_v11  ;;  %3241 = vmatprep.subr.mxu1 %v3638_v11 }
0x15a8   :  { %3209 = vmatpush3.msra.mxu0 %v2863_v15  ;;  %3242 = vmatpush3.msra.mxu1 %v2950_v27 }
0x15a9   :  { %3210 = vmatprep.subr.mxu0 %v3638_v11  ;;  %3243 = vmatprep.subr.mxu1 %v3638_v11 }
0x15aa   :  { %3211 = vmatpush3.msra.mxu0 %v2862_v16  ;;  %3244 = vmatpush3.msra.mxu1 %v2949_v28 }
0x15ab   :  { %3212 = vmatprep.subr.mxu0 %v3638_v11  ;;  %3245 = vmatprep.subr.mxu1 %v3638_v11 }
0x15ac   :  { %3213 = vmatpush3.msra.mxu0 %v2861_v17 }
0x15ad   :  { %3214 = vmatprep.subr.mxu0 %v3638_v11 }
0x15ae   :  { %3215 = vmatpush3.msra.mxu0 %v2860_v9 }
0x15af   :  { %3216 = vmatprep.subr.mxu0 %v3638_v11 }
0x15b0   :  { %3217 = vmatpush3.msra.mxu0 %v2859_v18 }
0x15b1   :  { %3218 = vmatprep.subr.mxu0 %v3638_v11 }
0x15b2   :  { %3219 = vmatpush3.msra.mxu0 %v2858_v19 }
0x15b3   :  { %3220 = vmatprep.subr.mxu0 %v3638_v11 }
0x15b4   :  { %3221 = vmatpush3.msra.mxu0 %v2857_v20 }
0x15b5   :  { %3222 = vmatprep.subr.mxu0 %v3638_v11 }
0x15b6   :  { %3223 = vmatpush3.msra.mxu0 %v2856_v38 }
0x15b7   :  { %3224 = vmatprep.subr.mxu0 %v3638_v11 }
0x15b8   :  { %3225 = vmatpush3.msra.mxu0 %v2855_v39 }
0x15b9   :  { %3226 = vmatprep.subr.mxu0 %v3638_v11 }
0x15ba   :  { %3227 = vmatpush3.msra.mxu0 %v2854_v41 }
0x165b   :  { %v2784_v37 = vpop.f32.mrf.mxu0  ;;  %v2825_v53 = vpop.f32.mrf.mxu1 }
0x165c   :  { %v2832_v32 = vadd.f32 %v3163_v44, %v2784_v37  ;;  %v2834_v49 = vadd.f32 %v3165_v26, %v2825_v53 }
0x165d   :  { %v2786_v62 = vpop.f32.mrf.mxu0  ;;  %v2827_v63 = vpop.f32.mrf.mxu1 }
0x165e   :  { %v2836_v1 = vmul.f32 0.5, %v2832_v32  ;;  %v2833_v22 = vadd.f32 %v3164_v3, %v2786_v62  ;;  %v2835_v48 = vadd.f32 %v3166_v61, %v2827_v63  ;;  %v2838_v40 = vmul.f32 0.5, %v2834_v49 }
0x165f   :  { %v2788_v42 = vpop.f32.mrf.mxu0  ;;  %v2829_v45 = vpop.f32.mrf.mxu1 }
0x1660   :  { %3531 = vtanh.f32 %v2836_v1  ;;  %v2837_v56 = vmul.f32 0.5, %v2833_v22 }
0x1661   :  { %v2789_v35 = vpop.f32.mrf.mxu0  ;;  %v2830_v46 = vpop.f32.mrf.mxu1 }
0x1662   :  { %3533 = vtanh.f32 %v2837_v56 }
0x1663   :  { %3535 = vtanh.f32 %v2835_v48 }
0x1664   :  { %3537 = vtanh.f32 %v2838_v40 }
0x166d   :  { %v3532_v50 = vpop.eup %3531 }
0x166e   :  { %v2842_v51 = vmul.f32 0.5, %v3532_v50 }
0x166f   :  { %v3534_v43 = vpop.eup %3533 }
0x1670   :  { %v2845_v52 = vadd.f32 0.5, %v2842_v51  ;;  %v2843_v4 = vmul.f32 0.5, %v3534_v43  ;;  %v3536_v7 = vpop.eup %3535 }
0x1671   :  { %v3538_v55 = vpop.eup %3537 }
0x1672   :  { %v2846_v5 = vadd.f32 0.5, %v2843_v4  ;;  %v2850_v10 = vmul.f32 %v3536_v7, %v2845_v52  ;;  %v2844_v0 = vmul.f32 0.5, %v3538_v55 }
0x1674   :  { %v2849_v8 = vmul.f32 %v2846_v5, %v5497_v60  ;;  %v2847_v36 = vadd.f32 0.5, %v2844_v0  ;;  %v2948_v60 = vld [vmem:[%s5623_s4] sm:$0xff] }
0x1675   :  { %3246 = vmatpush3.msra.mxu1 %v2948_v60 }
0x1676   :  { %v2851_v23 = vadd.f32 %v2850_v10, %v2849_v8 }
0x1678   :  { %3539 = vtanh.f32 %v2851_v23 }
0x1685   :  { %v3540_v24 = vpop.eup %3539 }
0x1686   :  { %v2853_v25 = vmul.f32 %v3540_v24, %v2847_v36 }
0x1688   :  { %3229 = vmatmul.mubr.f32.vlgmr.msra.gmra.mxu0 %v2853_v25 }
0x1748   :  { %v2943_v30 = vpop.f32.mrf.mxu0 }
0x1749   :  { %v2944_v33 = vadd.f32 %v3167_v29, %v2943_v30 }
0x174a   :  { %v3230_v34 = vpop.f32.mrf.mxu0 }
0x174b   :  { %v2947_v58 = vmax.f32 %v2944_v33, 0.0 }
0x174d   :  { %3248 = vmatmul.mubr.msk.f32.vlgmr.msra.gmra.mxu1 %vm2963_vm1, %v2947_v58 }
0x180d   :  { %v3033_v2 = vpop.f32.mrf.mxu1 }
0x180e   :  { %v3034_v54 = vadd.f32 %v3168_v12, %v3033_v2 }
0x180f   :  { %v3249_v57 = vpop.f32.mrf.mxu1 }
0x1810   :  { %3038 = vst.msk [vmem:[%s5626_s6] sm:$0xff] %vm3037_vm2, %v3034_v54 }

</bundles_post_ra>
